<compile_context>
chip_gen: v5e
topology: v5e:2x2
jax: 0.10.0
libtpu: 0.0.40
codegen_flags: <defaults>
</compile_context>

<pallas_src>
import functools
import math

import numpy as np
import jax
import jax.numpy as jnp
from jax.experimental import pallas as pl
from jax.experimental.pallas import tpu as pltpu

ACT_DTYPE = jnp.bfloat16
# TODO(synk): SRNet-style backbones use LeakyReLU(0.1); verify against the actual
#             ArcSRNet3 module (nn.LeakyReLU default would be 0.01).
NEG_SLOPE = 0.1
BN_EPS = 1e-5
CPAD = 128          # lane-dense padding of the tiny head output


def _leaky(x):
    return jnp.where(x > 0, x, NEG_SLOPE * x)


# ---------------------------------------------------------------------------
# trace-time weight preprocessing: BN folding + banded / block-diag layouts
# ---------------------------------------------------------------------------
def _fold_bn(p):
    scale = p["gamma"] * jax.lax.rsqrt(p["var"] + BN_EPS)
    bias = (p["b"] - p["mean"]) * scale + p["beta"]
    return scale, bias


def _band_conv3x3(p, *, stride, w_in, w_out):
    """3x3 conv (pad=1) as 3 banded matrices acting on the row-slab layout.

    Returns band (3, (w_in+2)*Cin, (w_out+2)*Cout) bf16 and bias (1, (w_out+2)*Cout) f32
    with BN folded in.  Output pad lane-groups (0 and w_out+1) are identically zero.
    """
    w = p["w"]                                        # (Cout, Cin, 3, 3)
    cout, cin = w.shape[0], w.shape[1]
    wp_in, wp_out = w_in + 2, w_out + 2
    scale, bias = _fold_bn(p)
    wt = jnp.transpose(w, (2, 3, 1, 0)) * scale       # (3, 3, Cin, Cout), BN scale folded
    # sel[dj, c, wo] = 1 iff input lane-group c == stride*wo + dj  (static, numpy)
    sel = np.zeros((3, wp_in, w_out), np.float32)
    for dj in range(3):
        for wo in range(w_out):
            sel[dj, stride * wo + dj, wo] = 1.0
    band = jnp.einsum("jcw,djio->dciwo", jnp.asarray(sel), wt)
    band = band.reshape(3, wp_in * cin, w_out * cout)
    band = jnp.pad(band, ((0, 0), (0, 0), (cout, cout))).astype(ACT_DTYPE)
    bias_t = jnp.pad(jnp.tile(bias, w_out), (cout, cout)).reshape(1, wp_out * cout)
    return band, bias_t.astype(jnp.float32)


def _blockdiag_conv1x1(p, *, wp):
    """1x1 conv (pad=0) as a block-diagonal matrix on the row-slab layout.

    Pad lane-groups map to exactly zero (zero diag blocks + zero bias there).
    """
    w = p["w"]                                        # (Cm, Cin, 1, 1)
    cm, cin = w.shape[0], w.shape[1]
    scale, bias = _fold_bn(p)
    wmat = w[:, :, 0, 0].T * scale                    # (Cin, Cm)
    diag = np.eye(wp, dtype=np.float32)
    diag[0, 0] = 0.0
    diag[wp - 1, wp - 1] = 0.0
    blk = jnp.einsum("ab,io->aibo", jnp.asarray(diag), wmat)
    blk = blk.reshape(wp * cin, wp * cm).astype(ACT_DTYPE)
    bias_t = jnp.pad(jnp.tile(bias, wp - 2), (cm, cm)).reshape(1, wp * cm)
    return blk, bias_t.astype(jnp.float32)


# ---------------------------------------------------------------------------
# Pallas kernels (one image per grid step, everything 2D inside the kernel)
# ---------------------------------------------------------------------------
def _conv_s1_kernel(x_ref, band_ref, bias_ref, o_ref, *, h_out):
    acc = bias_ref[...]
    for di in range(3):
        acc = acc + jnp.dot(x_ref[pl.ds(di, h_out), :], band_ref[di],
                            preferred_element_type=jnp.float32)
    y = _leaky(acc)
    o_ref[...] = jnp.zeros(o_ref.shape, o_ref.dtype)           # zero pad frame
    o_ref[pl.ds(1, h_out), :] = y.astype(o_ref.dtype)


def _conv_s2_kernel(xe_ref, xo_ref, band_ref, bias_ref, o_ref, *, h_out):
    rows = (xe_ref[pl.ds(0, h_out), :],     # input rows 2*ho + 0
            xo_ref[pl.ds(0, h_out), :],     # input rows 2*ho + 1
            xe_ref[pl.ds(1, h_out), :])     # input rows 2*ho + 2
    acc = bias_ref[...]
    for di in range(3):
        acc = acc + jnp.dot(rows[di], band_ref[di],
                            preferred_element_type=jnp.float32)
    y = _leaky(acc)
    o_ref[...] = jnp.zeros(o_ref.shape, o_ref.dtype)
    o_ref[pl.ds(1, h_out), :] = y.astype(o_ref.dtype)


def _res_block_kernel(x_ref, w1_ref, b1_ref, band2_ref, b2_ref, o_ref, h_ref, *, h_img):
    # 1x1 conv + BN + LReLU on interior rows (block-diag matmul); h stays in VMEM scratch
    x_int = x_ref[pl.ds(1, h_img), :]
    h = _leaky(jnp.dot(x_int, w1_ref[...], preferred_element_type=jnp.float32)
               + b1_ref[...])
    h_ref[...] = jnp.zeros(h_ref.shape, h_ref.dtype)
    h_ref[pl.ds(1, h_img), :] = h.astype(h_ref.dtype)
    # 3x3 conv + BN as 3 row-shifted banded matmuls on the padded h slab
    acc = b2_ref[...]
    for di in range(3):
        acc = acc + jnp.dot(h_ref[pl.ds(di, h_img), :], band2_ref[di],
                            preferred_element_type=jnp.float32)
    y = _leaky(acc) + x_int.astype(jnp.float32)                # residual add
    o_ref[...] = jnp.zeros(o_ref.shape, o_ref.dtype)
    o_ref[pl.ds(1, h_img), :] = y.astype(o_ref.dtype)


def _head_kernel(f1_ref, f2_ref, w1a_ref, w1b_ref, b1_ref, w2_ref, b2_ref, o_ref):
    p1 = jnp.mean(f1_ref[...].astype(jnp.float32), axis=1)     # AdaptiveAvgPool2d(1)
    p2 = jnp.mean(f2_ref[...].astype(jnp.float32), axis=1)
    h = (jnp.dot(p1.astype(jnp.bfloat16), w1a_ref[...],
                 preferred_element_type=jnp.float32)
         + jnp.dot(p2.astype(jnp.bfloat16), w1b_ref[...],
                   preferred_element_type=jnp.float32)
         + b1_ref[...])                                        # Linear(2C -> C//2), concat-free
    o_ref[...] = (jnp.dot(h.astype(jnp.bfloat16), w2_ref[...],
                          preferred_element_type=jnp.float32)
                  + b2_ref[...])                               # Linear(C//2 -> 2), 128-padded


# ---------------------------------------------------------------------------
# layer wrappers
# ---------------------------------------------------------------------------
def _conv_layer(x_slab, p, *, stride, h_in, w_in):
    """3x3 conv + BN + LeakyReLU.  x_slab: (B2, h_in+2, (w_in+2)*Cin) bf16, zero frame."""
    cout, cin = p["w"].shape[0], p["w"].shape[1]
    h_out = (h_in - 1) // stride + 1
    w_out = (w_in - 1) // stride + 1
    n_in = (w_in + 2) * cin
    n_out = (w_out + 2) * cout
    hp_out = h_out + 2
    band, bias = _band_conv3x3(p, stride=stride, w_in=w_in, w_out=w_out)
    bsz2 = x_slab.shape[0]

    band_spec = pl.BlockSpec((3,) + band.shape[1:], lambda b: (0, 0, 0))
    bias_spec = pl.BlockSpec((1, n_out), lambda b: (0, 0))
    out_spec = pl.BlockSpec((None, hp_out, n_out), lambda b: (b, 0, 0))

    if stride == 1:
        kern = functools.partial(_conv_s1_kernel, h_out=h_out)
        in_specs = [pl.BlockSpec((None, h_in + 2, n_in), lambda b: (b, 0, 0)),
                    band_spec, bias_spec]
        args = (x_slab, band, bias)
    else:
        # even/odd row-parity views -> only contiguous sublane loads inside the kernel
        xe = x_slab[:, 0::2, :]                                # (B2, h_out+1, n_in)
        xo = x_slab[:, 1::2, :]                                # (B2, h_out+1, n_in)
        kern = functools.partial(_conv_s2_kernel, h_out=h_out)
        row_spec = pl.BlockSpec((None, h_out + 1, n_in), lambda b: (b, 0, 0))
        in_specs = [row_spec, row_spec, band_spec, bias_spec]
        args = (xe, xo, band, bias)

    out = pl.pallas_call(
        kern,
        out_shape=jax.ShapeDtypeStruct((bsz2, hp_out, n_out), ACT_DTYPE),
        grid_spec=pltpu.PrefetchScalarGridSpec(
            num_scalar_prefetch=0, grid=(bsz2,),
            in_specs=in_specs, out_specs=out_spec),
        compiler_params=pltpu.CompilerParams(dimension_semantics=("parallel",)),
    )(*args)
    return out, h_out, w_out


def _res_block(x_slab, blk, *, h, w):
    """Fused residual block: 1x1 conv -> 3x3 conv -> +x, one pallas_call, h in VMEM."""
    ch = blk["layer2"]["w"].shape[0]
    ch2 = blk["layer1"]["w"].shape[0]
    hp, wp = h + 2, w + 2
    n = wp * ch
    n_h = wp * ch2
    w1, b1 = _blockdiag_conv1x1(blk["layer1"], wp=wp)
    band2, bias2 = _band_conv3x3(blk["layer2"], stride=1, w_in=w, w_out=w)
    bsz2 = x_slab.shape[0]

    kern = functools.partial(_res_block_kernel, h_img=h)
    out = pl.pallas_call(
        kern,
        out_shape=jax.ShapeDtypeStruct((bsz2, hp, n), ACT_DTYPE),
        grid_spec=pltpu.PrefetchScalarGridSpec(
            num_scalar_prefetch=0, grid=(bsz2,),
            in_specs=[pl.BlockSpec((None, hp, n), lambda b: (b, 0, 0)),
                      pl.BlockSpec((n, n_h), lambda b: (0, 0)),
                      pl.BlockSpec((1, n_h), lambda b: (0, 0)),
                      pl.BlockSpec((3, n_h, n), lambda b: (0, 0, 0)),
                      pl.BlockSpec((1, n), lambda b: (0, 0))],
            out_specs=pl.BlockSpec((None, hp, n), lambda b: (b, 0, 0)),
            scratch_shapes=[pltpu.VMEM((hp, n_h), ACT_DTYPE)]),
        compiler_params=pltpu.CompilerParams(dimension_semantics=("parallel",)),
    )(x_slab, w1, b1, band2, bias2)
    return out


def head_pallas(f1, f2, fp):
    """Global average pool of both branches + final MLP (SiameseSRNet.final)."""
    bsz, hw, c = f1.shape
    w1, b1 = fp["fc1"]["w"], fp["fc1"]["b"]                    # (2C, hid), (hid,)
    w2, b2 = fp["fc2"]["w"], fp["fc2"]["b"]                    # (hid, 2), (2,)
    hid = w1.shape[1]
    nout = w2.shape[1]
    w1a = w1[:c].astype(jnp.bfloat16)                          # concat -> split weights
    w1b = w1[c:].astype(jnp.bfloat16)
    w2p = jnp.pad(w2, ((0, 0), (0, CPAD - nout))).astype(jnp.bfloat16)
    b2p = jnp.pad(b2, (0, CPAD - nout)).reshape(1, CPAD)
    b1r = b1.reshape(1, hid)

    vmem = pl.BlockSpec(memory_space=pltpu.MemorySpace.VMEM)
    out = pl.pallas_call(
        _head_kernel,
        out_shape=jax.ShapeDtypeStruct((bsz, CPAD), jnp.float32),
        in_specs=[vmem] * 7,
        out_specs=vmem,
    )(f1, f2, w1a, w1b, b1r, w2p, b2p)
    return out[:, :nout]


# ---------------------------------------------------------------------------
# forward
# ---------------------------------------------------------------------------
def backbone_forward(params, slab, h, w):
    out, h, w = _conv_layer(slab, params["conv1"], stride=1, h_in=h, w_in=w)
    out, h, w = _conv_layer(out, params["conv2"], stride=2, h_in=h, w_in=w)
    for blk in params["res_block1"]:
        out = _res_block(out, blk, h=h, w=w)
    out, h, w = _conv_layer(out, params["conv3"], stride=2, h_in=h, w_in=w)
    for blk in params["res_block2"]:
        out = _res_block(out, blk, h=h, w=w)
    out, h, w = _conv_layer(out, params["conv4"], stride=2, h_in=h, w_in=w)
    for blk in params["res_block3"]:
        out = _res_block(out, blk, h=h, w=w)
    return out, h, w


def siamese_forward(params, img1, img2):
    bsz = img1.shape[0]
    # Shared weights -> run both branches as ONE stacked backbone pass (2B images).
    x = jnp.concatenate([img1, img2], axis=0)                  # (2B, 1, H, W) NCHW
    x = jnp.transpose(x, (0, 2, 3, 1))                         # NHWC
    x = jnp.pad(x, ((0, 0), (1, 1), (1, 1), (0, 0)))           # 1-pixel zero frame
    b2, hp, wp, cin = x.shape
    slab = x.reshape(b2, hp, wp * cin).astype(ACT_DTYPE)       # row-slab layout

    feat_slab, hf, wf = backbone_forward(params["net"], slab, hp - 2, wp - 2)
    c = params["net"]["conv4"]["w"].shape[0]
    feat = feat_slab.reshape(b2, hf + 2, wf + 2, c)[:, 1:1 + hf, 1:1 + wf, :]
    feat = feat.reshape(b2, hf * wf, c)
    f1, f2 = feat[:bsz], feat[bsz:]
    return head_pallas(f1, f2, params["final"])                # (B, 2)


# ---------------------------------------------------------------------------
# parameter init (deterministic; shapes taken from the PyTorch modules)
# ---------------------------------------------------------------------------
def _init_conv_bn(key, cin, cout, k):
    kw, kb = jax.random.split(key)
    bound = 1.0 / math.sqrt(cin * k * k)
    return dict(
        w=jax.random.uniform(kw, (cout, cin, k, k), jnp.float32, -bound, bound),
        b=jax.random.uniform(kb, (cout,), jnp.float32, -bound, bound),
        gamma=jnp.ones((cout,), jnp.float32),
        beta=jnp.zeros((cout,), jnp.float32),
        mean=jnp.zeros((cout,), jnp.float32),
        var=jnp.ones((cout,), jnp.float32),
    )


def _init_linear(key, fin, fout):
    kw, kb = jax.random.split(key)
    bound = 1.0 / math.sqrt(fin)
    return dict(
        w=jax.random.uniform(kw, (fin, fout), jnp.float32, -bound, bound),
        b=jax.random.uniform(kb, (fout,), jnp.float32, -bound, bound),
    )


def init_params(key, num_block, final_dim):
    keys = iter(jax.random.split(key, 64))
    net = {
        "conv1": _init_conv_bn(next(keys), 1, 8, 3),
        "conv2": _init_conv_bn(next(keys), 8, 16, 3),
        "conv3": _init_conv_bn(next(keys), 16, 32, 3),
        "conv4": _init_conv_bn(next(keys), 32, 64, 3),
    }

    def res_blocks(n, ch):
        return [dict(layer1=_init_conv_bn(next(keys), ch, ch // 2, 1),
                     layer2=_init_conv_bn(next(keys), ch // 2, ch, 3))
                for _ in range(n)]

    net["res_block1"] = res_blocks(num_block[0], 16)
    net["res_block2"] = res_blocks(num_block[1], 32)
    net["res_block3"] = res_blocks(num_block[2], 64)
    # ArcMargin weight of the inner net is unused by SiameseSRNet.forward (label=None).

    final = {
        "fc1": _init_linear(next(keys), final_dim * 2, final_dim // 2),
        "fc2": _init_linear(next(keys), final_dim // 2, 2),
    }
    return {"net": net, "final": final}


# ---------------------------------------------------------------------------
if __name__ == "__main__":
    key = jax.random.PRNGKey(0)
    k_param, k1, k2 = jax.random.split(key, 3)

    B, H, W = 2, 16, 16
    num_block = (1, 1, 1)
    final_dim = 64                       # feature dim of the inner net

    params = init_params(k_param, num_block, final_dim)
    img1 = jax.random.normal(k1, (B, 1, H, W), jnp.float32)    # NCHW, like PyTorch
    img2 = jax.random.normal(k2, (B, 1, H, W), jnp.float32)

    fwd = jax.jit(siamese_forward)
    out = fwd(params, img1, img2)
    jax.block_until_ready(out)

    assert out.shape == (B, 2)
    print("KERNEL_OK")
</pallas_src>

<mosaic_0001>
module attributes {stable_mosaic.version = 11 : i64} {
  func.func @_conv_s1_kernel(%arg0: i32, %arg1: memref<1x18x18xbf16, #tpu.memory_space<vmem>>, %arg2: memref<3x18x144xbf16, #tpu.memory_space<vmem>>, %arg3: memref<1x144xf32, #tpu.memory_space<vmem>>, %arg4: memref<1x18x144xbf16, #tpu.memory_space<vmem>>) attributes {dimension_semantics = [#tpu.dimension_semantics<parallel>], iteration_bounds = array<i64: 4>, scalar_prefetch = 0 : i64, scratch_operands = 0 : i64, tpu.core_type = #tpu.core_type<tc>, window_params = [{transform_indices = @transform_0, window_bounds = array<i64: 1, 18, 18>}, {pipeline_mode = #tpu.pipeline_mode<synchronous>, transform_indices = @transform_1, window_bounds = array<i64: 3, 18, 144>}, {pipeline_mode = #tpu.pipeline_mode<synchronous>, transform_indices = @transform_2, window_bounds = array<i64: 1, 144>}, {transform_indices = @transform_3, window_bounds = array<i64: 1, 18, 144>}]} {
    %c0 = arith.constant 0 : index
    %c0_0 = arith.constant 0 : index
    %0 = vector.load %arg3[%c0, %c0_0] : memref<1x144xf32, #tpu.memory_space<vmem>>, vector<1x144xf32>
    %c0_1 = arith.constant 0 : index
    %c0_2 = arith.constant 0 : index
    %c0_3 = arith.constant 0 : index
    %1 = vector.load %arg1[%c0_1, %c0_2, %c0_3] : memref<1x18x18xbf16, #tpu.memory_space<vmem>>, vector<1x16x18xbf16>
    %2 = vector.shape_cast %1 : vector<1x16x18xbf16> to vector<16x18xbf16>
    %c0_4 = arith.constant 0 : index
    %c0_5 = arith.constant 0 : index
    %c0_6 = arith.constant 0 : index
    %3 = vector.load %arg2[%c0_4, %c0_5, %c0_6] : memref<3x18x144xbf16, #tpu.memory_space<vmem>>, vector<1x18x144xbf16>
    %4 = vector.shape_cast %3 : vector<1x18x144xbf16> to vector<18x144xbf16>
    %cst = arith.constant dense<0.000000e+00> : vector<16x144xf32>
    %5 = tpu.matmul %2, %4, %cst {dimension_numbers = #tpu.dot_dimension_numbers<[1], [0], [0], [1], [0, 0, 1, 1], [], []>} : vector<16x18xbf16>, vector<18x144xbf16>, vector<16x144xf32> -> vector<16x144xf32>
    %6 = vector.broadcast %0 : vector<1x144xf32> to vector<16x144xf32>
    %7 = arith.addf %6, %5 : vector<16x144xf32>
    %c0_7 = arith.constant 0 : index
    %c1 = arith.constant 1 : index
    %c0_8 = arith.constant 0 : index
    %8 = vector.load %arg1[%c0_7, %c1, %c0_8] : memref<1x18x18xbf16, #tpu.memory_space<vmem>>, vector<1x16x18xbf16>
    %9 = vector.shape_cast %8 : vector<1x16x18xbf16> to vector<16x18xbf16>
    %c1_9 = arith.constant 1 : index
    %c0_10 = arith.constant 0 : index
    %c0_11 = arith.constant 0 : index
    %10 = vector.load %arg2[%c1_9, %c0_10, %c0_11] : memref<3x18x144xbf16, #tpu.memory_space<vmem>>, vector<1x18x144xbf16>
    %11 = vector.shape_cast %10 : vector<1x18x144xbf16> to vector<18x144xbf16>
    %cst_12 = arith.constant dense<0.000000e+00> : vector<16x144xf32>
    %12 = tpu.matmul %9, %11, %cst_12 {dimension_numbers = #tpu.dot_dimension_numbers<[1], [0], [0], [1], [0, 0, 1, 1], [], []>} : vector<16x18xbf16>, vector<18x144xbf16>, vector<16x144xf32> -> vector<16x144xf32>
    %13 = arith.addf %7, %12 : vector<16x144xf32>
    %c0_13 = arith.constant 0 : index
    %c2 = arith.constant 2 : index
    %c0_14 = arith.constant 0 : index
    %14 = vector.load %arg1[%c0_13, %c2, %c0_14] : memref<1x18x18xbf16, #tpu.memory_space<vmem>>, vector<1x16x18xbf16>
    %15 = vector.shape_cast %14 : vector<1x16x18xbf16> to vector<16x18xbf16>
    %c2_15 = arith.constant 2 : index
    %c0_16 = arith.constant 0 : index
    %c0_17 = arith.constant 0 : index
    %16 = vector.load %arg2[%c2_15, %c0_16, %c0_17] : memref<3x18x144xbf16, #tpu.memory_space<vmem>>, vector<1x18x144xbf16>
    %17 = vector.shape_cast %16 : vector<1x18x144xbf16> to vector<18x144xbf16>
    %cst_18 = arith.constant dense<0.000000e+00> : vector<16x144xf32>
    %18 = tpu.matmul %15, %17, %cst_18 {dimension_numbers = #tpu.dot_dimension_numbers<[1], [0], [0], [1], [0, 0, 1, 1], [], []>} : vector<16x18xbf16>, vector<18x144xbf16>, vector<16x144xf32> -> vector<16x144xf32>
    %19 = arith.addf %13, %18 : vector<16x144xf32>
    %cst_19 = arith.constant 0.000000e+00 : f32
    %20 = vector.broadcast %cst_19 : f32 to vector<16x144xf32>
    %21 = arith.cmpf ogt, %19, %20 : vector<16x144xf32>
    %cst_20 = arith.constant 1.000000e-01 : f32
    %22 = vector.broadcast %cst_20 : f32 to vector<16x144xf32>
    %23 = arith.mulf %22, %19 : vector<16x144xf32>
    %24 = arith.select %21, %19, %23 : vector<16x144xi1>, vector<16x144xf32>
    %cst_21 = arith.constant 0.000000e+00 : bf16
    %25 = vector.broadcast %cst_21 : bf16 to vector<18x144xbf16>
    %c0_22 = arith.constant 0 : index
    %c0_23 = arith.constant 0 : index
    %c0_24 = arith.constant 0 : index
    %26 = vector.load %arg4[%c0_22, %c0_23, %c0_24] : memref<1x18x144xbf16, #tpu.memory_space<vmem>>, vector<1x18x144xbf16>
    %27 = vector.shape_cast %26 : vector<1x18x144xbf16> to vector<18x144xbf16>
    %28 = vector.shape_cast %25 : vector<18x144xbf16> to vector<1x18x144xbf16>
    tpu.vector_store %arg4[%c0_22, %c0_23, %c0_24], %28 {strides = array<i32>} : memref<1x18x144xbf16, #tpu.memory_space<vmem>>, vector<1x18x144xbf16>,
    %29 = arith.truncf %24 : vector<16x144xf32> to vector<16x144xbf16>
    %c0_25 = arith.constant 0 : index
    %c1_26 = arith.constant 1 : index
    %c0_27 = arith.constant 0 : index
    %30 = vector.load %arg4[%c0_25, %c1_26, %c0_27] : memref<1x18x144xbf16, #tpu.memory_space<vmem>>, vector<1x16x144xbf16>
    %31 = vector.shape_cast %30 : vector<1x16x144xbf16> to vector<16x144xbf16>
    %32 = vector.shape_cast %29 : vector<16x144xbf16> to vector<1x16x144xbf16>
    tpu.vector_store %arg4[%c0_25, %c1_26, %c0_27], %32 {strides = array<i32>} : memref<1x18x144xbf16, #tpu.memory_space<vmem>>, vector<1x16x144xbf16>,
    return
  }
  func.func @transform_0(%arg0: i32) -> (i32, i32, i32) {
    %c0_i32 = arith.constant 0 : i32
    %c0_i32_0 = arith.constant 0 : i32
    %c0_i32_1 = arith.constant 0 : i32
    return %arg0, %c0_i32, %c0_i32_0 : i32, i32, i32
  }
  func.func @transform_1(%arg0: i32) -> (i32, i32, i32) {
    %c0_i32 = arith.constant 0 : i32
    %c0_i32_0 = arith.constant 0 : i32
    %c0_i32_1 = arith.constant 0 : i32
    %c0_i32_2 = arith.constant 0 : i32
    return %c0_i32, %c0_i32_0, %c0_i32_1 : i32, i32, i32
  }
  func.func @transform_2(%arg0: i32) -> (i32, i32) {
    %c0_i32 = arith.constant 0 : i32
    %c0_i32_0 = arith.constant 0 : i32
    %c0_i32_1 = arith.constant 0 : i32
    return %c0_i32, %c0_i32_0 : i32, i32
  }
  func.func @transform_3(%arg0: i32) -> (i32, i32, i32) {
    %c0_i32 = arith.constant 0 : i32
    %c0_i32_0 = arith.constant 0 : i32
    %c0_i32_1 = arith.constant 0 : i32
    return %arg0, %c0_i32, %c0_i32_0 : i32, i32, i32
  }
}

module attributes {stable_mosaic.version = 11 : i64} {
  func.func @_conv_s2_kernel(%arg0: i32, %arg1: memref<1x9x144xbf16, #tpu.memory_space<vmem>>, %arg2: memref<1x9x144xbf16, #tpu.memory_space<vmem>>, %arg3: memref<3x144x160xbf16, #tpu.memory_space<vmem>>, %arg4: memref<1x160xf32, #tpu.memory_space<vmem>>, %arg5: memref<1x10x160xbf16, #tpu.memory_space<vmem>>) attributes {dimension_semantics = [#tpu.dimension_semantics<parallel>], iteration_bounds = array<i64: 4>, scalar_prefetch = 0 : i64, scratch_operands = 0 : i64, tpu.core_type = #tpu.core_type<tc>, window_params = [{transform_indices = @transform_0, window_bounds = array<i64: 1, 9, 144>}, {transform_indices = @transform_1, window_bounds = array<i64: 1, 9, 144>}, {pipeline_mode = #tpu.pipeline_mode<synchronous>, transform_indices = @transform_2, window_bounds = array<i64: 3, 144, 160>}, {pipeline_mode = #tpu.pipeline_mode<synchronous>, transform_indices = @transform_3, window_bounds = array<i64: 1, 160>}, {transform_indices = @transform_4, window_bounds = array<i64: 1, 10, 160>}]} {
    %c0 = arith.constant 0 : index
    %c0_0 = arith.constant 0 : index
    %c0_1 = arith.constant 0 : index
    %0 = vector.load %arg1[%c0, %c0_0, %c0_1] : memref<1x9x144xbf16, #tpu.memory_space<vmem>>, vector<1x8x144xbf16>
    %1 = vector.shape_cast %0 : vector<1x8x144xbf16> to vector<8x144xbf16>
    %c0_2 = arith.constant 0 : index
    %c0_3 = arith.constant 0 : index
    %c0_4 = arith.constant 0 : index
    %2 = vector.load %arg2[%c0_2, %c0_3, %c0_4] : memref<1x9x144xbf16, #tpu.memory_space<vmem>>, vector<1x8x144xbf16>
    %3 = vector.shape_cast %2 : vector<1x8x144xbf16> to vector<8x144xbf16>
    %c0_5 = arith.constant 0 : index
    %c1 = arith.constant 1 : index
    %c0_6 = arith.constant 0 : index
    %4 = vector.load %arg1[%c0_5, %c1, %c0_6] : memref<1x9x144xbf16, #tpu.memory_space<vmem>>, vector<1x8x144xbf16>
    %5 = vector.shape_cast %4 : vector<1x8x144xbf16> to vector<8x144xbf16>
    %c0_7 = arith.constant 0 : index
    %c0_8 = arith.constant 0 : index
    %6 = vector.load %arg4[%c0_7, %c0_8] : memref<1x160xf32, #tpu.memory_space<vmem>>, vector<1x160xf32>
    %c0_9 = arith.constant 0 : index
    %c0_10 = arith.constant 0 : index
    %c0_11 = arith.constant 0 : index
    %7 = vector.load %arg3[%c0_9, %c0_10, %c0_11] : memref<3x144x160xbf16, #tpu.memory_space<vmem>>, vector<1x144x160xbf16>
    %8 = vector.shape_cast %7 : vector<1x144x160xbf16> to vector<144x160xbf16>
    %cst = arith.constant dense<0.000000e+00> : vector<8x160xf32>
    %9 = tpu.matmul %1, %8, %cst {dimension_numbers = #tpu.dot_dimension_numbers<[1], [0], [0], [1], [0, 0, 1, 1], [], []>} : vector<8x144xbf16>, vector<144x160xbf16>, vector<8x160xf32> -> vector<8x160xf32>
    %10 = vector.broadcast %6 : vector<1x160xf32> to vector<8x160xf32>
    %11 = arith.addf %10, %9 : vector<8x160xf32>
    %c1_12 = arith.constant 1 : index
    %c0_13 = arith.constant 0 : index
    %c0_14 = arith.constant 0 : index
    %12 = vector.load %arg3[%c1_12, %c0_13, %c0_14] : memref<3x144x160xbf16, #tpu.memory_space<vmem>>, vector<1x144x160xbf16>
    %13 = vector.shape_cast %12 : vector<1x144x160xbf16> to vector<144x160xbf16>
    %cst_15 = arith.constant dense<0.000000e+00> : vector<8x160xf32>
    %14 = tpu.matmul %3, %13, %cst_15 {dimension_numbers = #tpu.dot_dimension_numbers<[1], [0], [0], [1], [0, 0, 1, 1], [], []>} : vector<8x144xbf16>, vector<144x160xbf16>, vector<8x160xf32> -> vector<8x160xf32>
    %15 = arith.addf %11, %14 : vector<8x160xf32>
    %c2 = arith.constant 2 : index
    %c0_16 = arith.constant 0 : index
    %c0_17 = arith.constant 0 : index
    %16 = vector.load %arg3[%c2, %c0_16, %c0_17] : memref<3x144x160xbf16, #tpu.memory_space<vmem>>, vector<1x144x160xbf16>
    %17 = vector.shape_cast %16 : vector<1x144x160xbf16> to vector<144x160xbf16>
    %cst_18 = arith.constant dense<0.000000e+00> : vector<8x160xf32>
    %18 = tpu.matmul %5, %17, %cst_18 {dimension_numbers = #tpu.dot_dimension_numbers<[1], [0], [0], [1], [0, 0, 1, 1], [], []>} : vector<8x144xbf16>, vector<144x160xbf16>, vector<8x160xf32> -> vector<8x160xf32>
    %19 = arith.addf %15, %18 : vector<8x160xf32>
    %cst_19 = arith.constant 0.000000e+00 : f32
    %20 = vector.broadcast %cst_19 : f32 to vector<8x160xf32>
    %21 = arith.cmpf ogt, %19, %20 : vector<8x160xf32>
    %cst_20 = arith.constant 1.000000e-01 : f32
    %22 = vector.broadcast %cst_20 : f32 to vector<8x160xf32>
    %23 = arith.mulf %22, %19 : vector<8x160xf32>
    %24 = arith.select %21, %19, %23 : vector<8x160xi1>, vector<8x160xf32>
    %cst_21 = arith.constant 0.000000e+00 : bf16
    %25 = vector.broadcast %cst_21 : bf16 to vector<10x160xbf16>
    %c0_22 = arith.constant 0 : index
    %c0_23 = arith.constant 0 : index
    %c0_24 = arith.constant 0 : index
    %26 = vector.load %arg5[%c0_22, %c0_23, %c0_24] : memref<1x10x160xbf16, #tpu.memory_space<vmem>>, vector<1x10x160xbf16>
    %27 = vector.shape_cast %26 : vector<1x10x160xbf16> to vector<10x160xbf16>
    %28 = vector.shape_cast %25 : vector<10x160xbf16> to vector<1x10x160xbf16>
    tpu.vector_store %arg5[%c0_22, %c0_23, %c0_24], %28 {strides = array<i32>} : memref<1x10x160xbf16, #tpu.memory_space<vmem>>, vector<1x10x160xbf16>,
    %29 = arith.truncf %24 : vector<8x160xf32> to vector<8x160xbf16>
    %c0_25 = arith.constant 0 : index
    %c1_26 = arith.constant 1 : index
    %c0_27 = arith.constant 0 : index
    %30 = vector.load %arg5[%c0_25, %c1_26, %c0_27] : memref<1x10x160xbf16, #tpu.memory_space<vmem>>, vector<1x8x160xbf16>
    %31 = vector.shape_cast %30 : vector<1x8x160xbf16> to vector<8x160xbf16>
    %32 = vector.shape_cast %29 : vector<8x160xbf16> to vector<1x8x160xbf16>
    tpu.vector_store %arg5[%c0_25, %c1_26, %c0_27], %32 {strides = array<i32>} : memref<1x10x160xbf16, #tpu.memory_space<vmem>>, vector<1x8x160xbf16>,
    return
  }
  func.func @transform_0(%arg0: i32) -> (i32, i32, i32) {
    %c0_i32 = arith.constant 0 : i32
    %c0_i32_0 = arith.constant 0 : i32
    %c0_i32_1 = arith.constant 0 : i32
    return %arg0, %c0_i32, %c0_i32_0 : i32, i32, i32
  }
  func.func @transform_1(%arg0: i32) -> (i32, i32, i32) {
    %c0_i32 = arith.constant 0 : i32
    %c0_i32_0 = arith.constant 0 : i32
    %c0_i32_1 = arith.constant 0 : i32
    return %arg0, %c0_i32, %c0_i32_0 : i32, i32, i32
  }
  func.func @transform_2(%arg0: i32) -> (i32, i32, i32) {
    %c0_i32 = arith.constant 0 : i32
    %c0_i32_0 = arith.constant 0 : i32
    %c0_i32_1 = arith.constant 0 : i32
    %c0_i32_2 = arith.constant 0 : i32
    return %c0_i32, %c0_i32_0, %c0_i32_1 : i32, i32, i32
  }
  func.func @transform_3(%arg0: i32) -> (i32, i32) {
    %c0_i32 = arith.constant 0 : i32
    %c0_i32_0 = arith.constant 0 : i32
    %c0_i32_1 = arith.constant 0 : i32
    return %c0_i32, %c0_i32_0 : i32, i32
  }
  func.func @transform_4(%arg0: i32) -> (i32, i32, i32) {
    %c0_i32 = arith.constant 0 : i32
    %c0_i32_0 = arith.constant 0 : i32
    %c0_i32_1 = arith.constant 0 : i32
    return %arg0, %c0_i32, %c0_i32_0 : i32, i32, i32
  }
}

module attributes {stable_mosaic.version = 11 : i64} {
  func.func @_res_block_kernel(%arg0: i32, %arg1: memref<1x10x160xbf16, #tpu.memory_space<vmem>>, %arg2: memref<160x80xbf16, #tpu.memory_space<vmem>>, %arg3: memref<1x80xf32, #tpu.memory_space<vmem>>, %arg4: memref<3x80x160xbf16, #tpu.memory_space<vmem>>, %arg5: memref<1x160xf32, #tpu.memory_space<vmem>>, %arg6: memref<1x10x160xbf16, #tpu.memory_space<vmem>>, %arg7: memref<10x80xbf16, #tpu.memory_space<vmem>>) attributes {dimension_semantics = [#tpu.dimension_semantics<parallel>], iteration_bounds = array<i64: 4>, scalar_prefetch = 0 : i64, scratch_operands = 1 : i64, tpu.core_type = #tpu.core_type<tc>, window_params = [{transform_indices = @transform_0, window_bounds = array<i64: 1, 10, 160>}, {pipeline_mode = #tpu.pipeline_mode<synchronous>, transform_indices = @transform_1, window_bounds = array<i64: 160, 80>}, {pipeline_mode = #tpu.pipeline_mode<synchronous>, transform_indices = @transform_2, window_bounds = array<i64: 1, 80>}, {pipeline_mode = #tpu.pipeline_mode<synchronous>, transform_indices = @transform_3, window_bounds = array<i64: 3, 80, 160>}, {pipeline_mode = #tpu.pipeline_mode<synchronous>, transform_indices = @transform_4, window_bounds = array<i64: 1, 160>}, {transform_indices = @transform_5, window_bounds = array<i64: 1, 10, 160>}]} {
    %c0 = arith.constant 0 : index
    %c1 = arith.constant 1 : index
    %c0_0 = arith.constant 0 : index
    %0 = vector.load %arg1[%c0, %c1, %c0_0] : memref<1x10x160xbf16, #tpu.memory_space<vmem>>, vector<1x8x160xbf16>
    %1 = vector.shape_cast %0 : vector<1x8x160xbf16> to vector<8x160xbf16>
    %c0_1 = arith.constant 0 : index
    %c0_2 = arith.constant 0 : index
    %2 = vector.load %arg2[%c0_1, %c0_2] : memref<160x80xbf16, #tpu.memory_space<vmem>>, vector<160x80xbf16>
    %cst = arith.constant dense<0.000000e+00> : vector<8x80xf32>
    %3 = tpu.matmul %1, %2, %cst {dimension_numbers = #tpu.dot_dimension_numbers<[1], [0], [0], [1], [0, 0, 1, 1], [], []>} : vector<8x160xbf16>, vector<160x80xbf16>, vector<8x80xf32> -> vector<8x80xf32>
    %c0_3 = arith.constant 0 : index
    %c0_4 = arith.constant 0 : index
    %4 = vector.load %arg3[%c0_3, %c0_4] : memref<1x80xf32, #tpu.memory_space<vmem>>, vector<1x80xf32>
    %5 = vector.broadcast %4 : vector<1x80xf32> to vector<8x80xf32>
    %6 = arith.addf %3, %5 : vector<8x80xf32>
    %cst_5 = arith.constant 0.000000e+00 : f32
    %7 = vector.broadcast %cst_5 : f32 to vector<8x80xf32>
    %8 = arith.cmpf ogt, %6, %7 : vector<8x80xf32>
    %cst_6 = arith.constant 1.000000e-01 : f32
    %9 = vector.broadcast %cst_6 : f32 to vector<8x80xf32>
    %10 = arith.mulf %9, %6 : vector<8x80xf32>
    %11 = arith.select %8, %6, %10 : vector<8x80xi1>, vector<8x80xf32>
    %cst_7 = arith.constant 0.000000e+00 : bf16
    %12 = vector.broadcast %cst_7 : bf16 to vector<10x80xbf16>
    %c0_8 = arith.constant 0 : index
    %c0_9 = arith.constant 0 : index
    %13 = vector.load %arg7[%c0_8, %c0_9] : memref<10x80xbf16, #tpu.memory_space<vmem>>, vector<10x80xbf16>
    tpu.vector_store %arg7[%c0_8, %c0_9], %12 {strides = array<i32>} : memref<10x80xbf16, #tpu.memory_space<vmem>>, vector<10x80xbf16>,
    %14 = arith.truncf %11 : vector<8x80xf32> to vector<8x80xbf16>
    %c1_10 = arith.constant 1 : index
    %c0_11 = arith.constant 0 : index
    %15 = vector.load %arg7[%c1_10, %c0_11] : memref<10x80xbf16, #tpu.memory_space<vmem>>, vector<8x80xbf16>
    tpu.vector_store %arg7[%c1_10, %c0_11], %14 {strides = array<i32>} : memref<10x80xbf16, #tpu.memory_space<vmem>>, vector<8x80xbf16>,
    %c0_12 = arith.constant 0 : index
    %c0_13 = arith.constant 0 : index
    %16 = vector.load %arg5[%c0_12, %c0_13] : memref<1x160xf32, #tpu.memory_space<vmem>>, vector<1x160xf32>
    %c0_14 = arith.constant 0 : index
    %c0_15 = arith.constant 0 : index
    %17 = vector.load %arg7[%c0_14, %c0_15] : memref<10x80xbf16, #tpu.memory_space<vmem>>, vector<8x80xbf16>
    %c0_16 = arith.constant 0 : index
    %c0_17 = arith.constant 0 : index
    %c0_18 = arith.constant 0 : index
    %18 = vector.load %arg4[%c0_16, %c0_17, %c0_18] : memref<3x80x160xbf16, #tpu.memory_space<vmem>>, vector<1x80x160xbf16>
    %19 = vector.shape_cast %18 : vector<1x80x160xbf16> to vector<80x160xbf16>
    %cst_19 = arith.constant dense<0.000000e+00> : vector<8x160xf32>
    %20 = tpu.matmul %17, %19, %cst_19 {dimension_numbers = #tpu.dot_dimension_numbers<[1], [0], [0], [1], [0, 0, 1, 1], [], []>} : vector<8x80xbf16>, vector<80x160xbf16>, vector<8x160xf32> -> vector<8x160xf32>
    %21 = vector.broadcast %16 : vector<1x160xf32> to vector<8x160xf32>
    %22 = arith.addf %21, %20 : vector<8x160xf32>
    %c1_20 = arith.constant 1 : index
    %c0_21 = arith.constant 0 : index
    %23 = vector.load %arg7[%c1_20, %c0_21] : memref<10x80xbf16, #tpu.memory_space<vmem>>, vector<8x80xbf16>
    %c1_22 = arith.constant 1 : index
    %c0_23 = arith.constant 0 : index
    %c0_24 = arith.constant 0 : index
    %24 = vector.load %arg4[%c1_22, %c0_23, %c0_24] : memref<3x80x160xbf16, #tpu.memory_space<vmem>>, vector<1x80x160xbf16>
    %25 = vector.shape_cast %24 : vector<1x80x160xbf16> to vector<80x160xbf16>
    %cst_25 = arith.constant dense<0.000000e+00> : vector<8x160xf32>
    %26 = tpu.matmul %23, %25, %cst_25 {dimension_numbers = #tpu.dot_dimension_numbers<[1], [0], [0], [1], [0, 0, 1, 1], [], []>} : vector<8x80xbf16>, vector<80x160xbf16>, vector<8x160xf32> -> vector<8x160xf32>
    %27 = arith.addf %22, %26 : vector<8x160xf32>
    %c2 = arith.constant 2 : index
    %c0_26 = arith.constant 0 : index
    %28 = vector.load %arg7[%c2, %c0_26] : memref<10x80xbf16, #tpu.memory_space<vmem>>, vector<8x80xbf16>
    %c2_27 = arith.constant 2 : index
    %c0_28 = arith.constant 0 : index
    %c0_29 = arith.constant 0 : index
    %29 = vector.load %arg4[%c2_27, %c0_28, %c0_29] : memref<3x80x160xbf16, #tpu.memory_space<vmem>>, vector<1x80x160xbf16>
    %30 = vector.shape_cast %29 : vector<1x80x160xbf16> to vector<80x160xbf16>
    %cst_30 = arith.constant dense<0.000000e+00> : vector<8x160xf32>
    %31 = tpu.matmul %28, %30, %cst_30 {dimension_numbers = #tpu.dot_dimension_numbers<[1], [0], [0], [1], [0, 0, 1, 1], [], []>} : vector<8x80xbf16>, vector<80x160xbf16>, vector<8x160xf32> -> vector<8x160xf32>
    %32 = arith.addf %27, %31 : vector<8x160xf32>
    %cst_31 = arith.constant 0.000000e+00 : f32
    %33 = vector.broadcast %cst_31 : f32 to vector<8x160xf32>
    %34 = arith.cmpf ogt, %32, %33 : vector<8x160xf32>
    %cst_32 = arith.constant 1.000000e-01 : f32
    %35 = vector.broadcast %cst_32 : f32 to vector<8x160xf32>
    %36 = arith.mulf %35, %32 : vector<8x160xf32>
    %37 = arith.select %34, %32, %36 : vector<8x160xi1>, vector<8x160xf32>
    %38 = arith.extf %1 : vector<8x160xbf16> to vector<8x160xf32>
    %39 = arith.addf %37, %38 : vector<8x160xf32>
    %cst_33 = arith.constant 0.000000e+00 : bf16
    %40 = vector.broadcast %cst_33 : bf16 to vector<10x160xbf16>
    %c0_34 = arith.constant 0 : index
    %c0_35 = arith.constant 0 : index
    %c0_36 = arith.constant 0 : index
    %41 = vector.load %arg6[%c0_34, %c0_35, %c0_36] : memref<1x10x160xbf16, #tpu.memory_space<vmem>>, vector<1x10x160xbf16>
    %42 = vector.shape_cast %41 : vector<1x10x160xbf16> to vector<10x160xbf16>
    %43 = vector.shape_cast %40 : vector<10x160xbf16> to vector<1x10x160xbf16>
    tpu.vector_store %arg6[%c0_34, %c0_35, %c0_36], %43 {strides = array<i32>} : memref<1x10x160xbf16, #tpu.memory_space<vmem>>, vector<1x10x160xbf16>,
    %44 = arith.truncf %39 : vector<8x160xf32> to vector<8x160xbf16>
    %c0_37 = arith.constant 0 : index
    %c1_38 = arith.constant 1 : index
    %c0_39 = arith.constant 0 : index
    %45 = vector.load %arg6[%c0_37, %c1_38, %c0_39] : memref<1x10x160xbf16, #tpu.memory_space<vmem>>, vector<1x8x160xbf16>
    %46 = vector.shape_cast %45 : vector<1x8x160xbf16> to vector<8x160xbf16>
    %47 = vector.shape_cast %44 : vector<8x160xbf16> to vector<1x8x160xbf16>
    tpu.vector_store %arg6[%c0_37, %c1_38, %c0_39], %47 {strides = array<i32>} : memref<1x10x160xbf16, #tpu.memory_space<vmem>>, vector<1x8x160xbf16>,
    return
  }
  func.func @transform_0(%arg0: i32) -> (i32, i32, i32) {
    %c0_i32 = arith.constant 0 : i32
    %c0_i32_0 = arith.constant 0 : i32
    %c0_i32_1 = arith.constant 0 : i32
    return %arg0, %c0_i32, %c0_i32_0 : i32, i32, i32
  }
  func.func @transform_1(%arg0: i32) -> (i32, i32) {
    %c0_i32 = arith.constant 0 : i32
    %c0_i32_0 = arith.constant 0 : i32
    %c0_i32_1 = arith.constant 0 : i32
    return %c0_i32, %c0_i32_0 : i32, i32
  }
  func.func @transform_2(%arg0: i32) -> (i32, i32) {
    %c0_i32 = arith.constant 0 : i32
    %c0_i32_0 = arith.constant 0 : i32
    %c0_i32_1 = arith.constant 0 : i32
    return %c0_i32, %c0_i32_0 : i32, i32
  }
  func.func @transform_3(%arg0: i32) -> (i32, i32, i32) {
    %c0_i32 = arith.constant 0 : i32
    %c0_i32_0 = arith.constant 0 : i32
    %c0_i32_1 = arith.constant 0 : i32
    %c0_i32_2 = arith.constant 0 : i32
    return %c0_i32, %c0_i32_0, %c0_i32_1 : i32, i32, i32
  }
  func.func @transform_4(%arg0: i32) -> (i32, i32) {
    %c0_i32 = arith.constant 0 : i32
    %c0_i32_0 = arith.constant 0 : i32
    %c0_i32_1 = arith.constant 0 : i32
    return %c0_i32, %c0_i32_0 : i32, i32
  }
  func.func @transform_5(%arg0: i32) -> (i32, i32, i32) {
    %c0_i32 = arith.constant 0 : i32
    %c0_i32_0 = arith.constant 0 : i32
    %c0_i32_1 = arith.constant 0 : i32
    return %arg0, %c0_i32, %c0_i32_0 : i32, i32, i32
  }
}

module attributes {stable_mosaic.version = 11 : i64} {
  func.func @_conv_s2_kernel(%arg0: i32, %arg1: memref<1x5x160xbf16, #tpu.memory_space<vmem>>, %arg2: memref<1x5x160xbf16, #tpu.memory_space<vmem>>, %arg3: memref<3x160x192xbf16, #tpu.memory_space<vmem>>, %arg4: memref<1x192xf32, #tpu.memory_space<vmem>>, %arg5: memref<1x6x192xbf16, #tpu.memory_space<vmem>>) attributes {dimension_semantics = [#tpu.dimension_semantics<parallel>], iteration_bounds = array<i64: 4>, scalar_prefetch = 0 : i64, scratch_operands = 0 : i64, tpu.core_type = #tpu.core_type<tc>, window_params = [{transform_indices = @transform_0, window_bounds = array<i64: 1, 5, 160>}, {transform_indices = @transform_1, window_bounds = array<i64: 1, 5, 160>}, {pipeline_mode = #tpu.pipeline_mode<synchronous>, transform_indices = @transform_2, window_bounds = array<i64: 3, 160, 192>}, {pipeline_mode = #tpu.pipeline_mode<synchronous>, transform_indices = @transform_3, window_bounds = array<i64: 1, 192>}, {transform_indices = @transform_4, window_bounds = array<i64: 1, 6, 192>}]} {
    %c0 = arith.constant 0 : index
    %c0_0 = arith.constant 0 : index
    %c0_1 = arith.constant 0 : index
    %0 = vector.load %arg1[%c0, %c0_0, %c0_1] : memref<1x5x160xbf16, #tpu.memory_space<vmem>>, vector<1x4x160xbf16>
    %1 = vector.shape_cast %0 : vector<1x4x160xbf16> to vector<4x160xbf16>
    %c0_2 = arith.constant 0 : index
    %c0_3 = arith.constant 0 : index
    %c0_4 = arith.constant 0 : index
    %2 = vector.load %arg2[%c0_2, %c0_3, %c0_4] : memref<1x5x160xbf16, #tpu.memory_space<vmem>>, vector<1x4x160xbf16>
    %3 = vector.shape_cast %2 : vector<1x4x160xbf16> to vector<4x160xbf16>
    %c0_5 = arith.constant 0 : index
    %c1 = arith.constant 1 : index
    %c0_6 = arith.constant 0 : index
    %4 = vector.load %arg1[%c0_5, %c1, %c0_6] : memref<1x5x160xbf16, #tpu.memory_space<vmem>>, vector<1x4x160xbf16>
    %5 = vector.shape_cast %4 : vector<1x4x160xbf16> to vector<4x160xbf16>
    %c0_7 = arith.constant 0 : index
    %c0_8 = arith.constant 0 : index
    %6 = vector.load %arg4[%c0_7, %c0_8] : memref<1x192xf32, #tpu.memory_space<vmem>>, vector<1x192xf32>
    %c0_9 = arith.constant 0 : index
    %c0_10 = arith.constant 0 : index
    %c0_11 = arith.constant 0 : index
    %7 = vector.load %arg3[%c0_9, %c0_10, %c0_11] : memref<3x160x192xbf16, #tpu.memory_space<vmem>>, vector<1x160x192xbf16>
    %8 = vector.shape_cast %7 : vector<1x160x192xbf16> to vector<160x192xbf16>
    %cst = arith.constant dense<0.000000e+00> : vector<4x192xf32>
    %9 = tpu.matmul %1, %8, %cst {dimension_numbers = #tpu.dot_dimension_numbers<[1], [0], [0], [1], [0, 0, 1, 1], [], []>} : vector<4x160xbf16>, vector<160x192xbf16>, vector<4x192xf32> -> vector<4x192xf32>
    %10 = vector.broadcast %6 : vector<1x192xf32> to vector<4x192xf32>
    %11 = arith.addf %10, %9 : vector<4x192xf32>
    %c1_12 = arith.constant 1 : index
    %c0_13 = arith.constant 0 : index
    %c0_14 = arith.constant 0 : index
    %12 = vector.load %arg3[%c1_12, %c0_13, %c0_14] : memref<3x160x192xbf16, #tpu.memory_space<vmem>>, vector<1x160x192xbf16>
    %13 = vector.shape_cast %12 : vector<1x160x192xbf16> to vector<160x192xbf16>
    %cst_15 = arith.constant dense<0.000000e+00> : vector<4x192xf32>
    %14 = tpu.matmul %3, %13, %cst_15 {dimension_numbers = #tpu.dot_dimension_numbers<[1], [0], [0], [1], [0, 0, 1, 1], [], []>} : vector<4x160xbf16>, vector<160x192xbf16>, vector<4x192xf32> -> vector<4x192xf32>
    %15 = arith.addf %11, %14 : vector<4x192xf32>
    %c2 = arith.constant 2 : index
    %c0_16 = arith.constant 0 : index
    %c0_17 = arith.constant 0 : index
    %16 = vector.load %arg3[%c2, %c0_16, %c0_17] : memref<3x160x192xbf16, #tpu.memory_space<vmem>>, vector<1x160x192xbf16>
    %17 = vector.shape_cast %16 : vector<1x160x192xbf16> to vector<160x192xbf16>
    %cst_18 = arith.constant dense<0.000000e+00> : vector<4x192xf32>
    %18 = tpu.matmul %5, %17, %cst_18 {dimension_numbers = #tpu.dot_dimension_numbers<[1], [0], [0], [1], [0, 0, 1, 1], [], []>} : vector<4x160xbf16>, vector<160x192xbf16>, vector<4x192xf32> -> vector<4x192xf32>
    %19 = arith.addf %15, %18 : vector<4x192xf32>
    %cst_19 = arith.constant 0.000000e+00 : f32
    %20 = vector.broadcast %cst_19 : f32 to vector<4x192xf32>
    %21 = arith.cmpf ogt, %19, %20 : vector<4x192xf32>
    %cst_20 = arith.constant 1.000000e-01 : f32
    %22 = vector.broadcast %cst_20 : f32 to vector<4x192xf32>
    %23 = arith.mulf %22, %19 : vector<4x192xf32>
    %24 = arith.select %21, %19, %23 : vector<4x192xi1>, vector<4x192xf32>
    %cst_21 = arith.constant 0.000000e+00 : bf16
    %25 = vector.broadcast %cst_21 : bf16 to vector<6x192xbf16>
    %c0_22 = arith.constant 0 : index
    %c0_23 = arith.constant 0 : index
    %c0_24 = arith.constant 0 : index
    %26 = vector.load %arg5[%c0_22, %c0_23, %c0_24] : memref<1x6x192xbf16, #tpu.memory_space<vmem>>, vector<1x6x192xbf16>
    %27 = vector.shape_cast %26 : vector<1x6x192xbf16> to vector<6x192xbf16>
    %28 = vector.shape_cast %25 : vector<6x192xbf16> to vector<1x6x192xbf16>
    tpu.vector_store %arg5[%c0_22, %c0_23, %c0_24], %28 {strides = array<i32>} : memref<1x6x192xbf16, #tpu.memory_space<vmem>>, vector<1x6x192xbf16>,
    %29 = arith.truncf %24 : vector<4x192xf32> to vector<4x192xbf16>
    %c0_25 = arith.constant 0 : index
    %c1_26 = arith.constant 1 : index
    %c0_27 = arith.constant 0 : index
    %30 = vector.load %arg5[%c0_25, %c1_26, %c0_27] : memref<1x6x192xbf16, #tpu.memory_space<vmem>>, vector<1x4x192xbf16>
    %31 = vector.shape_cast %30 : vector<1x4x192xbf16> to vector<4x192xbf16>
    %32 = vector.shape_cast %29 : vector<4x192xbf16> to vector<1x4x192xbf16>
    tpu.vector_store %arg5[%c0_25, %c1_26, %c0_27], %32 {strides = array<i32>} : memref<1x6x192xbf16, #tpu.memory_space<vmem>>, vector<1x4x192xbf16>,
    return
  }
  func.func @transform_0(%arg0: i32) -> (i32, i32, i32) {
    %c0_i32 = arith.constant 0 : i32
    %c0_i32_0 = arith.constant 0 : i32
    %c0_i32_1 = arith.constant 0 : i32
    return %arg0, %c0_i32, %c0_i32_0 : i32, i32, i32
  }
  func.func @transform_1(%arg0: i32) -> (i32, i32, i32) {
    %c0_i32 = arith.constant 0 : i32
    %c0_i32_0 = arith.constant 0 : i32
    %c0_i32_1 = arith.constant 0 : i32
    return %arg0, %c0_i32, %c0_i32_0 : i32, i32, i32
  }
  func.func @transform_2(%arg0: i32) -> (i32, i32, i32) {
    %c0_i32 = arith.constant 0 : i32
    %c0_i32_0 = arith.constant 0 : i32
    %c0_i32_1 = arith.constant 0 : i32
    %c0_i32_2 = arith.constant 0 : i32
    return %c0_i32, %c0_i32_0, %c0_i32_1 : i32, i32, i32
  }
  func.func @transform_3(%arg0: i32) -> (i32, i32) {
    %c0_i32 = arith.constant 0 : i32
    %c0_i32_0 = arith.constant 0 : i32
    %c0_i32_1 = arith.constant 0 : i32
    return %c0_i32, %c0_i32_0 : i32, i32
  }
  func.func @transform_4(%arg0: i32) -> (i32, i32, i32) {
    %c0_i32 = arith.constant 0 : i32
    %c0_i32_0 = arith.constant 0 : i32
    %c0_i32_1 = arith.constant 0 : i32
    return %arg0, %c0_i32, %c0_i32_0 : i32, i32, i32
  }
}

module attributes {stable_mosaic.version = 11 : i64} {
  func.func @_res_block_kernel(%arg0: i32, %arg1: memref<1x6x192xbf16, #tpu.memory_space<vmem>>, %arg2: memref<192x96xbf16, #tpu.memory_space<vmem>>, %arg3: memref<1x96xf32, #tpu.memory_space<vmem>>, %arg4: memref<3x96x192xbf16, #tpu.memory_space<vmem>>, %arg5: memref<1x192xf32, #tpu.memory_space<vmem>>, %arg6: memref<1x6x192xbf16, #tpu.memory_space<vmem>>, %arg7: memref<6x96xbf16, #tpu.memory_space<vmem>>) attributes {dimension_semantics = [#tpu.dimension_semantics<parallel>], iteration_bounds = array<i64: 4>, scalar_prefetch = 0 : i64, scratch_operands = 1 : i64, tpu.core_type = #tpu.core_type<tc>, window_params = [{transform_indices = @transform_0, window_bounds = array<i64: 1, 6, 192>}, {pipeline_mode = #tpu.pipeline_mode<synchronous>, transform_indices = @transform_1, window_bounds = array<i64: 192, 96>}, {pipeline_mode = #tpu.pipeline_mode<synchronous>, transform_indices = @transform_2, window_bounds = array<i64: 1, 96>}, {pipeline_mode = #tpu.pipeline_mode<synchronous>, transform_indices = @transform_3, window_bounds = array<i64: 3, 96, 192>}, {pipeline_mode = #tpu.pipeline_mode<synchronous>, transform_indices = @transform_4, window_bounds = array<i64: 1, 192>}, {transform_indices = @transform_5, window_bounds = array<i64: 1, 6, 192>}]} {
    %c0 = arith.constant 0 : index
    %c1 = arith.constant 1 : index
    %c0_0 = arith.constant 0 : index
    %0 = vector.load %arg1[%c0, %c1, %c0_0] : memref<1x6x192xbf16, #tpu.memory_space<vmem>>, vector<1x4x192xbf16>
    %1 = vector.shape_cast %0 : vector<1x4x192xbf16> to vector<4x192xbf16>
    %c0_1 = arith.constant 0 : index
    %c0_2 = arith.constant 0 : index
    %2 = vector.load %arg2[%c0_1, %c0_2] : memref<192x96xbf16, #tpu.memory_space<vmem>>, vector<192x96xbf16>
    %cst = arith.constant dense<0.000000e+00> : vector<4x96xf32>
    %3 = tpu.matmul %1, %2, %cst {dimension_numbers = #tpu.dot_dimension_numbers<[1], [0], [0], [1], [0, 0, 1, 1], [], []>} : vector<4x192xbf16>, vector<192x96xbf16>, vector<4x96xf32> -> vector<4x96xf32>
    %c0_3 = arith.constant 0 : index
    %c0_4 = arith.constant 0 : index
    %4 = vector.load %arg3[%c0_3, %c0_4] : memref<1x96xf32, #tpu.memory_space<vmem>>, vector<1x96xf32>
    %5 = vector.broadcast %4 : vector<1x96xf32> to vector<4x96xf32>
    %6 = arith.addf %3, %5 : vector<4x96xf32>
    %cst_5 = arith.constant 0.000000e+00 : f32
    %7 = vector.broadcast %cst_5 : f32 to vector<4x96xf32>
    %8 = arith.cmpf ogt, %6, %7 : vector<4x96xf32>
    %cst_6 = arith.constant 1.000000e-01 : f32
    %9 = vector.broadcast %cst_6 : f32 to vector<4x96xf32>
    %10 = arith.mulf %9, %6 : vector<4x96xf32>
    %11 = arith.select %8, %6, %10 : vector<4x96xi1>, vector<4x96xf32>
    %cst_7 = arith.constant 0.000000e+00 : bf16
    %12 = vector.broadcast %cst_7 : bf16 to vector<6x96xbf16>
    %c0_8 = arith.constant 0 : index
    %c0_9 = arith.constant 0 : index
    %13 = vector.load %arg7[%c0_8, %c0_9] : memref<6x96xbf16, #tpu.memory_space<vmem>>, vector<6x96xbf16>
    tpu.vector_store %arg7[%c0_8, %c0_9], %12 {strides = array<i32>} : memref<6x96xbf16, #tpu.memory_space<vmem>>, vector<6x96xbf16>,
    %14 = arith.truncf %11 : vector<4x96xf32> to vector<4x96xbf16>
    %c1_10 = arith.constant 1 : index
    %c0_11 = arith.constant 0 : index
    %15 = vector.load %arg7[%c1_10, %c0_11] : memref<6x96xbf16, #tpu.memory_space<vmem>>, vector<4x96xbf16>
    tpu.vector_store %arg7[%c1_10, %c0_11], %14 {strides = array<i32>} : memref<6x96xbf16, #tpu.memory_space<vmem>>, vector<4x96xbf16>,
    %c0_12 = arith.constant 0 : index
    %c0_13 = arith.constant 0 : index
    %16 = vector.load %arg5[%c0_12, %c0_13] : memref<1x192xf32, #tpu.memory_space<vmem>>, vector<1x192xf32>
    %c0_14 = arith.constant 0 : index
    %c0_15 = arith.constant 0 : index
    %17 = vector.load %arg7[%c0_14, %c0_15] : memref<6x96xbf16, #tpu.memory_space<vmem>>, vector<4x96xbf16>
    %c0_16 = arith.constant 0 : index
    %c0_17 = arith.constant 0 : index
    %c0_18 = arith.constant 0 : index
    %18 = vector.load %arg4[%c0_16, %c0_17, %c0_18] : memref<3x96x192xbf16, #tpu.memory_space<vmem>>, vector<1x96x192xbf16>
    %19 = vector.shape_cast %18 : vector<1x96x192xbf16> to vector<96x192xbf16>
    %cst_19 = arith.constant dense<0.000000e+00> : vector<4x192xf32>
    %20 = tpu.matmul %17, %19, %cst_19 {dimension_numbers = #tpu.dot_dimension_numbers<[1], [0], [0], [1], [0, 0, 1, 1], [], []>} : vector<4x96xbf16>, vector<96x192xbf16>, vector<4x192xf32> -> vector<4x192xf32>
    %21 = vector.broadcast %16 : vector<1x192xf32> to vector<4x192xf32>
    %22 = arith.addf %21, %20 : vector<4x192xf32>
    %c1_20 = arith.constant 1 : index
    %c0_21 = arith.constant 0 : index
    %23 = vector.load %arg7[%c1_20, %c0_21] : memref<6x96xbf16, #tpu.memory_space<vmem>>, vector<4x96xbf16>
    %c1_22 = arith.constant 1 : index
    %c0_23 = arith.constant 0 : index
    %c0_24 = arith.constant 0 : index
    %24 = vector.load %arg4[%c1_22, %c0_23, %c0_24] : memref<3x96x192xbf16, #tpu.memory_space<vmem>>, vector<1x96x192xbf16>
    %25 = vector.shape_cast %24 : vector<1x96x192xbf16> to vector<96x192xbf16>
    %cst_25 = arith.constant dense<0.000000e+00> : vector<4x192xf32>
    %26 = tpu.matmul %23, %25, %cst_25 {dimension_numbers = #tpu.dot_dimension_numbers<[1], [0], [0], [1], [0, 0, 1, 1], [], []>} : vector<4x96xbf16>, vector<96x192xbf16>, vector<4x192xf32> -> vector<4x192xf32>
    %27 = arith.addf %22, %26 : vector<4x192xf32>
    %c2 = arith.constant 2 : index
    %c0_26 = arith.constant 0 : index
    %28 = vector.load %arg7[%c2, %c0_26] : memref<6x96xbf16, #tpu.memory_space<vmem>>, vector<4x96xbf16>
    %c2_27 = arith.constant 2 : index
    %c0_28 = arith.constant 0 : index
    %c0_29 = arith.constant 0 : index
    %29 = vector.load %arg4[%c2_27, %c0_28, %c0_29] : memref<3x96x192xbf16, #tpu.memory_space<vmem>>, vector<1x96x192xbf16>
    %30 = vector.shape_cast %29 : vector<1x96x192xbf16> to vector<96x192xbf16>
    %cst_30 = arith.constant dense<0.000000e+00> : vector<4x192xf32>
    %31 = tpu.matmul %28, %30, %cst_30 {dimension_numbers = #tpu.dot_dimension_numbers<[1], [0], [0], [1], [0, 0, 1, 1], [], []>} : vector<4x96xbf16>, vector<96x192xbf16>, vector<4x192xf32> -> vector<4x192xf32>
    %32 = arith.addf %27, %31 : vector<4x192xf32>
    %cst_31 = arith.constant 0.000000e+00 : f32
    %33 = vector.broadcast %cst_31 : f32 to vector<4x192xf32>
    %34 = arith.cmpf ogt, %32, %33 : vector<4x192xf32>
    %cst_32 = arith.constant 1.000000e-01 : f32
    %35 = vector.broadcast %cst_32 : f32 to vector<4x192xf32>
    %36 = arith.mulf %35, %32 : vector<4x192xf32>
    %37 = arith.select %34, %32, %36 : vector<4x192xi1>, vector<4x192xf32>
    %38 = arith.extf %1 : vector<4x192xbf16> to vector<4x192xf32>
    %39 = arith.addf %37, %38 : vector<4x192xf32>
    %cst_33 = arith.constant 0.000000e+00 : bf16
    %40 = vector.broadcast %cst_33 : bf16 to vector<6x192xbf16>
    %c0_34 = arith.constant 0 : index
    %c0_35 = arith.constant 0 : index
    %c0_36 = arith.constant 0 : index
    %41 = vector.load %arg6[%c0_34, %c0_35, %c0_36] : memref<1x6x192xbf16, #tpu.memory_space<vmem>>, vector<1x6x192xbf16>
    %42 = vector.shape_cast %41 : vector<1x6x192xbf16> to vector<6x192xbf16>
    %43 = vector.shape_cast %40 : vector<6x192xbf16> to vector<1x6x192xbf16>
    tpu.vector_store %arg6[%c0_34, %c0_35, %c0_36], %43 {strides = array<i32>} : memref<1x6x192xbf16, #tpu.memory_space<vmem>>, vector<1x6x192xbf16>,
    %44 = arith.truncf %39 : vector<4x192xf32> to vector<4x192xbf16>
    %c0_37 = arith.constant 0 : index
    %c1_38 = arith.constant 1 : index
    %c0_39 = arith.constant 0 : index
    %45 = vector.load %arg6[%c0_37, %c1_38, %c0_39] : memref<1x6x192xbf16, #tpu.memory_space<vmem>>, vector<1x4x192xbf16>
    %46 = vector.shape_cast %45 : vector<1x4x192xbf16> to vector<4x192xbf16>
    %47 = vector.shape_cast %44 : vector<4x192xbf16> to vector<1x4x192xbf16>
    tpu.vector_store %arg6[%c0_37, %c1_38, %c0_39], %47 {strides = array<i32>} : memref<1x6x192xbf16, #tpu.memory_space<vmem>>, vector<1x4x192xbf16>,
    return
  }
  func.func @transform_0(%arg0: i32) -> (i32, i32, i32) {
    %c0_i32 = arith.constant 0 : i32
    %c0_i32_0 = arith.constant 0 : i32
    %c0_i32_1 = arith.constant 0 : i32
    return %arg0, %c0_i32, %c0_i32_0 : i32, i32, i32
  }
  func.func @transform_1(%arg0: i32) -> (i32, i32) {
    %c0_i32 = arith.constant 0 : i32
    %c0_i32_0 = arith.constant 0 : i32
    %c0_i32_1 = arith.constant 0 : i32
    return %c0_i32, %c0_i32_0 : i32, i32
  }
  func.func @transform_2(%arg0: i32) -> (i32, i32) {
    %c0_i32 = arith.constant 0 : i32
    %c0_i32_0 = arith.constant 0 : i32
    %c0_i32_1 = arith.constant 0 : i32
    return %c0_i32, %c0_i32_0 : i32, i32
  }
  func.func @transform_3(%arg0: i32) -> (i32, i32, i32) {
    %c0_i32 = arith.constant 0 : i32
    %c0_i32_0 = arith.constant 0 : i32
    %c0_i32_1 = arith.constant 0 : i32
    %c0_i32_2 = arith.constant 0 : i32
    return %c0_i32, %c0_i32_0, %c0_i32_1 : i32, i32, i32
  }
  func.func @transform_4(%arg0: i32) -> (i32, i32) {
    %c0_i32 = arith.constant 0 : i32
    %c0_i32_0 = arith.constant 0 : i32
    %c0_i32_1 = arith.constant 0 : i32
    return %c0_i32, %c0_i32_0 : i32, i32
  }
  func.func @transform_5(%arg0: i32) -> (i32, i32, i32) {
    %c0_i32 = arith.constant 0 : i32
    %c0_i32_0 = arith.constant 0 : i32
    %c0_i32_1 = arith.constant 0 : i32
    return %arg0, %c0_i32, %c0_i32_0 : i32, i32, i32
  }
}

module attributes {stable_mosaic.version = 11 : i64} {
  func.func @_conv_s2_kernel(%arg0: i32, %arg1: memref<1x3x192xbf16, #tpu.memory_space<vmem>>, %arg2: memref<1x3x192xbf16, #tpu.memory_space<vmem>>, %arg3: memref<3x192x256xbf16, #tpu.memory_space<vmem>>, %arg4: memref<1x256xf32, #tpu.memory_space<vmem>>, %arg5: memref<1x4x256xbf16, #tpu.memory_space<vmem>>) attributes {dimension_semantics = [#tpu.dimension_semantics<parallel>], iteration_bounds = array<i64: 4>, scalar_prefetch = 0 : i64, scratch_operands = 0 : i64, tpu.core_type = #tpu.core_type<tc>, window_params = [{transform_indices = @transform_0, window_bounds = array<i64: 1, 3, 192>}, {transform_indices = @transform_1, window_bounds = array<i64: 1, 3, 192>}, {pipeline_mode = #tpu.pipeline_mode<synchronous>, transform_indices = @transform_2, window_bounds = array<i64: 3, 192, 256>}, {pipeline_mode = #tpu.pipeline_mode<synchronous>, transform_indices = @transform_3, window_bounds = array<i64: 1, 256>}, {transform_indices = @transform_4, window_bounds = array<i64: 1, 4, 256>}]} {
    %c0 = arith.constant 0 : index
    %c0_0 = arith.constant 0 : index
    %c0_1 = arith.constant 0 : index
    %0 = vector.load %arg1[%c0, %c0_0, %c0_1] : memref<1x3x192xbf16, #tpu.memory_space<vmem>>, vector<1x2x192xbf16>
    %1 = vector.shape_cast %0 : vector<1x2x192xbf16> to vector<2x192xbf16>
    %c0_2 = arith.constant 0 : index
    %c0_3 = arith.constant 0 : index
    %c0_4 = arith.constant 0 : index
    %2 = vector.load %arg2[%c0_2, %c0_3, %c0_4] : memref<1x3x192xbf16, #tpu.memory_space<vmem>>, vector<1x2x192xbf16>
    %3 = vector.shape_cast %2 : vector<1x2x192xbf16> to vector<2x192xbf16>
    %c0_5 = arith.constant 0 : index
    %c1 = arith.constant 1 : index
    %c0_6 = arith.constant 0 : index
    %4 = vector.load %arg1[%c0_5, %c1, %c0_6] : memref<1x3x192xbf16, #tpu.memory_space<vmem>>, vector<1x2x192xbf16>
    %5 = vector.shape_cast %4 : vector<1x2x192xbf16> to vector<2x192xbf16>
    %c0_7 = arith.constant 0 : index
    %c0_8 = arith.constant 0 : index
    %6 = vector.load %arg4[%c0_7, %c0_8] : memref<1x256xf32, #tpu.memory_space<vmem>>, vector<1x256xf32>
    %c0_9 = arith.constant 0 : index
    %c0_10 = arith.constant 0 : index
    %c0_11 = arith.constant 0 : index
    %7 = vector.load %arg3[%c0_9, %c0_10, %c0_11] : memref<3x192x256xbf16, #tpu.memory_space<vmem>>, vector<1x192x256xbf16>
    %8 = vector.shape_cast %7 : vector<1x192x256xbf16> to vector<192x256xbf16>
    %cst = arith.constant dense<0.000000e+00> : vector<2x256xf32>
    %9 = tpu.matmul %1, %8, %cst {dimension_numbers = #tpu.dot_dimension_numbers<[1], [0], [0], [1], [0, 0, 1, 1], [], []>} : vector<2x192xbf16>, vector<192x256xbf16>, vector<2x256xf32> -> vector<2x256xf32>
    %10 = vector.broadcast %6 : vector<1x256xf32> to vector<2x256xf32>
    %11 = arith.addf %10, %9 : vector<2x256xf32>
    %c1_12 = arith.constant 1 : index
    %c0_13 = arith.constant 0 : index
    %c0_14 = arith.constant 0 : index
    %12 = vector.load %arg3[%c1_12, %c0_13, %c0_14] : memref<3x192x256xbf16, #tpu.memory_space<vmem>>, vector<1x192x256xbf16>
    %13 = vector.shape_cast %12 : vector<1x192x256xbf16> to vector<192x256xbf16>
    %cst_15 = arith.constant dense<0.000000e+00> : vector<2x256xf32>
    %14 = tpu.matmul %3, %13, %cst_15 {dimension_numbers = #tpu.dot_dimension_numbers<[1], [0], [0], [1], [0, 0, 1, 1], [], []>} : vector<2x192xbf16>, vector<192x256xbf16>, vector<2x256xf32> -> vector<2x256xf32>
    %15 = arith.addf %11, %14 : vector<2x256xf32>
    %c2 = arith.constant 2 : index
    %c0_16 = arith.constant 0 : index
    %c0_17 = arith.constant 0 : index
    %16 = vector.load %arg3[%c2, %c0_16, %c0_17] : memref<3x192x256xbf16, #tpu.memory_space<vmem>>, vector<1x192x256xbf16>
    %17 = vector.shape_cast %16 : vector<1x192x256xbf16> to vector<192x256xbf16>
    %cst_18 = arith.constant dense<0.000000e+00> : vector<2x256xf32>
    %18 = tpu.matmul %5, %17, %cst_18 {dimension_numbers = #tpu.dot_dimension_numbers<[1], [0], [0], [1], [0, 0, 1, 1], [], []>} : vector<2x192xbf16>, vector<192x256xbf16>, vector<2x256xf32> -> vector<2x256xf32>
    %19 = arith.addf %15, %18 : vector<2x256xf32>
    %cst_19 = arith.constant 0.000000e+00 : f32
    %20 = vector.broadcast %cst_19 : f32 to vector<2x256xf32>
    %21 = arith.cmpf ogt, %19, %20 : vector<2x256xf32>
    %cst_20 = arith.constant 1.000000e-01 : f32
    %22 = vector.broadcast %cst_20 : f32 to vector<2x256xf32>
    %23 = arith.mulf %22, %19 : vector<2x256xf32>
    %24 = arith.select %21, %19, %23 : vector<2x256xi1>, vector<2x256xf32>
    %cst_21 = arith.constant 0.000000e+00 : bf16
    %25 = vector.broadcast %cst_21 : bf16 to vector<4x256xbf16>
    %c0_22 = arith.constant 0 : index
    %c0_23 = arith.constant 0 : index
    %c0_24 = arith.constant 0 : index
    %26 = vector.load %arg5[%c0_22, %c0_23, %c0_24] : memref<1x4x256xbf16, #tpu.memory_space<vmem>>, vector<1x4x256xbf16>
    %27 = vector.shape_cast %26 : vector<1x4x256xbf16> to vector<4x256xbf16>
    %28 = vector.shape_cast %25 : vector<4x256xbf16> to vector<1x4x256xbf16>
    tpu.vector_store %arg5[%c0_22, %c0_23, %c0_24], %28 {strides = array<i32>} : memref<1x4x256xbf16, #tpu.memory_space<vmem>>, vector<1x4x256xbf16>,
    %29 = arith.truncf %24 : vector<2x256xf32> to vector<2x256xbf16>
    %c0_25 = arith.constant 0 : index
    %c1_26 = arith.constant 1 : index
    %c0_27 = arith.constant 0 : index
    %30 = vector.load %arg5[%c0_25, %c1_26, %c0_27] : memref<1x4x256xbf16, #tpu.memory_space<vmem>>, vector<1x2x256xbf16>
    %31 = vector.shape_cast %30 : vector<1x2x256xbf16> to vector<2x256xbf16>
    %32 = vector.shape_cast %29 : vector<2x256xbf16> to vector<1x2x256xbf16>
    tpu.vector_store %arg5[%c0_25, %c1_26, %c0_27], %32 {strides = array<i32>} : memref<1x4x256xbf16, #tpu.memory_space<vmem>>, vector<1x2x256xbf16>,
    return
  }
  func.func @transform_0(%arg0: i32) -> (i32, i32, i32) {
    %c0_i32 = arith.constant 0 : i32
    %c0_i32_0 = arith.constant 0 : i32
    %c0_i32_1 = arith.constant 0 : i32
    return %arg0, %c0_i32, %c0_i32_0 : i32, i32, i32
  }
  func.func @transform_1(%arg0: i32) -> (i32, i32, i32) {
    %c0_i32 = arith.constant 0 : i32
    %c0_i32_0 = arith.constant 0 : i32
    %c0_i32_1 = arith.constant 0 : i32
    return %arg0, %c0_i32, %c0_i32_0 : i32, i32, i32
  }
  func.func @transform_2(%arg0: i32) -> (i32, i32, i32) {
    %c0_i32 = arith.constant 0 : i32
    %c0_i32_0 = arith.constant 0 : i32
    %c0_i32_1 = arith.constant 0 : i32
    %c0_i32_2 = arith.constant 0 : i32
    return %c0_i32, %c0_i32_0, %c0_i32_1 : i32, i32, i32
  }
  func.func @transform_3(%arg0: i32) -> (i32, i32) {
    %c0_i32 = arith.constant 0 : i32
    %c0_i32_0 = arith.constant 0 : i32
    %c0_i32_1 = arith.constant 0 : i32
    return %c0_i32, %c0_i32_0 : i32, i32
  }
  func.func @transform_4(%arg0: i32) -> (i32, i32, i32) {
    %c0_i32 = arith.constant 0 : i32
    %c0_i32_0 = arith.constant 0 : i32
    %c0_i32_1 = arith.constant 0 : i32
    return %arg0, %c0_i32, %c0_i32_0 : i32, i32, i32
  }
}

module attributes {stable_mosaic.version = 11 : i64} {
  func.func @_res_block_kernel(%arg0: i32, %arg1: memref<1x4x256xbf16, #tpu.memory_space<vmem>>, %arg2: memref<256x128xbf16, #tpu.memory_space<vmem>>, %arg3: memref<1x128xf32, #tpu.memory_space<vmem>>, %arg4: memref<3x128x256xbf16, #tpu.memory_space<vmem>>, %arg5: memref<1x256xf32, #tpu.memory_space<vmem>>, %arg6: memref<1x4x256xbf16, #tpu.memory_space<vmem>>, %arg7: memref<4x128xbf16, #tpu.memory_space<vmem>>) attributes {dimension_semantics = [#tpu.dimension_semantics<parallel>], iteration_bounds = array<i64: 4>, scalar_prefetch = 0 : i64, scratch_operands = 1 : i64, tpu.core_type = #tpu.core_type<tc>, window_params = [{transform_indices = @transform_0, window_bounds = array<i64: 1, 4, 256>}, {pipeline_mode = #tpu.pipeline_mode<synchronous>, transform_indices = @transform_1, window_bounds = array<i64: 256, 128>}, {pipeline_mode = #tpu.pipeline_mode<synchronous>, transform_indices = @transform_2, window_bounds = array<i64: 1, 128>}, {pipeline_mode = #tpu.pipeline_mode<synchronous>, transform_indices = @transform_3, window_bounds = array<i64: 3, 128, 256>}, {pipeline_mode = #tpu.pipeline_mode<synchronous>, transform_indices = @transform_4, window_bounds = array<i64: 1, 256>}, {transform_indices = @transform_5, window_bounds = array<i64: 1, 4, 256>}]} {
    %c0 = arith.constant 0 : index
    %c1 = arith.constant 1 : index
    %c0_0 = arith.constant 0 : index
    %0 = vector.load %arg1[%c0, %c1, %c0_0] : memref<1x4x256xbf16, #tpu.memory_space<vmem>>, vector<1x2x256xbf16>
    %1 = vector.shape_cast %0 : vector<1x2x256xbf16> to vector<2x256xbf16>
    %c0_1 = arith.constant 0 : index
    %c0_2 = arith.constant 0 : index
    %2 = vector.load %arg2[%c0_1, %c0_2] : memref<256x128xbf16, #tpu.memory_space<vmem>>, vector<256x128xbf16>
    %cst = arith.constant dense<0.000000e+00> : vector<2x128xf32>
    %3 = tpu.matmul %1, %2, %cst {dimension_numbers = #tpu.dot_dimension_numbers<[1], [0], [0], [1], [0, 0, 1, 1], [], []>} : vector<2x256xbf16>, vector<256x128xbf16>, vector<2x128xf32> -> vector<2x128xf32>
    %c0_3 = arith.constant 0 : index
    %c0_4 = arith.constant 0 : index
    %4 = vector.load %arg3[%c0_3, %c0_4] : memref<1x128xf32, #tpu.memory_space<vmem>>, vector<1x128xf32>
    %5 = vector.broadcast %4 : vector<1x128xf32> to vector<2x128xf32>
    %6 = arith.addf %3, %5 : vector<2x128xf32>
    %cst_5 = arith.constant 0.000000e+00 : f32
    %7 = vector.broadcast %cst_5 : f32 to vector<2x128xf32>
    %8 = arith.cmpf ogt, %6, %7 : vector<2x128xf32>
    %cst_6 = arith.constant 1.000000e-01 : f32
    %9 = vector.broadcast %cst_6 : f32 to vector<2x128xf32>
    %10 = arith.mulf %9, %6 : vector<2x128xf32>
    %11 = arith.select %8, %6, %10 : vector<2x128xi1>, vector<2x128xf32>
    %cst_7 = arith.constant 0.000000e+00 : bf16
    %12 = vector.broadcast %cst_7 : bf16 to vector<4x128xbf16>
    %c0_8 = arith.constant 0 : index
    %c0_9 = arith.constant 0 : index
    %13 = vector.load %arg7[%c0_8, %c0_9] : memref<4x128xbf16, #tpu.memory_space<vmem>>, vector<4x128xbf16>
    tpu.vector_store %arg7[%c0_8, %c0_9], %12 {strides = array<i32>} : memref<4x128xbf16, #tpu.memory_space<vmem>>, vector<4x128xbf16>,
    %14 = arith.truncf %11 : vector<2x128xf32> to vector<2x128xbf16>
    %c1_10 = arith.constant 1 : index
    %c0_11 = arith.constant 0 : index
    %15 = vector.load %arg7[%c1_10, %c0_11] : memref<4x128xbf16, #tpu.memory_space<vmem>>, vector<2x128xbf16>
    tpu.vector_store %arg7[%c1_10, %c0_11], %14 {strides = array<i32>} : memref<4x128xbf16, #tpu.memory_space<vmem>>, vector<2x128xbf16>,
    %c0_12 = arith.constant 0 : index
    %c0_13 = arith.constant 0 : index
    %16 = vector.load %arg5[%c0_12, %c0_13] : memref<1x256xf32, #tpu.memory_space<vmem>>, vector<1x256xf32>
    %c0_14 = arith.constant 0 : index
    %c0_15 = arith.constant 0 : index
    %17 = vector.load %arg7[%c0_14, %c0_15] : memref<4x128xbf16, #tpu.memory_space<vmem>>, vector<2x128xbf16>
    %c0_16 = arith.constant 0 : index
    %c0_17 = arith.constant 0 : index
    %c0_18 = arith.constant 0 : index
    %18 = vector.load %arg4[%c0_16, %c0_17, %c0_18] : memref<3x128x256xbf16, #tpu.memory_space<vmem>>, vector<1x128x256xbf16>
    %19 = vector.shape_cast %18 : vector<1x128x256xbf16> to vector<128x256xbf16>
    %cst_19 = arith.constant dense<0.000000e+00> : vector<2x256xf32>
    %20 = tpu.matmul %17, %19, %cst_19 {dimension_numbers = #tpu.dot_dimension_numbers<[1], [0], [0], [1], [0, 0, 1, 1], [], []>} : vector<2x128xbf16>, vector<128x256xbf16>, vector<2x256xf32> -> vector<2x256xf32>
    %21 = vector.broadcast %16 : vector<1x256xf32> to vector<2x256xf32>
    %22 = arith.addf %21, %20 : vector<2x256xf32>
    %c1_20 = arith.constant 1 : index
    %c0_21 = arith.constant 0 : index
    %23 = vector.load %arg7[%c1_20, %c0_21] : memref<4x128xbf16, #tpu.memory_space<vmem>>, vector<2x128xbf16>
    %c1_22 = arith.constant 1 : index
    %c0_23 = arith.constant 0 : index
    %c0_24 = arith.constant 0 : index
    %24 = vector.load %arg4[%c1_22, %c0_23, %c0_24] : memref<3x128x256xbf16, #tpu.memory_space<vmem>>, vector<1x128x256xbf16>
    %25 = vector.shape_cast %24 : vector<1x128x256xbf16> to vector<128x256xbf16>
    %cst_25 = arith.constant dense<0.000000e+00> : vector<2x256xf32>
    %26 = tpu.matmul %23, %25, %cst_25 {dimension_numbers = #tpu.dot_dimension_numbers<[1], [0], [0], [1], [0, 0, 1, 1], [], []>} : vector<2x128xbf16>, vector<128x256xbf16>, vector<2x256xf32> -> vector<2x256xf32>
    %27 = arith.addf %22, %26 : vector<2x256xf32>
    %c2 = arith.constant 2 : index
    %c0_26 = arith.constant 0 : index
    %28 = vector.load %arg7[%c2, %c0_26] : memref<4x128xbf16, #tpu.memory_space<vmem>>, vector<2x128xbf16>
    %c2_27 = arith.constant 2 : index
    %c0_28 = arith.constant 0 : index
    %c0_29 = arith.constant 0 : index
    %29 = vector.load %arg4[%c2_27, %c0_28, %c0_29] : memref<3x128x256xbf16, #tpu.memory_space<vmem>>, vector<1x128x256xbf16>
    %30 = vector.shape_cast %29 : vector<1x128x256xbf16> to vector<128x256xbf16>
    %cst_30 = arith.constant dense<0.000000e+00> : vector<2x256xf32>
    %31 = tpu.matmul %28, %30, %cst_30 {dimension_numbers = #tpu.dot_dimension_numbers<[1], [0], [0], [1], [0, 0, 1, 1], [], []>} : vector<2x128xbf16>, vector<128x256xbf16>, vector<2x256xf32> -> vector<2x256xf32>
    %32 = arith.addf %27, %31 : vector<2x256xf32>
    %cst_31 = arith.constant 0.000000e+00 : f32
    %33 = vector.broadcast %cst_31 : f32 to vector<2x256xf32>
    %34 = arith.cmpf ogt, %32, %33 : vector<2x256xf32>
    %cst_32 = arith.constant 1.000000e-01 : f32
    %35 = vector.broadcast %cst_32 : f32 to vector<2x256xf32>
    %36 = arith.mulf %35, %32 : vector<2x256xf32>
    %37 = arith.select %34, %32, %36 : vector<2x256xi1>, vector<2x256xf32>
    %38 = arith.extf %1 : vector<2x256xbf16> to vector<2x256xf32>
    %39 = arith.addf %37, %38 : vector<2x256xf32>
    %cst_33 = arith.constant 0.000000e+00 : bf16
    %40 = vector.broadcast %cst_33 : bf16 to vector<4x256xbf16>
    %c0_34 = arith.constant 0 : index
    %c0_35 = arith.constant 0 : index
    %c0_36 = arith.constant 0 : index
    %41 = vector.load %arg6[%c0_34, %c0_35, %c0_36] : memref<1x4x256xbf16, #tpu.memory_space<vmem>>, vector<1x4x256xbf16>
    %42 = vector.shape_cast %41 : vector<1x4x256xbf16> to vector<4x256xbf16>
    %43 = vector.shape_cast %40 : vector<4x256xbf16> to vector<1x4x256xbf16>
    tpu.vector_store %arg6[%c0_34, %c0_35, %c0_36], %43 {strides = array<i32>} : memref<1x4x256xbf16, #tpu.memory_space<vmem>>, vector<1x4x256xbf16>,
    %44 = arith.truncf %39 : vector<2x256xf32> to vector<2x256xbf16>
    %c0_37 = arith.constant 0 : index
    %c1_38 = arith.constant 1 : index
    %c0_39 = arith.constant 0 : index
    %45 = vector.load %arg6[%c0_37, %c1_38, %c0_39] : memref<1x4x256xbf16, #tpu.memory_space<vmem>>, vector<1x2x256xbf16>
    %46 = vector.shape_cast %45 : vector<1x2x256xbf16> to vector<2x256xbf16>
    %47 = vector.shape_cast %44 : vector<2x256xbf16> to vector<1x2x256xbf16>
    tpu.vector_store %arg6[%c0_37, %c1_38, %c0_39], %47 {strides = array<i32>} : memref<1x4x256xbf16, #tpu.memory_space<vmem>>, vector<1x2x256xbf16>,
    return
  }
  func.func @transform_0(%arg0: i32) -> (i32, i32, i32) {
    %c0_i32 = arith.constant 0 : i32
    %c0_i32_0 = arith.constant 0 : i32
    %c0_i32_1 = arith.constant 0 : i32
    return %arg0, %c0_i32, %c0_i32_0 : i32, i32, i32
  }
  func.func @transform_1(%arg0: i32) -> (i32, i32) {
    %c0_i32 = arith.constant 0 : i32
    %c0_i32_0 = arith.constant 0 : i32
    %c0_i32_1 = arith.constant 0 : i32
    return %c0_i32, %c0_i32_0 : i32, i32
  }
  func.func @transform_2(%arg0: i32) -> (i32, i32) {
    %c0_i32 = arith.constant 0 : i32
    %c0_i32_0 = arith.constant 0 : i32
    %c0_i32_1 = arith.constant 0 : i32
    return %c0_i32, %c0_i32_0 : i32, i32
  }
  func.func @transform_3(%arg0: i32) -> (i32, i32, i32) {
    %c0_i32 = arith.constant 0 : i32
    %c0_i32_0 = arith.constant 0 : i32
    %c0_i32_1 = arith.constant 0 : i32
    %c0_i32_2 = arith.constant 0 : i32
    return %c0_i32, %c0_i32_0, %c0_i32_1 : i32, i32, i32
  }
  func.func @transform_4(%arg0: i32) -> (i32, i32) {
    %c0_i32 = arith.constant 0 : i32
    %c0_i32_0 = arith.constant 0 : i32
    %c0_i32_1 = arith.constant 0 : i32
    return %c0_i32, %c0_i32_0 : i32, i32
  }
  func.func @transform_5(%arg0: i32) -> (i32, i32, i32) {
    %c0_i32 = arith.constant 0 : i32
    %c0_i32_0 = arith.constant 0 : i32
    %c0_i32_1 = arith.constant 0 : i32
    return %arg0, %c0_i32, %c0_i32_0 : i32, i32, i32
  }
}

module attributes {stable_mosaic.version = 11 : i64} {
  func.func @_head_kernel(%arg0: memref<2x4x64xbf16, #tpu.memory_space<vmem>>, %arg1: memref<2x4x64xbf16, #tpu.memory_space<vmem>>, %arg2: memref<64x32xbf16, #tpu.memory_space<vmem>>, %arg3: memref<64x32xbf16, #tpu.memory_space<vmem>>, %arg4: memref<1x32xf32, #tpu.memory_space<vmem>>, %arg5: memref<32x128xbf16, #tpu.memory_space<vmem>>, %arg6: memref<1x128xf32, #tpu.memory_space<vmem>>, %arg7: memref<2x128xf32, #tpu.memory_space<vmem>>) attributes {dimension_semantics = [], scalar_prefetch = 0 : i64, scratch_operands = 0 : i64, tpu.core_type = #tpu.core_type<tc>} {
    %c0 = arith.constant 0 : index
    %c0_0 = arith.constant 0 : index
    %c0_1 = arith.constant 0 : index
    %0 = vector.load %arg0[%c0, %c0_0, %c0_1] : memref<2x4x64xbf16, #tpu.memory_space<vmem>>, vector<2x4x64xbf16>
    %1 = arith.extf %0 : vector<2x4x64xbf16> to vector<2x4x64xf32>
    %cst = arith.constant dense<0.000000e+00> : vector<2x64xf32>
    %2 = vector.multi_reduction <add>, %1, %cst [1] : vector<2x4x64xf32> to vector<2x64xf32>
    %cst_2 = arith.constant 4.000000e+00 : f32
    %3 = vector.broadcast %cst_2 : f32 to vector<2x64xf32>
    %4 = arith.divf %2, %3 : vector<2x64xf32>
    %c0_3 = arith.constant 0 : index
    %c0_4 = arith.constant 0 : index
    %c0_5 = arith.constant 0 : index
    %5 = vector.load %arg1[%c0_3, %c0_4, %c0_5] : memref<2x4x64xbf16, #tpu.memory_space<vmem>>, vector<2x4x64xbf16>
    %6 = arith.extf %5 : vector<2x4x64xbf16> to vector<2x4x64xf32>
    %cst_6 = arith.constant dense<0.000000e+00> : vector<2x64xf32>
    %7 = vector.multi_reduction <add>, %6, %cst_6 [1] : vector<2x4x64xf32> to vector<2x64xf32>
    %cst_7 = arith.constant 4.000000e+00 : f32
    %8 = vector.broadcast %cst_7 : f32 to vector<2x64xf32>
    %9 = arith.divf %7, %8 : vector<2x64xf32>
    %10 = arith.truncf %4 : vector<2x64xf32> to vector<2x64xbf16>
    %c0_8 = arith.constant 0 : index
    %c0_9 = arith.constant 0 : index
    %11 = vector.load %arg2[%c0_8, %c0_9] : memref<64x32xbf16, #tpu.memory_space<vmem>>, vector<64x32xbf16>
    %cst_10 = arith.constant dense<0.000000e+00> : vector<2x32xf32>
    %12 = tpu.matmul %10, %11, %cst_10 {dimension_numbers = #tpu.dot_dimension_numbers<[1], [0], [0], [1], [0, 0, 1, 1], [], []>} : vector<2x64xbf16>, vector<64x32xbf16>, vector<2x32xf32> -> vector<2x32xf32>
    %13 = arith.truncf %9 : vector<2x64xf32> to vector<2x64xbf16>
    %c0_11 = arith.constant 0 : index
    %c0_12 = arith.constant 0 : index
    %14 = vector.load %arg3[%c0_11, %c0_12] : memref<64x32xbf16, #tpu.memory_space<vmem>>, vector<64x32xbf16>
    %cst_13 = arith.constant dense<0.000000e+00> : vector<2x32xf32>
    %15 = tpu.matmul %13, %14, %cst_13 {dimension_numbers = #tpu.dot_dimension_numbers<[1], [0], [0], [1], [0, 0, 1, 1], [], []>} : vector<2x64xbf16>, vector<64x32xbf16>, vector<2x32xf32> -> vector<2x32xf32>
    %16 = arith.addf %12, %15 : vector<2x32xf32>
    %c0_14 = arith.constant 0 : index
    %c0_15 = arith.constant 0 : index
    %17 = vector.load %arg4[%c0_14, %c0_15] : memref<1x32xf32, #tpu.memory_space<vmem>>, vector<1x32xf32>
    %18 = vector.broadcast %17 : vector<1x32xf32> to vector<2x32xf32>
    %19 = arith.addf %16, %18 : vector<2x32xf32>
    %20 = arith.truncf %19 : vector<2x32xf32> to vector<2x32xbf16>
    %c0_16 = arith.constant 0 : index
    %c0_17 = arith.constant 0 : index
    %21 = vector.load %arg5[%c0_16, %c0_17] : memref<32x128xbf16, #tpu.memory_space<vmem>>, vector<32x128xbf16>
    %cst_18 = arith.constant dense<0.000000e+00> : vector<2x128xf32>
    %22 = tpu.matmul %20, %21, %cst_18 {dimension_numbers = #tpu.dot_dimension_numbers<[1], [0], [0], [1], [0, 0, 1, 1], [], []>} : vector<2x32xbf16>, vector<32x128xbf16>, vector<2x128xf32> -> vector<2x128xf32>
    %c0_19 = arith.constant 0 : index
    %c0_20 = arith.constant 0 : index
    %23 = vector.load %arg6[%c0_19, %c0_20] : memref<1x128xf32, #tpu.memory_space<vmem>>, vector<1x128xf32>
    %24 = vector.broadcast %23 : vector<1x128xf32> to vector<2x128xf32>
    %25 = arith.addf %22, %24 : vector<2x128xf32>
    %c0_21 = arith.constant 0 : index
    %c0_22 = arith.constant 0 : index
    %26 = vector.load %arg7[%c0_21, %c0_22] : memref<2x128xf32, #tpu.memory_space<vmem>>, vector<2x128xf32>
    tpu.vector_store %arg7[%c0_21, %c0_22], %25 {strides = array<i32>} : memref<2x128xf32, #tpu.memory_space<vmem>>, vector<2x128xf32>,
    return
  }
}

</mosaic_0001>

<bundles_post_ra>
// kernel: tile.53
= control target key start
LH: loop header
LB: loop body
LE: loop exit
PB: predicated region body
PF: predicated region fallthrough
CT: control target
= control target key end

     0   :  { %s28_s0 = inlined_call_operand.vmem [shape: f32[8], index: 0, kind: input, shape index: {}]   ;;  %s29_s1 = inlined_call_operand.vmem [shape: f32[16,8], index: 1, kind: output, shape index: {}]  }
   0x1   :  { %v4_v0 = vld [vmem:[%s28_s0] ss:$0 sm:$0xff] }
   0x2   :  { %5 = vst [vmem:[%s29_s1] sm:$0xff] %v4_v0 }
   0x3   :  { %8 = vst [vmem:[%s29_s1 + $0x8] sm:$0xff] %v4_v0 }

// kernel: tile.54
= control target key start
LH: loop header
LB: loop body
LE: loop exit
PB: predicated region body
PF: predicated region fallthrough
CT: control target
= control target key end

     0   :  { %s131_s10 = smov 120   ;;  %s132_s11 = smov 104   ;;  %vm3_vm0 = vcmask 64512   ;;  %vm9_vm1 = vcmask 1048512   ;;  %vm15_vm2 = vcmask 982912   ;;  %vm21_vm3 = vcmask 917312   ;;  %s207_s0 = inlined_call_operand.vmem [shape: f32[16,8], index: 0, kind: input, shape index: {}]   ;;  %s208_s1 = inlined_call_operand.vmem [shape: f32[128], index: 1, kind: output, shape index: {}]  }
   0x1   :  { %v101_v0 = vld [vmem:[%s207_s0 + $0xf] sm:$0x1]   ;;  %v103_v1 = vld [vmem:[%s207_s0 + $0xd] sm:$0x1]   ;;  %v105_v2 = vld [vmem:[%s207_s0 + $0xb] sm:$0x1]  }
   0x2   :  { %7 = vrot.lane.b32.xlu0 %v101_v0, %s131_s10  ;;  %19 = vrot.lane.b32.xlu1 %v103_v1, %s132_s11  ;;  %s133_s14 = smov 88   ;;  %v102_v3 = vld [vmem:[%s207_s0 + $0xe] sm:$0x1]   ;;  %v104_v4 = vld [vmem:[%s207_s0 + $0xc] sm:$0x1]   ;;  %s134_s19 = smov 112  }
   0x3   :  { %31 = vrot.lane.b32.xlu2 %v105_v2, %s133_s14  ;;  %s135_s20 = smov 96   ;;  %v106_v5 = vld [vmem:[%s207_s0 + $0xa] sm:$0x1]   ;;  %s136_s23 = smov 80   ;;  %v107_v6 = vld [vmem:[%s207_s0 + $0x9] sm:$0x1]  }
   0x4   :  { %v108_v7 = vld [vmem:[%s207_s0 + $0x8] sm:$0x1]   ;;  %s137_s28 = smov 72   ;;  %s138_s29 = smov 64   ;;  %v109_v8 = vld [vmem:[%s207_s0 + $0x7] sm:$0x1]  }
   0x5   :  { %s139_s3 = smov 56   ;;  %v110_v9 = vld [vmem:[%s207_s0 + $0x6] sm:$0x1]   ;;  %v111_v10 = vld [vmem:[%s207_s0 + $0x5] sm:$0x1]   ;;  %s140_s8 = smov 48  }
   0x6   :  { %s141_s9 = smov 40   ;;  %v112_v11 = vld [vmem:[%s207_s0 + $0x4] sm:$0x1]   ;;  %s142_s12 = smov 32   ;;  %v113_v12 = vld [vmem:[%s207_s0 + $0x3] sm:$0x1]  }
   0x7   :  { %v114_v13 = vld [vmem:[%s207_s0 + $0x2] sm:$0x1]   ;;  %s143_s17 = smov 24   ;;  %s144_s18 = smov 16   ;;  %v115_v14 = vld [vmem:[%s207_s0 + $0x1] sm:$0x1]  }
   0x8   :  { %s145_s21 = smov 8   ;;  %v2_v15 = vld [vmem:[%s207_s0] sm:$0x1]   ;;  %vm27_vm4 = vcmask 851712   ;;  %vm33_vm5 = vcmask 786112   ;;  %vm39_vm6 = vcmask 720512  }
   0x9   :  { %4 = vst.msk [vmem:[#allocation0] sm:$0x1] %vm3_vm0, %v2_v15   ;;  %vm45_vm7 = vcmask 654912   ;;  %vm51_vm8 = vcmask 589312   ;;  %vm57_vm9 = vcmask 523712   ;;  %vm63_vm10 = vcmask 458112  }
   0xa   :  { %13 = vrot.lane.b32.xlu0 %v102_v3, %s134_s19  ;;  %25 = vrot.lane.b32.xlu1 %v104_v4, %s135_s20  ;;  %vm69_vm11 = vcmask 392512   ;;  %vm75_vm12 = vcmask 326912   ;;  %vm81_vm13 = vcmask 261312   ;;  %vm87_vm14 = vcmask 195712  }
   0xb   :  { %37 = vrot.lane.b32.xlu2 %v106_v5, %s136_s23  ;;  %vm93_vm15 = vcmask 130112  }
  0x12   :  { %43 = vrot.lane.b32.xlu0 %v107_v6, %s137_s28  ;;  %49 = vrot.lane.b32.xlu1 %v108_v7, %s138_s29 }
  0x13   :  { %55 = vrot.lane.b32.xlu2 %v109_v8, %s139_s3 }
  0x1a   :  { %61 = vrot.lane.b32.xlu0 %v110_v9, %s140_s8  ;;  %67 = vrot.lane.b32.xlu1 %v111_v10, %s141_s9 }
  0x1b   :  { %73 = vrot.lane.b32.xlu2 %v112_v11, %s142_s12 }
  0x22   :  { %79 = vrot.lane.b32.xlu0 %v113_v12, %s143_s17  ;;  %85 = vrot.lane.b32.xlu1 %v114_v13, %s144_s18 }
  0x23   :  { %91 = vrot.lane.b32.xlu2 %v115_v14, %s145_s21 }
  0x5d   :  { %v32_v16 = vpop.permute.xlu2 %31  }
  0x65   :  { %v38_v17 = vpop.permute.xlu2 %37  }
  0x6d   :  { %v56_v18 = vpop.permute.xlu2 %55  }
  0x74   :  { %v8_v19 = vpop.permute.xlu0 %7   ;;  %v20_v20 = vpop.permute.xlu1 %19  }
  0x75   :  { %10 = vst.msk [vmem:[#allocation0] sm:$0x1] %vm9_vm1, %v8_v19   ;;  %v74_v21 = vpop.permute.xlu2 %73  }
  0x7c   :  { %v14_v22 = vpop.permute.xlu0 %13   ;;  %v26_v23 = vpop.permute.xlu1 %25  }
  0x7d   :  { %16 = vst.msk [vmem:[#allocation0] sm:$0x1] %vm15_vm2, %v14_v22   ;;  %v92_v24 = vpop.permute.xlu2 %91  }
  0x7e   :  { %22 = vst.msk [vmem:[#allocation0] sm:$0x1] %vm21_vm3, %v20_v20  }
  0x7f   :  { %28 = vst.msk [vmem:[#allocation0] sm:$0x1] %vm27_vm4, %v26_v23  }
  0x80   :  { %34 = vst.msk [vmem:[#allocation0] sm:$0x1] %vm33_vm5, %v32_v16  }
  0x81   :  { %40 = vst.msk [vmem:[#allocation0] sm:$0x1] %vm39_vm6, %v38_v17  }
  0x84   :  { %v44_v25 = vpop.permute.xlu0 %43   ;;  %v50_v26 = vpop.permute.xlu1 %49  }
  0x85   :  { %46 = vst.msk [vmem:[#allocation0] sm:$0x1] %vm45_vm7, %v44_v25  }
  0x86   :  { %52 = vst.msk [vmem:[#allocation0] sm:$0x1] %vm51_vm8, %v50_v26  }
  0x87   :  { %58 = vst.msk [vmem:[#allocation0] sm:$0x1] %vm57_vm9, %v56_v18  }
  0x8c   :  { %v62_v27 = vpop.permute.xlu0 %61   ;;  %v68_v28 = vpop.permute.xlu1 %67  }
  0x8d   :  { %64 = vst.msk [vmem:[#allocation0] sm:$0x1] %vm63_vm10, %v62_v27  }
  0x8e   :  { %70 = vst.msk [vmem:[#allocation0] sm:$0x1] %vm69_vm11, %v68_v28  }
  0x8f   :  { %76 = vst.msk [vmem:[#allocation0] sm:$0x1] %vm75_vm12, %v74_v21  }
  0x94   :  { %v80_v29 = vpop.permute.xlu0 %79   ;;  %v86_v30 = vpop.permute.xlu1 %85  }
  0x95   :  { %82 = vst.msk [vmem:[#allocation0] sm:$0x1] %vm81_vm13, %v80_v29  }
  0x96   :  { %88 = vst.msk [vmem:[#allocation0] sm:$0x1] %vm87_vm14, %v86_v30  }
  0x97   :  { %94 = vst.msk [vmem:[#allocation0] sm:$0x1] %vm93_vm15, %v92_v24  }
  0x9e   :  { %v97_v31 = vld [vmem:[#allocation0] sm:$0x1] }
  0x9f   :  { %100 = vst [vmem:[%s208_s1] sm:$0x1] %v97_v31 }

// kernel: siamese_forward.8
= control target key start
LH: loop header
LB: loop body
LE: loop exit
PB: predicated region body
PF: predicated region fallthrough
CT: control target
= control target key end

     0   :  { %s621_s12 = smov 0   ;;  %s749_s0 = inlined_call_operand.vmem [shape: bf16[4,18,18], index: 0, kind: input, shape index: {}]   ;;  %s750_s1 = inlined_call_operand.vmem [shape: bf16[3,18,144], index: 1, kind: input, shape index: {}]   ;;  %s751_s2 = inlined_call_operand.vmem [shape: f32[1,144], index: 2, kind: input, shape index: {}]   ;;  %s752_s3 = inlined_call_operand.vmem [shape: bf16[4,18,144], index: 3, kind: output, shape index: {}]  }
   0x1 LB: > { %s518_s13 = sadd.s32 4294967295, %s598_s12   ;;  %p522_p0 = scmp.ge.s32.totalorder %s598_s12, 1  ;;  %s598_s12 = sphi %s621_s12, %s13_s12  }
   0x2   : > { %p137_p1 = scmp.lt.s32.totalorder %s598_s12, 5 }
   0x4   : > { %p138_p2 = pnand %p522_p0, %p137_p1 }
   0x5   : > { %p161_p3 = scmp.lt.s32.totalorder (!%p138_p2), %s518_s13, 3 }
   0x6   : > { %141 = sbr.rel (%p138_p2) target bundleno = 190 (0xbe), region = 32 }
   0xb   : > { %v177_v0 = vld [vmem:[%s750_s1 + $0x10] sm:$0x11]  ;;  %v531_v3 = vld [vmem:[%s750_s1] sm:$0xf]  ;;  %v569_v4 = vld [vmem:[%s750_s1 + $0x4] sm:$0xf0] }
   0xc   : > { %v190_v1 = vunpack.c.l.b16 %v177_v0  ;;  %v191_v2 = vunpack.c.h.b16 %v177_v0  ;;  %vm202_vm0 = vcmask 1040384   ;;  %v541_v5 = vld [vmem:[%s750_s1 + $0x28] sm:$0x11]  ;;  %s760_s13 = smov (!%p161_p3, %s518_s13), 3  ;;  %v554_v6 = vld [vmem:[%s750_s1 + $0x40] sm:$0x11]  ;;  %v532_v13 = vor.u32 %v569_v4, %v531_v3 }
   0xd   : > { %v568_v9 = vld [vmem:[%s750_s1 + $0x4] sm:$0xf]  ;;  %v533_v10 = vld [vmem:[%s750_s1 + $0x8] sm:$0xf0]  ;;  %v281_v11 = vunpack.c.l.b16 %v541_v5  ;;  %v282_v12 = vunpack.c.h.b16 %v541_v5  ;;  %s581_s28 = smul.u32 12, %s760_s13  ;;  %v349_v14 = vunpack.c.l.b16 %v554_v6  ;;  %v350_v15 = vunpack.c.h.b16 %v554_v6 }
   0xe   : > { %v194_v7 = vpack.c.b16 %v190_v1, %v190_v1  ;;  %v195_v8 = vpack.c.b16 %v191_v2, %v191_v2  ;;  %v544_v16 = vld [vmem:[%s750_s1 + $0x18] sm:$0xf]  ;;  %v571_v17 = vld [vmem:[%s750_s1 + $0x1c] sm:$0xf0]  ;;  %v570_v22 = vld [vmem:[%s750_s1 + $0x1c] sm:$0xf]  ;;  %v536_v24 = vor.u32 %v568_v9, %v533_v10 }
   0xf   : > { %v285_v20 = vpack.c.b16 %v281_v11, %v281_v11  ;;  %v286_v21 = vpack.c.b16 %v282_v12, %v282_v12  ;;  %v546_v23 = vld [vmem:[%s750_s1 + $0x20] sm:$0xf0]  ;;  %s670_s14 = scalar_lea.vmem %s749_s0, %s581_s28  ;;  %v353_v25 = vpack.c.b16 %v349_v14, %v349_v14  ;;  %v354_v26 = vpack.c.b16 %v350_v15, %v350_v15  ;;  %v557_v27 = vld [vmem:[%s750_s1 + $0x30] sm:$0xf]  ;;  %v573_v28 = vld [vmem:[%s750_s1 + $0x34] sm:$0xf0] }
  0x10   : > { %v204_v18 = vsel %vm202_vm0, %v194_v7, 0  ;;  %v207_v19 = vsel %vm202_vm0, %v195_v8, 0  ;;  %v545_v31 = vor.u32 %v571_v17, %v544_v16  ;;  %v575_v32 = vld [vmem:[%s670_s14] sm:$0xff]   ;;  %v248_v33 = vld [vmem:[%s670_s14 + $0x8] sm:$0x1]  ;;  %v549_v36 = vor.u32 %v570_v22, %v546_v23  ;;  %s582_s23 = smul.u32 24, %s760_s13 }
  0x11   : > { %215 = vmatpush.bf16.msra.mxu0 %v204_v18  ;;  %229 = vmatpush.bf16.msra.mxu1 %v207_v19  ;;  %v293_v29 = vsel %vm202_vm0, %v285_v20, 0  ;;  %v296_v30 = vsel %vm202_vm0, %v286_v21, 0  ;;  %v361_v34 = vsel %vm202_vm0, %v353_v25, 0  ;;  %v364_v35 = vsel %vm202_vm0, %v354_v26, 0  ;;  %v572_v38 = vld [vmem:[%s750_s1 + $0x34] sm:$0xf] }
  0x12   : > { %304 = vmatpush.bf16.msra.mxu2 %v293_v29  ;;  %318 = vmatpush.bf16.msra.mxu3 %v296_v30  ;;  %v258_v37 = vunpack.c.l.b16 %v248_v33  ;;  %v559_v39 = vld [vmem:[%s750_s1 + $0x38] sm:$0xf0]  ;;  %v567_v40 = vld [vmem:[%s670_s14] sm:$0xff]  ;;  %v263_v41 = vshrl.u32 %v575_v32, 16  ;;  %v265_v42 = vshll.u32 %v575_v32, 16  ;;  %vm198_vm1 = vcmask 146432   ;;  %s703_s26 = scalar_lea.vmem %s752_s3, %s582_s23 }
  0x13   : > { %v558_v45 = vor.u32 %v573_v28, %v557_v27  ;;  %v562_v46 = vor.u32 %v572_v38, %v559_v39  ;;  %vm261_vm2 = vsmask.f32 7424  ;;  %v578_v50 = vld [vmem:[%s670_s14] sm:$0xf0]  ;;  %v579_v51 = vld [vmem:[%s670_s14] sm:$0xe] }
  0x14   : > { %v260_v43 = vpack.c.b16 %v258_v37, %v258_v37  ;;  %v267_v44 = vrot.slane %v265_v42, 1  ;;  %v580_v53 = vor.u32 %v579_v51, %v578_v50  ;;  %vm338_vm3 = vcmask 1046528   ;;  %v172_v61 = vld [vmem:[%s751_s2] sm:$0x3] }
  0x15   : > { %216 = vmatpush.bf16.msra.mxu0 %v532_v13  ;;  %230 = vmatpush.bf16.msra.mxu1 %v536_v24  ;;  %vm410_vm4 = vcmask 1043456   ;;  %vm411_vm5 = vcmask 130052   ;;  %v600_v58 = vmov 0   ;;  %vm415_vm7 = vcmask 126980  }
  0x16   : > { %305 = vmatpush.bf16.msra.mxu2 %v545_v31  ;;  %319 = vmatpush.bf16.msra.mxu3 %v549_v36  ;;  %v270_v47 = vshll.u32 %v260_v43, 16  ;;  %v268_v48 = vor.u32 %v267_v44, %v263_v41  ;;  %v339_v54 = vrot.slane %v580_v53, 1  ;;  %v340_v55 = vrot.slane %v260_v43, 1  ;;  %vm707_vm6 = vmor %vm411_vm5, %vm410_vm4 }
  0x17   : > { %413 = vst.msk [vmem:[%s703_s26] sm:$0xff] %vm707_vm6, %v600_v58  ;;  %vm416_vm8 = vmor %vm415_vm7, %vm202_vm0  ;;  %v238_v0 = vperm.slane %v172_v61, 0  ;;  %v239_v1 = vperm.slane %v172_v61, 1  ;;  %vm444_vm11 = vsmask.f32 7938 }
  0x18   : > { %537 = vmatmul.msk.bf16.vlgmr.msra.gmra.mxu0 %vm198_vm1, %v567_v40  ;;  %538 = vmatmul.msk.bf16.vlgmr.msra.gmra.mxu1 %vm198_vm1, %v567_v40  ;;  %v272_v49 = vrot.slane %v270_v47, 1  ;;  %v341_v56 = vsel %vm338_vm3, %v339_v54, %v340_v55  ;;  %414 = vst.msk [vmem:[%s703_s26 + $0x8] sm:$0xff] %vm707_vm6, %v600_v58  ;;  %vm447_vm12 = vsmask.f32 7954  ;;  %vm724_vm13 = vmand %vm410_vm4, %vm444_vm11  ;;  %vm420_vm3 = vsmask.f32 256 }
  0x19   : > { %372 = vmatpush.bf16.msrb.mxu0 %v361_v34  ;;  %386 = vmatpush.bf16.msrb.mxu1 %v364_v35  ;;  %417 = vst.msk [vmem:[%s703_s26 + $0x10] sm:$0x11] %vm416_vm8, %v600_v58  ;;  %vm729_vm14 = vmand %vm411_vm5, %vm447_vm12  ;;  %vm457_vm4 = vsmask.f32 4352  ;;  %vm421_vm5 = vsmask.f32 4368 }
  0x1a   : > { %v273_v52 = vsel %vm261_vm2, %v268_v48, %v272_v49  ;;  %vm449_vm15 = vmor %vm729_vm14, %vm724_vm13 }
  0x1b   : > { %550 = vmatmul.msk.bf16.vlgmr.msra.gmra.mxu2 %vm198_vm1, %v273_v52  ;;  %551 = vmatmul.msk.bf16.vlgmr.msra.gmra.mxu3 %vm198_vm1, %v273_v52  ;;  %vm455_vm8 = vmand %vm202_vm0, %vm420_vm3 }
  0x1d   : > { %373 = vmatpush.bf16.msrb.mxu0 %v558_v45  ;;  %387 = vmatpush.bf16.msrb.mxu1 %v562_v46 }
  0x1e   : > { %v450_v32 = vld [vmem:[%s703_s26] sm:$0xff] }
  0x20   : > { %v460_v43 = vld [vmem:[%s703_s26 + $0x10] sm:$0x11] }
  0x28   : > { %563 = vmatmul.msk.bf16.vlgmr.msrb.gmra.mxu0 %vm198_vm1, %v341_v56  ;;  %564 = vmatmul.msk.bf16.vlgmr.msrb.gmra.mxu1 %vm198_vm1, %v341_v56 }
  0x95   : > { %v218_v59 = vpop.f32.mrf.mxu0  ;;  %v232_v60 = vpop.f32.mrf.mxu1 }
  0x96   : > { %v242_v4 = vadd.f32 %v238_v0, %v218_v59  ;;  %v243_v5 = vadd.f32 %v239_v1, %v232_v60 }
  0x9d   : > { %v220_v62 = vpop.f32.mrf.mxu0  ;;  %v234_v63 = vpop.f32.mrf.mxu1 }
  0x9e   : > { %v307_v2 = vpop.f32.mrf.mxu2  ;;  %v321_v3 = vpop.f32.mrf.mxu3  ;;  %v244_v16 = vadd.f32 %v238_v0, %v220_v62  ;;  %v245_v17 = vadd.f32 %v239_v1, %v234_v63 }
  0x9f   : > { %v326_v6 = vadd.f32 %v307_v2, %v242_v4  ;;  %v327_v7 = vadd.f32 %v321_v3, %v243_v5 }
  0xa5   : > { %v375_v8 = vpop.f32.mrf.mxu0  ;;  %v389_v9 = vpop.f32.mrf.mxu1 }
  0xa6   : > { %v394_v10 = vadd.f32 %v375_v8, %v326_v6  ;;  %v395_v11 = vadd.f32 %v389_v9, %v327_v7  ;;  %v309_v14 = vpop.f32.mrf.mxu2  ;;  %v323_v15 = vpop.f32.mrf.mxu3 }
  0xa7   : > { %v328_v22 = vadd.f32 %v309_v14, %v244_v16  ;;  %v329_v23 = vadd.f32 %v323_v15, %v245_v17 }
  0xa8   : > { %vm398_vm9 = vcmp.gt.f32.partialorder %v394_v10, 0.0  ;;  %v402_v12 = vmul.f32 0.1, %v394_v10  ;;  %vm399_vm10 = vcmp.gt.f32.partialorder %v395_v11, 0.0  ;;  %v403_v13 = vmul.f32 0.1, %v395_v11 }
  0xaa   : > { %v406_v18 = vsel %vm398_vm9, %v394_v10, %v402_v12  ;;  %v407_v19 = vsel %vm399_vm10, %v395_v11, %v403_v13  ;;  %vm458_vm9 = vmand %vm415_vm7, %vm457_vm4 }
  0xab   : > { %v418_v20 = vpack.c.bf16 %v407_v19, %v406_v18  ;;  %vm422_vm10 = vmor %vm420_vm3, %vm421_vm5 }
  0xac   : > { %vm459_vm11 = vmor %vm458_vm9, %vm455_vm8 }
  0xad   : > { %v424_v24 = vshrl.u32 %v418_v20, 16  ;;  %v377_v26 = vpop.f32.mrf.mxu0  ;;  %v391_v27 = vpop.f32.mrf.mxu1  ;;  %v427_v31 = vshll.u32 %v418_v20, 16 }
  0xae   : > { %v396_v28 = vadd.f32 %v377_v26, %v328_v22  ;;  %v397_v29 = vadd.f32 %v391_v27, %v329_v23 }
  0xaf   : > { %v426_v30 = vrot.slane %v424_v24, 7 }
  0xb0   : > { %vm400_vm1 = vcmp.gt.f32.partialorder %v396_v28, 0.0  ;;  %v404_v33 = vmul.f32 0.1, %v396_v28  ;;  %vm401_vm2 = vcmp.gt.f32.partialorder %v397_v29, 0.0  ;;  %v405_v34 = vmul.f32 0.1, %v397_v29 }
  0xb1   : > { %v429_v35 = vor.u32 %v427_v31, %v426_v30  ;;  %v430_v44 = vrot.slane %v426_v30, 4 }
  0xb2   : > { %v408_v36 = vsel %vm400_vm1, %v396_v28, %v404_v33  ;;  %v409_v37 = vsel %vm401_vm2, %v397_v29, %v405_v34 }
  0xb3   : > { %v451_v38 = vsel %vm449_vm15, %v429_v35, %v450_v32  ;;  %v419_v39 = vpack.c.bf16 %v409_v37, %v408_v36 }
  0xb4   : > { %452 = vst [vmem:[%s703_s26] sm:$0xff] %v451_v38 }
  0xb5   : > { %v432_v40 = vshrl.u32 %v419_v39, 16  ;;  %v435_v42 = vshll.u32 %v419_v39, 16 }
  0xb7   : > { %v434_v41 = vrot.slane %v432_v40, 7 }
  0xb9   : > { %v437_v45 = vor.u32 %v435_v42, %v434_v41  ;;  %v439_v46 = vrot.slane %v434_v41, 4 }
  0xbb   : > { %v438_v47 = vsel %vm422_vm10, %v430_v44, %v437_v45  ;;  %v461_v48 = vsel %vm459_vm11, %v439_v46, %v460_v43 }
  0xbc   : > { %453 = vst.msk [vmem:[%s703_s26 + $0x8] sm:$0xff] %vm707_vm6, %v438_v47 }
  0xbd   : > { %462 = vst [vmem:[%s703_s26 + $0x10] sm:$0x11] %v461_v48 }
  0xbe PF: > { %s13_s12 = sadd.s32 1, %s598_s12  }
  0xbf   : > { %p10_p4 = scmp.ge.s32.totalorder %s13_s12, 6  }
  0xc1   :  { %12 = sbr.rel (!%p10_p4) target bundleno = 1 (0x1), region = 64 }

// kernel: tile.58
= control target key start
LH: loop header
LB: loop body
LE: loop exit
PB: predicated region body
PF: predicated region fallthrough
CT: control target
= control target key end

     0   :  { %s22_s0 = inlined_call_operand.vmem [shape: f32[16], index: 0, kind: input, shape index: {}]   ;;  %s23_s1 = inlined_call_operand.vmem [shape: f32[8,16], index: 1, kind: output, shape index: {}]  }
   0x1   :  { %v4_v0 = vld [vmem:[%s22_s0] ss:$0 sm:$0xff] }
   0x2   :  { %5 = vst [vmem:[%s23_s1] sm:$0xff] %v4_v0 }

// kernel: tile.59
= control target key start
LH: loop header
LB: loop body
LE: loop exit
PB: predicated region body
PF: predicated region fallthrough
CT: control target
= control target key end

     0   :  { %s67_s10 = smov 112   ;;  %s68_s11 = smov 80   ;;  %vm3_vm0 = vcmask 130048   ;;  %vm9_vm1 = vcmask 1048448   ;;  %vm15_vm2 = vcmask 917248   ;;  %vm21_vm3 = vcmask 786048   ;;  %s111_s0 = inlined_call_operand.vmem [shape: f32[8,16], index: 0, kind: input, shape index: {}]   ;;  %s112_s1 = inlined_call_operand.vmem [shape: f32[128], index: 1, kind: output, shape index: {}]  }
   0x1   :  { %v53_v0 = vld [vmem:[%s111_s0 + $0x7] sm:$0x1]   ;;  %v55_v1 = vld [vmem:[%s111_s0 + $0x5] sm:$0x1]   ;;  %v57_v2 = vld [vmem:[%s111_s0 + $0x3] sm:$0x1]  }
   0x2   :  { %7 = vrot.lane.b32.xlu0 %v53_v0, %s67_s10  ;;  %19 = vrot.lane.b32.xlu1 %v55_v1, %s68_s11  ;;  %s69_s14 = smov 48   ;;  %v54_v3 = vld [vmem:[%s111_s0 + $0x6] sm:$0x1]   ;;  %v56_v4 = vld [vmem:[%s111_s0 + $0x4] sm:$0x1]   ;;  %s70_s21 = smov 96  }
   0x3   :  { %31 = vrot.lane.b32.xlu2 %v57_v2, %s69_s14  ;;  %v58_v5 = vld [vmem:[%s111_s0 + $0x2] sm:$0x1]   ;;  %s71_s22 = smov 64   ;;  %s72_s23 = smov 32   ;;  %v59_v6 = vld [vmem:[%s111_s0 + $0x1] sm:$0x1]  }
   0x4   :  { %s73_s26 = smov 16   ;;  %v2_v7 = vld [vmem:[%s111_s0] sm:$0x1]   ;;  %vm27_vm4 = vcmask 654848   ;;  %vm33_vm5 = vcmask 523648   ;;  %vm39_vm6 = vcmask 392448  }
   0x5   :  { %4 = vst.msk [vmem:[#allocation0] sm:$0x1] %vm3_vm0, %v2_v7   ;;  %vm45_vm7 = vcmask 261248  }
   0xa   :  { %13 = vrot.lane.b32.xlu0 %v54_v3, %s70_s21  ;;  %25 = vrot.lane.b32.xlu1 %v56_v4, %s71_s22 }
   0xb   :  { %37 = vrot.lane.b32.xlu2 %v58_v5, %s72_s23 }
  0x12   :  { %43 = vrot.lane.b32.xlu0 %v59_v6, %s73_s26 }
  0x5d   :  { %v32_v8 = vpop.permute.xlu2 %31  }
  0x65   :  { %v38_v9 = vpop.permute.xlu2 %37  }
  0x74   :  { %v8_v10 = vpop.permute.xlu0 %7   ;;  %v20_v11 = vpop.permute.xlu1 %19  }
  0x75   :  { %10 = vst.msk [vmem:[#allocation0] sm:$0x1] %vm9_vm1, %v8_v10  }
  0x7c   :  { %v14_v12 = vpop.permute.xlu0 %13   ;;  %v26_v13 = vpop.permute.xlu1 %25  }
  0x7d   :  { %16 = vst.msk [vmem:[#allocation0] sm:$0x1] %vm15_vm2, %v14_v12  }
  0x7e   :  { %22 = vst.msk [vmem:[#allocation0] sm:$0x1] %vm21_vm3, %v20_v11  }
  0x7f   :  { %28 = vst.msk [vmem:[#allocation0] sm:$0x1] %vm27_vm4, %v26_v13  }
  0x80   :  { %34 = vst.msk [vmem:[#allocation0] sm:$0x1] %vm33_vm5, %v32_v8  }
  0x81   :  { %40 = vst.msk [vmem:[#allocation0] sm:$0x1] %vm39_vm6, %v38_v9  }
  0x84   :  { %v44_v14 = vpop.permute.xlu0 %43  }
  0x85   :  { %46 = vst.msk [vmem:[#allocation0] sm:$0x1] %vm45_vm7, %v44_v14  }
  0x8c   :  { %v49_v15 = vld [vmem:[#allocation0] sm:$0x1] }
  0x8d   :  { %52 = vst [vmem:[%s112_s1] sm:$0x1] %v49_v15 }

// kernel: siamese_forward.9
= control target key start
LH: loop header
LB: loop body
LE: loop exit
PB: predicated region body
PF: predicated region fallthrough
CT: control target
= control target key end

     0   :  { %s1241_s15 = smov 0   ;;  %s1651_s0 = inlined_call_operand.vmem [shape: bf16[4,9,144], index: 0, kind: input, shape index: {}]   ;;  %s1652_s1 = inlined_call_operand.vmem [shape: bf16[4,9,144], index: 1, kind: input, shape index: {}]   ;;  %s1653_s2 = inlined_call_operand.vmem [shape: bf16[3,144,160], index: 2, kind: input, shape index: {}]   ;;  %s1654_s3 = inlined_call_operand.vmem [shape: f32[1,160], index: 3, kind: input, shape index: {}]   ;;  %s1655_s4 = inlined_call_operand.vmem [shape: bf16[4,10,160], index: 4, kind: output, shape index: {}]  }
   0x1 LB: > { %s870_s16 = sadd.s32 4294967295, %s1213_s15   ;;  %p874_p0 = scmp.ge.s32.totalorder %s1213_s15, 1  ;;  %s1213_s15 = sphi %s1241_s15, %s14_s15  }
   0x2   : > { %p172_p1 = scmp.lt.s32.totalorder %s1213_s15, 5 }
   0x4   : > { %p173_p2 = pnand %p874_p0, %p172_p1 }
   0x5   : > { %p203_p3 = scmp.lt.s32.totalorder (!%p173_p2), %s870_s16, 3 }
   0x6   : > { %176 = sbr.rel (%p173_p2) target bundleno = 228 (0xe4), region = 36 }
   0xb   : > { %v939_v0 = vld [vmem:[%s1653_s2 + $0x70] sm:$0xf]  ;;  %v1159_v1 = vld [vmem:[%s1653_s2 + $0x74] sm:$0xf0]  ;;  %v947_v2 = vld [vmem:[%s1653_s2 + $0x80] sm:$0xf] }
   0xc   : > { %v940_v3 = vor.u32 %v1159_v1, %v939_v0  ;;  %v1161_v4 = vld [vmem:[%s1653_s2 + $0x84] sm:$0xf0]  ;;  %v1158_v5 = vld [vmem:[%s1653_s2 + $0x74] sm:$0xf]  ;;  %v941_v6 = vld [vmem:[%s1653_s2 + $0x78] sm:$0xf0] }
   0xd   : > { %v948_v7 = vor.u32 %v1161_v4, %v947_v2  ;;  %v944_v8 = vor.u32 %v1158_v5, %v941_v6  ;;  %v1031_v9 = vld [vmem:[%s1653_s2 + $0x100] sm:$0xf]  ;;  %v1177_v10 = vld [vmem:[%s1653_s2 + $0x104] sm:$0xf0]  ;;  %v1156_v14 = vld [vmem:[%s1653_s2 + $0x64] sm:$0xf] }
   0xe   : > { %v931_v11 = vld [vmem:[%s1653_s2 + $0x60] sm:$0xf]  ;;  %341 = vmatpush.bf16.msra.mxu0 %v940_v3  ;;  %v1032_v12 = vor.u32 %v1177_v10, %v1031_v9  ;;  %v1157_v13 = vld [vmem:[%s1653_s2 + $0x64] sm:$0xf0]  ;;  %v933_v15 = vld [vmem:[%s1653_s2 + $0x68] sm:$0xf0] }
   0xf   : > { %361 = vmatpush.bf16.msra.mxu1 %v948_v7  ;;  %367 = vmatpush.bf16.msra.mxu2 %v944_v8  ;;  %v932_v16 = vor.u32 %v1157_v13, %v931_v11  ;;  %v936_v17 = vor.u32 %v1156_v14, %v933_v15  ;;  %v1160_v18 = vld [vmem:[%s1653_s2 + $0x84] sm:$0xf]  ;;  %v949_v19 = vld [vmem:[%s1653_s2 + $0x88] sm:$0xf0]  ;;  %v1023_v20 = vld [vmem:[%s1653_s2 + $0xf0] sm:$0xf] }
  0x10   : > { %v952_v21 = vor.u32 %v1160_v18, %v949_v19  ;;  %v1175_v22 = vld [vmem:[%s1653_s2 + $0xf4] sm:$0xf0]  ;;  %v923_v23 = vld [vmem:[%s1653_s2 + $0x50] sm:$0xf]  ;;  %v1154_v26 = vld [vmem:[%s1653_s2 + $0x54] sm:$0xf] }
  0x11   : > { %v1155_v24 = vld [vmem:[%s1653_s2 + $0x54] sm:$0xf0]  ;;  %v1024_v25 = vor.u32 %v1175_v22, %v1023_v20  ;;  %v925_v27 = vld [vmem:[%s1653_s2 + $0x58] sm:$0xf0]  ;;  %v1039_v29 = vld [vmem:[%s1653_s2 + $0x110] sm:$0xf] }
  0x12   : > { %342 = vmatpush.bf16.msra.mxu0 %v932_v16  ;;  %387 = vmatpush.bf16.msra.mxu3 %v952_v21  ;;  %v924_v28 = vor.u32 %v1155_v24, %v923_v23  ;;  %v1179_v30 = vld [vmem:[%s1653_s2 + $0x114] sm:$0xf0]  ;;  %v1015_v31 = vld [vmem:[%s1653_s2 + $0xe0] sm:$0xf]  ;;  %v928_v32 = vor.u32 %v1154_v26, %v925_v27  ;;  %s1659_s16 = smov (!%p203_p3, %s870_s16), 3  ;;  %vm337_vm0 = vcmask 130048  }
  0x13   : > { %518 = vmatpush.bf16.msrb.mxu1 %v1032_v12  ;;  %368 = vmatpush.bf16.msra.mxu2 %v936_v17  ;;  %v1040_v33 = vor.u32 %v1179_v30, %v1039_v29  ;;  %v1173_v34 = vld [vmem:[%s1653_s2 + $0xe4] sm:$0xf0]  ;;  %v1176_v36 = vld [vmem:[%s1653_s2 + $0x104] sm:$0xf]  ;;  %v915_v37 = vld [vmem:[%s1653_s2 + $0x40] sm:$0xf] }
  0x14   : > { %v1016_v35 = vor.u32 %v1173_v34, %v1015_v31  ;;  %v1153_v38 = vld [vmem:[%s1653_s2 + $0x44] sm:$0xf0]  ;;  %s1334_s23 = sshll.u32 %s1659_s16, 4  ;;  %v1152_v39 = vld [vmem:[%s1653_s2 + $0x44] sm:$0xf]  ;;  %vm764_vm1 = vcmask 1043456  }
  0x15   : > { %v917_v40 = vld [vmem:[%s1653_s2 + $0x48] sm:$0xf0]  ;;  %s1346_s30 = scalar_lea.vmem %s1651_s0, %s1334_s23  ;;  %v916_v42 = vor.u32 %v1153_v38, %v915_v37  ;;  %v1007_v43 = vld [vmem:[%s1653_s2 + $0xd0] sm:$0xf]  ;;  %v1171_v44 = vld [vmem:[%s1653_s2 + $0xd4] sm:$0xf0]  ;;  %s212_s24 = scalar_lea.vmem %s1652_s1, %s1334_s23 }
  0x16   : > { %538 = vmatpush.bf16.msrb.mxu3 %v1040_v33  ;;  %343 = vmatpush.bf16.msra.mxu0 %v924_v28  ;;  %v1033_v41 = vld [vmem:[%s1653_s2 + $0x108] sm:$0xf0]  ;;  %v1358_v45 = vld [vmem:[%s1346_s30] sm:$0xff]  ;;  %v920_v46 = vor.u32 %v1152_v39, %v917_v40  ;;  %v907_v48 = vld [vmem:[%s1653_s2 + $0x30] sm:$0xf]  ;;  %v1008_v52 = vor.u32 %v1171_v44, %v1007_v43  ;;  %s1623_s29 = scalar_lea.vmem %s1655_s4, %s1334_s23  ;;  %vm765_vm2 = vcmask 261124  }
  0x17   : > { %519 = vmatpush.bf16.msrb.mxu1 %v1024_v25  ;;  %369 = vmatpush.bf16.msra.mxu2 %v928_v32  ;;  %v1361_v47 = vunpack.c.h.b16 %v1358_v45  ;;  %v1151_v49 = vld [vmem:[%s1653_s2 + $0x34] sm:$0xf0]  ;;  %v1150_v50 = vld [vmem:[%s1653_s2 + $0x34] sm:$0xf]  ;;  %v1036_v51 = vor.u32 %v1176_v36, %v1033_v41  ;;  %v909_v54 = vld [vmem:[%s1653_s2 + $0x38] sm:$0xf0]  ;;  %v1480_v38 = vunpack.c.l.b16 %v1358_v45 }
  0x18   : > { %v1174_v53 = vld [vmem:[%s1653_s2 + $0xf4] sm:$0xf]  ;;  %v1025_v56 = vld [vmem:[%s1653_s2 + $0xf8] sm:$0xf0]  ;;  %v908_v57 = vor.u32 %v1151_v49, %v907_v48  ;;  %v999_v58 = vld [vmem:[%s1653_s2 + $0xc0] sm:$0xf]  ;;  %v912_v60 = vor.u32 %v1150_v50, %v909_v54 }
  0x19   : > { %v245_v55 = vpack.c.b16 %v1361_v47, %v1361_v47  ;;  %v1169_v59 = vld [vmem:[%s1653_s2 + $0xc4] sm:$0xf0]  ;;  %v899_v61 = vld [vmem:[%s1653_s2 + $0x20] sm:$0xf]  ;;  %v1148_v63 = vld [vmem:[%s1653_s2 + $0x24] sm:$0xf]  ;;  %v1028_v1 = vor.u32 %v1174_v53, %v1025_v56  ;;  %v244_v56 = vpack.c.b16 %v1480_v38, %v1480_v38 }
  0x1a   : > { %344 = vmatpush.bf16.msra.mxu0 %v916_v42  ;;  %v1149_v62 = vld [vmem:[%s1653_s2 + $0x24] sm:$0xf0]  ;;  %v901_v0 = vld [vmem:[%s1653_s2 + $0x28] sm:$0xf0]  ;;  %v1000_v2 = vor.u32 %v1169_v59, %v999_v58  ;;  %v1172_v3 = vld [vmem:[%s1653_s2 + $0xe4] sm:$0xf] }
  0x1b   : > { %520 = vmatpush.bf16.msrb.mxu1 %v1016_v35  ;;  %370 = vmatpush.bf16.msra.mxu2 %v920_v46  ;;  %v1017_v4 = vld [vmem:[%s1653_s2 + $0xe8] sm:$0xf0]  ;;  %v900_v5 = vor.u32 %v1149_v62, %v899_v61  ;;  %v991_v6 = vld [vmem:[%s1653_s2 + $0xb0] sm:$0xf]  ;;  %v1167_v7 = vld [vmem:[%s1653_s2 + $0xb4] sm:$0xf0]  ;;  %v904_v8 = vor.u32 %v1148_v63, %v901_v0 }
  0x1c   : > { %954 = vmatmul.msk.bf16.vlgmr.msra.gmra.mxu3 %vm337_vm0, %v245_v55  ;;  %953 = vmatmul.msk.bf16.vlgmr.msra.gmra.mxu1 %vm337_vm0, %v245_v55  ;;  %v891_v9 = vld [vmem:[%s1653_s2 + $0x10] sm:$0xf]  ;;  %v1147_v10 = vld [vmem:[%s1653_s2 + $0x14] sm:$0xf0]  ;;  %v1146_v11 = vld [vmem:[%s1653_s2 + $0x14] sm:$0xf]  ;;  %v1020_v13 = vor.u32 %v1172_v3, %v1017_v4  ;;  %v992_v14 = vor.u32 %v1167_v7, %v991_v6 }
  0x1d   : > { %544 = vmatpush.bf16.msra.mxu3 %v1036_v51  ;;  %v893_v12 = vld [vmem:[%s1653_s2 + $0x18] sm:$0xf0]  ;;  %v1170_v15 = vld [vmem:[%s1653_s2 + $0xd4] sm:$0xf]  ;;  %v220_v16 = vld [vmem:[%s212_s24] sm:$0xff]  ;;  %v892_v18 = vor.u32 %v1147_v10, %v891_v9  ;;  %vm768_vm3 = vcmask 1040384  }
  0x1e   : > { %345 = vmatpush.bf16.msra.mxu0 %v908_v57  ;;  %v1009_v17 = vld [vmem:[%s1653_s2 + $0xd8] sm:$0xf0]  ;;  %v983_v19 = vld [vmem:[%s1653_s2 + $0xa0] sm:$0xf]  ;;  %v1165_v20 = vld [vmem:[%s1653_s2 + $0xa4] sm:$0xf0]  ;;  %v896_v21 = vor.u32 %v1146_v11, %v893_v12  ;;  %v421_v25 = vunpack.c.h.b16 %v220_v16  ;;  %v420_v44 = vunpack.c.l.b16 %v220_v16 }
  0x1f   : > { %521 = vmatpush.bf16.msrb.mxu1 %v1008_v52  ;;  %371 = vmatpush.bf16.msra.mxu2 %v912_v60  ;;  %v883_v22 = vld [vmem:[%s1653_s2] sm:$0xf]  ;;  %v1145_v23 = vld [vmem:[%s1653_s2 + $0x4] sm:$0xf0]  ;;  %v1144_v24 = vld [vmem:[%s1653_s2 + $0x4] sm:$0xf]  ;;  %v1012_v29 = vor.u32 %v1170_v15, %v1009_v17  ;;  %v984_v30 = vor.u32 %v1165_v20, %v983_v19 }
  0x20   : > { %v885_v26 = vld [vmem:[%s1653_s2 + $0x8] sm:$0xf0]  ;;  %v1194_v27 = vld [vmem:[%s1653_s2 + $0x194] sm:$0xf]  ;;  %v1125_v28 = vld [vmem:[%s1653_s2 + $0x198] sm:$0xf0]  ;;  %v884_v35 = vor.u32 %v1145_v23, %v883_v22  ;;  %v1485_v42 = vpack.c.b16 %v421_v25, %v421_v25  ;;  %v422_v60 = vpack.c.b16 %v420_v44, %v420_v44 }
  0x21   : > { %545 = vmatpush.bf16.msra.mxu3 %v1028_v1  ;;  %v1168_v31 = vld [vmem:[%s1653_s2 + $0xc4] sm:$0xf]  ;;  %v1123_v32 = vld [vmem:[%s1653_s2 + $0x190] sm:$0xf]  ;;  %v1195_v33 = vld [vmem:[%s1653_s2 + $0x194] sm:$0xf0]  ;;  %v888_v39 = vor.u32 %v1144_v24, %v885_v26  ;;  %v1128_v40 = vor.u32 %v1194_v27, %v1125_v28 }
  0x22   : > { %346 = vmatpush.bf16.msra.mxu0 %v900_v5  ;;  %v1001_v34 = vld [vmem:[%s1653_s2 + $0xc8] sm:$0xf0]  ;;  %v975_v36 = vld [vmem:[%s1653_s2 + $0x90] sm:$0xf]  ;;  %v1163_v37 = vld [vmem:[%s1653_s2 + $0x94] sm:$0xf0]  ;;  %v1124_v43 = vor.u32 %v1195_v33, %v1123_v32 }
  0x23   : > { %522 = vmatpush.bf16.msrb.mxu1 %v1000_v2  ;;  %372 = vmatpush.bf16.msra.mxu2 %v904_v8  ;;  %v1192_v41 = vld [vmem:[%s1653_s2 + $0x184] sm:$0xf]  ;;  %v1117_v46 = vld [vmem:[%s1653_s2 + $0x188] sm:$0xf0]  ;;  %v1131_v45 = vld [vmem:[%s1653_s2 + $0x1a0] sm:$0xf]  ;;  %v1004_v50 = vor.u32 %v1168_v31, %v1001_v34  ;;  %v976_v51 = vor.u32 %v1163_v37, %v975_v36 }
  0x24   : > { %v1197_v48 = vld [vmem:[%s1653_s2 + $0x1a4] sm:$0xf0]  ;;  %v1115_v52 = vld [vmem:[%s1653_s2 + $0x180] sm:$0xf]  ;;  %v1166_v54 = vld [vmem:[%s1653_s2 + $0xb4] sm:$0xf]  ;;  %v1120_v57 = vor.u32 %v1192_v41, %v1117_v46 }
  0x25   : > { %546 = vmatpush.bf16.msra.mxu3 %v1020_v13  ;;  %v1497_v49 = vld [vmem:[%s1346_s30 + $0x8] sm:$0x11]  ;;  %v993_v55 = vld [vmem:[%s1653_s2 + $0xb8] sm:$0xf0]  ;;  %v1132_v58 = vor.u32 %v1197_v48, %v1131_v45  ;;  %v1190_v62 = vld [vmem:[%s1653_s2 + $0x174] sm:$0xf] }
  0x26   : > { %347 = vmatpush.bf16.msra.mxu0 %v892_v18  ;;  %v1193_v53 = vld [vmem:[%s1653_s2 + $0x184] sm:$0xf0]  ;;  %v593_v59 = vunpack.c.h.b16 %v1497_v49  ;;  %v1109_v63 = vld [vmem:[%s1653_s2 + $0x178] sm:$0xf0]  ;;  %v996_v0 = vor.u32 %v1166_v54, %v993_v55  ;;  %v1164_v1 = vld [vmem:[%s1653_s2 + $0xa4] sm:$0xf]  ;;  %v592_v27 = vunpack.c.l.b16 %v1497_v49 }
  0x27   : > { %523 = vmatpush.bf16.msrb.mxu1 %v992_v14  ;;  %373 = vmatpush.bf16.msra.mxu2 %v896_v21  ;;  %v1116_v61 = vor.u32 %v1193_v53, %v1115_v52  ;;  %v1107_v2 = vld [vmem:[%s1653_s2 + $0x170] sm:$0xf]  ;;  %v1191_v3 = vld [vmem:[%s1653_s2 + $0x174] sm:$0xf0]  ;;  %v985_v4 = vld [vmem:[%s1653_s2 + $0xa8] sm:$0xf0]  ;;  %v1112_v7 = vor.u32 %v1190_v62, %v1109_v63 }
  0x28   : > { %v1196_v5 = vld [vmem:[%s1653_s2 + $0x1a4] sm:$0xf]  ;;  %v1133_v6 = vld [vmem:[%s1653_s2 + $0x1a8] sm:$0xf0]  ;;  %v595_v9 = vpack.c.b16 %v593_v59, %v1361_v47  ;;  %v1108_v10 = vor.u32 %v1191_v3, %v1107_v2  ;;  %v988_v13 = vor.u32 %v1164_v1, %v985_v4  ;;  %v1099_v14 = vld [vmem:[%s1653_s2 + $0x160] sm:$0xf]  ;;  %v594_v37 = vpack.c.b16 %v592_v27, %v1480_v38 }
  0x29   : > { %547 = vmatpush.bf16.msra.mxu3 %v1012_v29  ;;  %v1136_v8 = vor.u32 %v1196_v5, %v1133_v6  ;;  %v1188_v11 = vld [vmem:[%s1653_s2 + $0x164] sm:$0xf]  ;;  %v1101_v12 = vld [vmem:[%s1653_s2 + $0x168] sm:$0xf0]  ;;  %v1189_v47 = vld [vmem:[%s1653_s2 + $0x164] sm:$0xf0] }
  0x2a   : > { %348 = vmatpush.bf16.msra.mxu0 %v884_v35  ;;  %v1162_v15 = vld [vmem:[%s1653_s2 + $0x94] sm:$0xf]  ;;  %v977_v16 = vld [vmem:[%s1653_s2 + $0x98] sm:$0xf0]  ;;  %v1104_v17 = vor.u32 %v1188_v11, %v1101_v12  ;;  %v606_v20 = vshll.u32 %v595_v9, 16  ;;  %v1100_v21 = vor.u32 %v1189_v47, %v1099_v14  ;;  %v599_v45 = vshll.u32 %v594_v37, 16  ;;  %vm766_vm4 = vmor %vm765_vm2, %vm764_vm1 }
  0x2b   : > { %524 = vmatpush.bf16.msrb.mxu1 %v984_v30  ;;  %374 = vmatpush.bf16.msra.mxu2 %v888_v39  ;;  %v1178_v18 = vld [vmem:[%s1653_s2 + $0x114] sm:$0xf]  ;;  %v1041_v19 = vld [vmem:[%s1653_s2 + $0x118] sm:$0xf0]  ;;  %v980_v24 = vor.u32 %v1162_v15, %v977_v16  ;;  %v1091_v25 = vld [vmem:[%s1653_s2 + $0x150] sm:$0xf] }
  0x2c   : > { %1045 = vmatmul.msk.bf16.vlgmr.msrb.gmra.mxu3 %vm337_vm0, %v1485_v42  ;;  %v1186_v22 = vld [vmem:[%s1653_s2 + $0x154] sm:$0xf]  ;;  %v1093_v23 = vld [vmem:[%s1653_s2 + $0x158] sm:$0xf0]  ;;  %v1187_v26 = vld [vmem:[%s1653_s2 + $0x154] sm:$0xf0]  ;;  %v1044_v28 = vor.u32 %v1178_v18, %v1041_v19 }
  0x2d   : > { %548 = vmatpush.bf16.msra.mxu3 %v1004_v50  ;;  %349 = vmatmul.bf16.vlgmr.msra.gmra.mxu0 %v244_v56  ;;  %v1096_v29 = vor.u32 %v1186_v22, %v1093_v23  ;;  %v604_v30 = vshrl.u32 %v595_v9, 16  ;;  %v608_v31 = vrot.slane %v606_v20, 1  ;;  %v1092_v32 = vor.u32 %v1187_v26, %v1091_v25  ;;  %v1184_v33 = vld [vmem:[%s1653_s2 + $0x144] sm:$0xf]  ;;  %v1085_v34 = vld [vmem:[%s1653_s2 + $0x148] sm:$0xf0] }
  0x2e   : > { %730 = vmatpush.bf16.msrb.mxu0 %v1128_v40  ;;  %375 = vmatmul.bf16.vlgmr.msra.gmra.mxu2 %v244_v56  ;;  %v1083_v35 = vld [vmem:[%s1653_s2 + $0x140] sm:$0xf]  ;;  %v1185_v36 = vld [vmem:[%s1653_s2 + $0x144] sm:$0xf0]  ;;  %v1088_v39 = vor.u32 %v1184_v33, %v1085_v34  ;;  %v1077_v44 = vld [vmem:[%s1653_s2 + $0x138] sm:$0xf0] }
  0x2f   : > { %704 = vmatpush.bf16.msrb.mxu2 %v1124_v43  ;;  %525 = vmatpush.bf16.msrb.mxu1 %v976_v51  ;;  %v609_v40 = vor.u32 %v608_v31, %v604_v30  ;;  %v1084_v41 = vor.u32 %v1185_v36, %v1083_v35  ;;  %v1182_v43 = vld [vmem:[%s1653_s2 + $0x134] sm:$0xf]  ;;  %v1075_v46 = vld [vmem:[%s1653_s2 + $0x130] sm:$0xf]  ;;  %v1183_v38 = vld [vmem:[%s1653_s2 + $0x134] sm:$0xf0] }
  0x30   : > { %v1080_v48 = vor.u32 %v1182_v43, %v1077_v44  ;;  %v1076_v49 = vor.u32 %v1183_v38, %v1075_v46  ;;  %v1180_v50 = vld [vmem:[%s1653_s2 + $0x124] sm:$0xf]  ;;  %v1069_v51 = vld [vmem:[%s1653_s2 + $0x128] sm:$0xf0]  ;;  %v1067_v52 = vld [vmem:[%s1653_s2 + $0x120] sm:$0xf] }
  0x31   : > { %549 = vmatpush.bf16.msra.mxu3 %v996_v0  ;;  %v1181_v53 = vld [vmem:[%s1653_s2 + $0x124] sm:$0xf0]  ;;  %v597_v54 = vshrl.u32 %v594_v37, 16  ;;  %v601_v55 = vrot.slane %v599_v45, 1  ;;  %v1072_v56 = vor.u32 %v1180_v50, %v1069_v51  ;;  %vm769_vm5 = vcmask 258052  }
  0x32   : > { %731 = vmatpush.bf16.msrb.mxu0 %v1120_v57  ;;  %526 = vmatmul.bf16.vlgmr.msrb.gmra.mxu1 %v422_v60  ;;  %v1068_v57 = vor.u32 %v1181_v53, %v1067_v52  ;;  %v1215_v6 = vmov 0   ;;  %vm770_vm6 = vmor %vm769_vm5, %vm768_vm3  ;;  %v222_v9 = vld [vmem:[%s1654_s3] sm:$0x3]  ;;  %vm784_vm8 = vsmask.f32 7938 }
  0x33   : > { %724 = vmatpush.bf16.msra.mxu1 %v1132_v58  ;;  %705 = vmatpush.bf16.msrb.mxu2 %v1116_v61  ;;  %v602_v58 = vor.u32 %v601_v55, %v597_v54  ;;  %767 = vst.msk [vmem:[%s1623_s29] sm:$0xff] %vm766_vm4, %v1215_v6  ;;  %v394_v12 = vperm.slane %v222_v9, 0  ;;  %vm787_vm10 = vsmask.f32 7954  ;;  %vm794_vm11 = vsmask.f32 256  ;;  %vm1635_vm12 = vmand %vm764_vm1, %vm784_vm8 }
  0x34   : > { %771 = vst.msk [vmem:[%s1623_s29 + $0x8] sm:$0x11] %vm770_vm6, %v1215_v6  ;;  %vm797_vm13 = vsmask.f32 4352  ;;  %vm788_vm14 = vmand %vm765_vm2, %vm787_vm10 }
  0x35   : > { %550 = vmatpush.bf16.msra.mxu3 %v988_v13  ;;  %vm795_vm15 = vmand %vm768_vm3, %vm794_vm11 }
  0x36   : > { %732 = vmatpush.bf16.msrb.mxu0 %v1112_v7  ;;  %vm789_vm4 = vmor %vm788_vm14, %vm1635_vm12 }
  0x37   : > { %750 = vmatpush.bf16.msrb.mxu1 %v1136_v8  ;;  %706 = vmatpush.bf16.msrb.mxu2 %v1108_v10 }
  0x39   : > { %551 = vmatpush.bf16.msra.mxu3 %v980_v24 }
  0x3a   : > { %733 = vmatpush.bf16.msrb.mxu0 %v1104_v17  ;;  %v395_v17 = vperm.slane %v222_v9, 1  ;;  %v790_v44 = vld [vmem:[%s1623_s29] sm:$0xff] }
  0x3b   : > { %707 = vmatpush.bf16.msrb.mxu2 %v1100_v21  ;;  %v800_v46 = vld [vmem:[%s1623_s29 + $0x8] sm:$0x11] }
  0x3c   : > { %552 = vmatmul.bf16.vlgmr.msra.gmra.mxu3 %v422_v60 }
  0x3d   : > { %564 = vmatpush.bf16.msrb.mxu3 %v1044_v28 }
  0x3e   : > { %734 = vmatpush.bf16.msrb.mxu0 %v1096_v29 }
  0x3f   : > { %708 = vmatpush.bf16.msrb.mxu2 %v1092_v32 }
  0x42   : > { %735 = vmatpush.bf16.msrb.mxu0 %v1088_v39  ;;  %1137 = vmatmul.msk.bf16.vlgmr.msra.gmra.mxu1 %vm337_vm0, %v609_v40 }
  0x43   : > { %709 = vmatpush.bf16.msrb.mxu2 %v1084_v41 }
  0x46   : > { %736 = vmatpush.bf16.msrb.mxu0 %v1080_v48 }
  0x47   : > { %710 = vmatpush.bf16.msrb.mxu2 %v1076_v49 }
  0x4a   : > { %737 = vmatpush.bf16.msrb.mxu0 %v1072_v56 }
  0x4b   : > { %711 = vmatpush.bf16.msrb.mxu2 %v1068_v57 }
  0x4c   : > { %1046 = vmatmul.msk.bf16.vlgmr.msrb.gmra.mxu3 %vm337_vm0, %v1485_v42 }
  0x4d   : > { %738 = vmatmul.bf16.vlgmr.msrb.gmra.mxu0 %v602_v58 }
  0x4e   : > { %712 = vmatmul.bf16.vlgmr.msrb.gmra.mxu2 %v602_v58 }
  0x52   : > { %1138 = vmatmul.msk.bf16.vlgmr.msrb.gmra.mxu1 %vm337_vm0, %v609_v40  ;;  %vm798_vm0 = vmand %vm769_vm5, %vm797_vm13 }
  0x53   : > { %vm799_vm1 = vmor %vm798_vm0, %vm795_vm15 }
  0x99   : > { %v363_v59 = vpop.f32.mrf.mxu1 }
  0x9f   : > { %v389_v60 = vpop.f32.mrf.mxu3 }
  0xa1   : > { %v365_v61 = vpop.f32.mrf.mxu1 }
  0xa7   : > { %v391_v62 = vpop.f32.mrf.mxu3 }
  0xaa   : > { %v350_v63 = vpop.f32.mrf.mxu0 }
  0xab   : > { %v364_v11 = vadd.f32 %v363_v59, %v350_v63 }
  0xad   : > { %v398_v47 = vadd.f32 %v394_v12, %v364_v11 }
  0xaf   : > { %v527_v0 = vpop.f32.mrf.mxu1  ;;  %v540_v1 = vpop.f32.mrf.mxu3 }
  0xb0   : > { %v541_v15 = vadd.f32 %v540_v1, %v527_v0 }
  0xb1   : > { %v376_v2 = vpop.f32.mrf.mxu2 }
  0xb2   : > { %v352_v3 = vpop.f32.mrf.mxu0  ;;  %v390_v16 = vadd.f32 %v389_v60, %v376_v2  ;;  %v570_v20 = vadd.f32 %v541_v15, %v398_v47 }
  0xb4   : > { %v399_v24 = vadd.f32 %v395_v17, %v390_v16 }
  0xb7   : > { %v529_v4 = vpop.f32.mrf.mxu1  ;;  %v542_v42 = vpop.f32.mrf.mxu3 }
  0xb9   : > { %v378_v5 = vpop.f32.mrf.mxu2 }
  0xbf   : > { %v726_v7 = vpop.f32.mrf.mxu1  ;;  %v553_v8 = vpop.f32.mrf.mxu3 }
  0xc7   : > { %v728_v10 = vpop.f32.mrf.mxu1  ;;  %v555_v13 = vpop.f32.mrf.mxu3 }
  0xca   : > { %v739_v14 = vpop.f32.mrf.mxu0 }
  0xcf   : > { %v752_v18 = vpop.f32.mrf.mxu1  ;;  %v566_v21 = vpop.f32.mrf.mxu3 }
  0xd0   : > { %v567_v25 = vadd.f32 %v566_v21, %v553_v8  ;;  %v753_v26 = vadd.f32 %v752_v18, %v739_v14 }
  0xd1   : > { %v713_v19 = vpop.f32.mrf.mxu2 }
  0xd2   : > { %v727_v22 = vadd.f32 %v726_v7, %v713_v19  ;;  %v741_v23 = vpop.f32.mrf.mxu0  ;;  %v571_v28 = vadd.f32 %v567_v25, %v399_v24 }
  0xd4   : > { %v756_v27 = vadd.f32 %v727_v22, %v570_v20  ;;  %v757_v30 = vadd.f32 %v753_v26, %v571_v28 }
  0xd6   : > { %vm758_vm7 = vcmp.gt.f32.partialorder %v756_v27, 0.0  ;;  %v760_v29 = vmul.f32 0.1, %v756_v27  ;;  %vm759_vm9 = vcmp.gt.f32.partialorder %v757_v30, 0.0  ;;  %v761_v32 = vmul.f32 0.1, %v757_v30 }
  0xd7   : > { %v754_v31 = vpop.f32.mrf.mxu1  ;;  %v568_v35 = vpop.f32.mrf.mxu3 }
  0xd8   : > { %v762_v33 = vsel %vm758_vm7, %v756_v27, %v760_v29  ;;  %v763_v36 = vsel %vm759_vm9, %v757_v30, %v761_v32 }
  0xd9   : > { %v715_v34 = vpop.f32.mrf.mxu2  ;;  %v772_v39 = vpack.c.bf16 %v763_v36, %v762_v33 }
  0xdb   : > { %v774_v40 = vshrl.u32 %v772_v39, 16  ;;  %v777_v43 = vshll.u32 %v772_v39, 16 }
  0xdd   : > { %v776_v41 = vrot.slane %v774_v40, 7 }
  0xdf   : > { %v779_v38 = vor.u32 %v777_v43, %v776_v41  ;;  %v780_v45 = vrot.slane %v776_v41, 4 }
  0xe1   : > { %v791_v48 = vsel %vm789_vm4, %v779_v38, %v790_v44  ;;  %v801_v49 = vsel %vm799_vm1, %v780_v45, %v800_v46 }
  0xe2   : > { %792 = vst [vmem:[%s1623_s29] sm:$0xff] %v791_v48 }
  0xe3   : > { %802 = vst [vmem:[%s1623_s29 + $0x8] sm:$0x11] %v801_v49 }
  0xe4 PF: > { %s14_s15 = sadd.s32 1, %s1213_s15  }
  0xe5   : > { %p11_p4 = scmp.ge.s32.totalorder %s14_s15, 6  }
  0xe7   :  { %13 = sbr.rel (!%p11_p4) target bundleno = 1 (0x1), region = 71 }

// kernel: tile.63
= control target key start
LH: loop header
LB: loop body
LE: loop exit
PB: predicated region body
PF: predicated region fallthrough
CT: control target
= control target key end

     0   :  { %s22_s0 = inlined_call_operand.vmem [shape: f32[8], index: 0, kind: input, shape index: {}]   ;;  %s23_s1 = inlined_call_operand.vmem [shape: f32[8,8], index: 1, kind: output, shape index: {}]  }
   0x1   :  { %v4_v0 = vld [vmem:[%s22_s0] ss:$0 sm:$0xff] }
   0x2   :  { %5 = vst [vmem:[%s23_s1] sm:$0xff] %v4_v0 }

// kernel: tile.64
= control target key start
LH: loop header
LB: loop body
LE: loop exit
PB: predicated region body
PF: predicated region fallthrough
CT: control target
= control target key end

     0   :  { %s67_s10 = smov 56   ;;  %s68_s11 = smov 40   ;;  %vm3_vm0 = vcmask 64512   ;;  %vm9_vm1 = vcmask 523712   ;;  %vm15_vm2 = vcmask 458112   ;;  %vm21_vm3 = vcmask 392512   ;;  %s111_s0 = inlined_call_operand.vmem [shape: f32[8,8], index: 0, kind: input, shape index: {}]   ;;  %s112_s1 = inlined_call_operand.vmem [shape: f32[64], index: 1, kind: output, shape index: {}]  }
   0x1   :  { %v53_v0 = vld [vmem:[%s111_s0 + $0x7] sm:$0x1]   ;;  %v55_v1 = vld [vmem:[%s111_s0 + $0x5] sm:$0x1]   ;;  %v57_v2 = vld [vmem:[%s111_s0 + $0x3] sm:$0x1]  }
   0x2   :  { %7 = vrot.lane.b32.xlu0 %v53_v0, %s67_s10  ;;  %19 = vrot.lane.b32.xlu1 %v55_v1, %s68_s11  ;;  %s69_s14 = smov 24   ;;  %v54_v3 = vld [vmem:[%s111_s0 + $0x6] sm:$0x1]   ;;  %v56_v4 = vld [vmem:[%s111_s0 + $0x4] sm:$0x1]   ;;  %s70_s21 = smov 48  }
   0x3   :  { %31 = vrot.lane.b32.xlu2 %v57_v2, %s69_s14  ;;  %v58_v5 = vld [vmem:[%s111_s0 + $0x2] sm:$0x1]   ;;  %s71_s22 = smov 32   ;;  %s72_s23 = smov 16   ;;  %v59_v6 = vld [vmem:[%s111_s0 + $0x1] sm:$0x1]  }
   0x4   :  { %s73_s26 = smov 8   ;;  %v2_v7 = vld [vmem:[%s111_s0] sm:$0x1]   ;;  %vm27_vm4 = vcmask 326912   ;;  %vm33_vm5 = vcmask 261312   ;;  %vm39_vm6 = vcmask 195712  }
   0x5   :  { %4 = vst.msk [vmem:[#allocation0] sm:$0x1] %vm3_vm0, %v2_v7   ;;  %vm45_vm7 = vcmask 130112  }
   0xa   :  { %13 = vrot.lane.b32.xlu0 %v54_v3, %s70_s21  ;;  %25 = vrot.lane.b32.xlu1 %v56_v4, %s71_s22 }
   0xb   :  { %37 = vrot.lane.b32.xlu2 %v58_v5, %s72_s23 }
  0x12   :  { %43 = vrot.lane.b32.xlu0 %v59_v6, %s73_s26 }
  0x5d   :  { %v32_v8 = vpop.permute.xlu2 %31  }
  0x65   :  { %v38_v9 = vpop.permute.xlu2 %37  }
  0x74   :  { %v8_v10 = vpop.permute.xlu0 %7   ;;  %v20_v11 = vpop.permute.xlu1 %19  }
  0x75   :  { %10 = vst.msk [vmem:[#allocation0] sm:$0x1] %vm9_vm1, %v8_v10  }
  0x7c   :  { %v14_v12 = vpop.permute.xlu0 %13   ;;  %v26_v13 = vpop.permute.xlu1 %25  }
  0x7d   :  { %16 = vst.msk [vmem:[#allocation0] sm:$0x1] %vm15_vm2, %v14_v12  }
  0x7e   :  { %22 = vst.msk [vmem:[#allocation0] sm:$0x1] %vm21_vm3, %v20_v11  }
  0x7f   :  { %28 = vst.msk [vmem:[#allocation0] sm:$0x1] %vm27_vm4, %v26_v13  }
  0x80   :  { %34 = vst.msk [vmem:[#allocation0] sm:$0x1] %vm33_vm5, %v32_v8  }
  0x81   :  { %40 = vst.msk [vmem:[#allocation0] sm:$0x1] %vm39_vm6, %v38_v9  }
  0x84   :  { %v44_v14 = vpop.permute.xlu0 %43  }
  0x85   :  { %46 = vst.msk [vmem:[#allocation0] sm:$0x1] %vm45_vm7, %v44_v14  }
  0x8c   :  { %v49_v15 = vld [vmem:[#allocation0] sm:$0x1] }
  0x8d   :  { %52 = vst [vmem:[%s112_s1] sm:$0x1] %v49_v15 }

// kernel: siamese_forward.10
= control target key start
LH: loop header
LB: loop body
LE: loop exit
PB: predicated region body
PF: predicated region fallthrough
CT: control target
= control target key end

     0   :  { %s1113_s18 = smov 0   ;;  %s1404_s0 = inlined_call_operand.vmem [shape: bf16[4,10,160], index: 0, kind: input, shape index: {}]   ;;  %s1405_s1 = inlined_call_operand.vmem [shape: bf16[160,80], index: 1, kind: input, shape index: {}]   ;;  %s1406_s2 = inlined_call_operand.vmem [shape: f32[1,80], index: 2, kind: input, shape index: {}]   ;;  %s1407_s3 = inlined_call_operand.vmem [shape: bf16[3,80,160], index: 3, kind: input, shape index: {}]   ;;  %s1408_s4 = inlined_call_operand.vmem [shape: f32[1,160], index: 4, kind: input, shape index: {}]   ;;  %s1409_s5 = inlined_call_operand.vmem [shape: bf16[4,10,160], index: 5, kind: output, shape index: {}]  }
   0x1 LB: > { %s814_s19 = sadd.s32 4294967295, %s1080_s18   ;;  %p818_p0 = scmp.ge.s32.totalorder %s1080_s18, 1  ;;  %s1080_s18 = sphi %s1113_s18, %s15_s18  }
   0x2   : > { %p187_p1 = scmp.lt.s32.totalorder %s1080_s18, 5 }
   0x4   : > { %p188_p2 = pnand %p818_p0, %p187_p1 }
   0x5   : > { %p215_p3 = scmp.lt.s32.totalorder (!%p188_p2), %s814_s19, 3 }
   0x6   : > { %191 = sbr.rel (%p188_p2) target bundleno = 364 (0x16c), region = 40 }
   0xb   : > { %v1031_v0 = vld [vmem:[%s1405_s1 + $0x38] sm:$0xff]  ;;  %v1033_v1 = vld [vmem:[%s1405_s1 + $0x48] sm:$0xff]  ;;  %v1030_v2 = vld [vmem:[%s1405_s1 + $0x30] sm:$0xff]  ;;  %s1413_s19 = smov (!%p215_p3, %s814_s19), 3  ;;  %vm335_vm0 = vcmask 261120   ;;  %vm368_vm1 = vcmask 650240  }
   0xc   : > { %339 = vmatpush.bf16.msra.mxu0 %v1031_v0  ;;  %358 = vmatpush.bf16.msra.mxu1 %v1033_v1  ;;  %v1032_v3 = vld [vmem:[%s1405_s1 + $0x40] sm:$0xff]  ;;  %s1020_s28 = sshll.u32 %s1413_s19, 4  ;;  %v1029_v4 = vld [vmem:[%s1405_s1 + $0x28] sm:$0xff]  ;;  %v1027_v13 = vld [vmem:[%s1405_s1 + $0x18] sm:$0xff]  ;;  %vm370_vm2 = vcmask 647168   ;;  %v1082_v31 = vmov 0  }
   0xd   : > { %s1141_s6 = scalar_lea.vmem %s1404_s0, %s1020_s28  ;;  %v1028_v10 = vld [vmem:[%s1405_s1 + $0x20] sm:$0xff]  ;;  %v1026_v17 = vld [vmem:[%s1405_s1 + $0x10] sm:$0xff]  ;;  %v1025_v19 = vld [vmem:[%s1405_s1 + $0x8] sm:$0xff]  ;;  %369 = vst.msk [vmem:[#allocation2] sm:$0xf] %vm368_vm1, %v1082_v31  ;;  %vm457_vm8 = vcmask 654336   ;;  %s1370_s17 = scalar_lea.vmem %s1409_s5, %s1020_s28 }
   0xe   : > { %v1022_v5 = vld [vmem:[%s1141_s6 + $0x4] sm:$0xf]  ;;  %v827_v6 = vld [vmem:[%s1141_s6 + $0x8] sm:$0x10]  ;;  %v825_v14 = vld [vmem:[%s1141_s6] sm:$0xf] }
   0xf   : > { %v830_v7 = vor.u32 %v1022_v5, %v827_v6  ;;  %v1023_v15 = vld [vmem:[%s1141_s6 + $0x4] sm:$0x10]  ;;  %v1024_v22 = vld [vmem:[%s1405_s1] sm:$0xff]  ;;  %v908_v28 = vld [vmem:[%s1407_s3 + $0x48] sm:$0xf0]  ;;  %vm722_vm9 = vcmask 1043456  }
  0x10   : > { %340 = vmatpush.bf16.msra.mxu0 %v1030_v2  ;;  %359 = vmatpush.bf16.msra.mxu1 %v1032_v3  ;;  %v826_v16 = vor.u32 %v1023_v15, %v825_v14  ;;  %v906_v24 = vld [vmem:[%s1407_s3 + $0x40] sm:$0xf]  ;;  %v1043_v25 = vld [vmem:[%s1407_s3 + $0x44] sm:$0xf0]  ;;  %v1042_v26 = vld [vmem:[%s1407_s3 + $0x44] sm:$0xf] }
  0x11   : > { %v268_v8 = vshrl.u32 %v830_v7, 16  ;;  %v270_v9 = vshll.u32 %v830_v7, 16  ;;  %v907_v27 = vor.u32 %v1043_v25, %v906_v24  ;;  %v911_v29 = vor.u32 %v1042_v26, %v908_v28  ;;  %v898_v30 = vld [vmem:[%s1407_s3 + $0x30] sm:$0xf]  ;;  %v1041_v32 = vld [vmem:[%s1407_s3 + $0x34] sm:$0xf0] }
  0x12   : > { %v263_v18 = vshll.u32 %v826_v16, 16  ;;  %v261_v20 = vshrl.u32 %v826_v16, 16  ;;  %v1040_v33 = vld [vmem:[%s1407_s3 + $0x34] sm:$0xf]  ;;  %371 = vst.msk [vmem:[#allocation2 + $0x4] sm:$0x1] %vm370_vm2, %v1082_v31  ;;  %v899_v34 = vor.u32 %v1041_v32, %v898_v30 }
  0x13   : > { %v272_v11 = vrot.slane %v270_v9, 1  ;;  %464 = vmatpush.bf16.msra.mxu2 %v907_v27  ;;  %477 = vmatpush.bf16.msra.mxu3 %v911_v29  ;;  %v900_v35 = vld [vmem:[%s1407_s3 + $0x38] sm:$0xf0]  ;;  %v890_v37 = vld [vmem:[%s1407_s3 + $0x20] sm:$0xf]  ;;  %vm723_vm10 = vcmask 261124  }
  0x14   : > { %341 = vmatpush.bf16.msra.mxu0 %v1029_v4  ;;  %v265_v21 = vrot.slane %v263_v18, 1  ;;  %v903_v36 = vor.u32 %v1040_v33, %v900_v35  ;;  %v1039_v38 = vld [vmem:[%s1407_s3 + $0x24] sm:$0xf0]  ;;  %v1038_v39 = vld [vmem:[%s1407_s3 + $0x24] sm:$0xf]  ;;  %vm726_vm11 = vcmask 1040384   ;;  %vm724_vm13 = vmor %vm723_vm10, %vm722_vm9 }
  0x15   : > { %v273_v12 = vor.u32 %v272_v11, %v268_v8  ;;  %v891_v40 = vor.u32 %v1039_v38, %v890_v37  ;;  %v892_v41 = vld [vmem:[%s1407_s3 + $0x28] sm:$0xf0]  ;;  %v958_v43 = vld [vmem:[%s1407_s3 + $0x90] sm:$0xf]  ;;  %v1053_v44 = vld [vmem:[%s1407_s3 + $0x94] sm:$0xf0] }
  0x16   : > { %v266_v23 = vor.u32 %v265_v21, %v261_v20  ;;  %v895_v42 = vor.u32 %v1038_v39, %v892_v41  ;;  %v959_v46 = vor.u32 %v1053_v44, %v958_v43  ;;  %v882_v47 = vld [vmem:[%s1407_s3 + $0x10] sm:$0xf]  ;;  %v1037_v48 = vld [vmem:[%s1407_s3 + $0x14] sm:$0xf0]  ;;  %v1036_v50 = vld [vmem:[%s1407_s3 + $0x14] sm:$0xf] }
  0x17   : > { %871 = vmatmul.msk.bf16.vlgmr.msra.gmra.mxu1 %vm335_vm0, %v273_v12  ;;  %465 = vmatpush.bf16.msra.mxu2 %v899_v34  ;;  %v883_v49 = vor.u32 %v1037_v48, %v882_v47  ;;  %v884_v51 = vld [vmem:[%s1407_s3 + $0x18] sm:$0xf0]  ;;  %v950_v52 = vld [vmem:[%s1407_s3 + $0x80] sm:$0xf]  ;;  %v1051_v54 = vld [vmem:[%s1407_s3 + $0x84] sm:$0xf0] }
  0x18   : > { %342 = vmatpush.bf16.msra.mxu0 %v1028_v10  ;;  %478 = vmatpush.bf16.msra.mxu3 %v903_v36  ;;  %v887_v53 = vor.u32 %v1036_v50, %v884_v51  ;;  %v874_v55 = vld [vmem:[%s1407_s3] sm:$0xf]  ;;  %v1035_v56 = vld [vmem:[%s1407_s3 + $0x4] sm:$0xf0]  ;;  %v951_v57 = vor.u32 %v1051_v54, %v950_v52  ;;  %v1034_v59 = vld [vmem:[%s1407_s3 + $0x4] sm:$0xf] }
  0x19   : > { %575 = vmatpush.bf16.msrb.mxu1 %v959_v46  ;;  %v875_v58 = vor.u32 %v1035_v56, %v874_v55  ;;  %v876_v60 = vld [vmem:[%s1407_s3 + $0x8] sm:$0xf0]  ;;  %v1052_v61 = vld [vmem:[%s1407_s3 + $0x94] sm:$0xf]  ;;  %v960_v63 = vld [vmem:[%s1407_s3 + $0x98] sm:$0xf0] }
  0x1a   : > { %v879_v62 = vor.u32 %v1034_v59, %v876_v60  ;;  %v1010_v0 = vld [vmem:[%s1407_s3 + $0xe0] sm:$0xf]  ;;  %v1063_v1 = vld [vmem:[%s1407_s3 + $0xe4] sm:$0xf0]  ;;  %v963_v2 = vor.u32 %v1052_v61, %v960_v63  ;;  %v942_v4 = vld [vmem:[%s1407_s3 + $0x70] sm:$0xf] }
  0x1b   : > { %466 = vmatpush.bf16.msra.mxu2 %v891_v40  ;;  %v1011_v3 = vor.u32 %v1063_v1, %v1010_v0  ;;  %v1049_v5 = vld [vmem:[%s1407_s3 + $0x74] sm:$0xf0]  ;;  %v1050_v8 = vld [vmem:[%s1407_s3 + $0x84] sm:$0xf]  ;;  %v952_v9 = vld [vmem:[%s1407_s3 + $0x88] sm:$0xf0] }
  0x1c   : > { %343 = vmatpush.bf16.msra.mxu0 %v1027_v13  ;;  %479 = vmatpush.bf16.msra.mxu3 %v895_v42  ;;  %v943_v7 = vor.u32 %v1049_v5, %v942_v4  ;;  %v955_v10 = vor.u32 %v1050_v8, %v952_v9  ;;  %v1002_v11 = vld [vmem:[%s1407_s3 + $0xd0] sm:$0xf]  ;;  %v1061_v12 = vld [vmem:[%s1407_s3 + $0xd4] sm:$0xf0]  ;;  %v934_v13 = vld [vmem:[%s1407_s3 + $0x60] sm:$0xf] }
  0x1d   : > { %576 = vmatpush.bf16.msrb.mxu1 %v951_v57  ;;  %v1003_v14 = vor.u32 %v1061_v12, %v1002_v11  ;;  %v1047_v15 = vld [vmem:[%s1407_s3 + $0x64] sm:$0xf0]  ;;  %v1048_v16 = vld [vmem:[%s1407_s3 + $0x74] sm:$0xf]  ;;  %v926_v21 = vld [vmem:[%s1407_s3 + $0x50] sm:$0xf] }
  0x1e   : > { %v935_v18 = vor.u32 %v1047_v15, %v934_v13  ;;  %v1059_v20 = vld [vmem:[%s1407_s3 + $0xc4] sm:$0xf0]  ;;  %v1062_v24 = vld [vmem:[%s1407_s3 + $0xe4] sm:$0xf]  ;;  %v1012_v25 = vld [vmem:[%s1407_s3 + $0xe8] sm:$0xf0] }
  0x1f   : > { %467 = vmatpush.bf16.msra.mxu2 %v883_v49  ;;  %v1073_v26 = vld [vmem:[%s1406_s2] ss:$0 sm:$0xff]  ;;  %v1046_v29 = vld [vmem:[%s1407_s3 + $0x64] sm:$0xf]  ;;  %v936_v30 = vld [vmem:[%s1407_s3 + $0x68] sm:$0xf0]  ;;  %v1015_v32 = vor.u32 %v1062_v24, %v1012_v25 }
  0x20   : > { %344 = vmatpush.bf16.msra.mxu0 %v1026_v17  ;;  %480 = vmatpush.bf16.msra.mxu3 %v887_v53  ;;  %v944_v17 = vld [vmem:[%s1407_s3 + $0x78] sm:$0xf0]  ;;  %v986_v33 = vld [vmem:[%s1407_s3 + $0xb0] sm:$0xf]  ;;  %v1057_v34 = vld [vmem:[%s1407_s3 + $0xb4] sm:$0xf0]  ;;  %v939_v36 = vor.u32 %v1046_v29, %v936_v30 }
  0x21   : > { %577 = vmatpush.bf16.msrb.mxu1 %v943_v7  ;;  %v987_v38 = vor.u32 %v1057_v34, %v986_v33  ;;  %v1060_v39 = vld [vmem:[%s1407_s3 + $0xd4] sm:$0xf]  ;;  %v1004_v40 = vld [vmem:[%s1407_s3 + $0xd8] sm:$0xf0]  ;;  %v978_v46 = vld [vmem:[%s1407_s3 + $0xa0] sm:$0xf] }
  0x22   : > { %v1007_v42 = vor.u32 %v1060_v39, %v1004_v40  ;;  %v1044_v43 = vld [vmem:[%s1407_s3 + $0x54] sm:$0xf]  ;;  %v928_v44 = vld [vmem:[%s1407_s3 + $0x58] sm:$0xf0]  ;;  %v1058_v50 = vld [vmem:[%s1407_s3 + $0xc4] sm:$0xf] }
  0x23   : > { %468 = vmatpush.bf16.msra.mxu2 %v875_v58  ;;  %v931_v48 = vor.u32 %v1044_v43, %v928_v44  ;;  %v996_v51 = vld [vmem:[%s1407_s3 + $0xc8] sm:$0xf0]  ;;  %vm384_vm4 = vsmask.f32 7938  ;;  %v1056_v56 = vld [vmem:[%s1407_s3 + $0xb4] sm:$0xf] }
  0x24   : > { %345 = vmatpush.bf16.msra.mxu0 %v1025_v19  ;;  %481 = vmatpush.bf16.msra.mxu3 %v879_v62  ;;  %v994_v19 = vld [vmem:[%s1407_s3 + $0xc0] sm:$0xf]  ;;  %v999_v53 = vor.u32 %v1058_v50, %v996_v51  ;;  %v988_v57 = vld [vmem:[%s1407_s3 + $0xb8] sm:$0xf0]  ;;  %vm390_vm5 = vsmask.f32 256  ;;  %vm385_vm6 = vmand %vm368_vm1, %vm384_vm4 }
  0x25   : > { %578 = vmatpush.bf16.msrb.mxu1 %v935_v18  ;;  %v995_v27 = vor.u32 %v1059_v20, %v994_v19  ;;  %v991_v59 = vor.u32 %v1056_v56, %v988_v57  ;;  %v1054_v60 = vld [vmem:[%s1407_s3 + $0xa4] sm:$0xf]  ;;  %v980_v61 = vld [vmem:[%s1407_s3 + $0xa8] sm:$0xf0]  ;;  %v386_v0 = vld [vmem:[#allocation2] sm:$0xf] }
  0x26   : > { %vm391_vm7 = vmand %vm370_vm2, %vm390_vm5  ;;  %v392_v1 = vld [vmem:[#allocation2 + $0x4] sm:$0x1]  ;;  %v983_v4 = vor.u32 %v1054_v60, %v980_v61  ;;  %vm727_vm12 = vcmask 258052   ;;  %725 = vst.msk [vmem:[%s1370_s17] sm:$0xff] %vm724_vm13, %v1082_v31  ;;  %v395_v24 = vld [vmem:[%s1408_s4] sm:$0x3] }
  0x27   : > { %588 = vmatpush.bf16.msrb.mxu2 %v963_v2  ;;  %vm728_vm14 = vmor %vm727_vm12, %vm726_vm11  ;;  %v227_v29 = vld [vmem:[%s1141_s6 + $0x8] sm:$0x11]  ;;  %v489_v33 = vperm.slane %v395_v24, 1  ;;  %vm711_vm15 = vcmask 1046528   ;;  %vm744_vm2 = vsmask.f32 7954 }
  0x28   : > { %346 = vmatpush.bf16.msra.mxu0 %v1024_v22  ;;  %672 = vmatpush.bf16.msrb.mxu3 %v1011_v3  ;;  %v947_v22 = vor.u32 %v1048_v16, %v944_v17  ;;  %729 = vst.msk [vmem:[%s1370_s17 + $0x8] sm:$0x11] %vm728_vm14, %v1082_v31  ;;  %v706_v39 = vunpack.c.h.bf16 %v227_v29 }
  0x2b   : > { %347 = vmatmul.bf16.vlgmr.msra.gmra.mxu0 %v266_v23  ;;  %589 = vmatpush.bf16.msrb.mxu2 %v955_v10  ;;  %v1045_v23 = vld [vmem:[%s1407_s3 + $0x54] sm:$0xf0] }
  0x2c   : > { %673 = vmatpush.bf16.msrb.mxu3 %v1003_v14  ;;  %v927_v28 = vor.u32 %v1045_v23, %v926_v21 }
  0x2e   : > { %579 = vmatpush.bf16.msrb.mxu1 %v927_v28  ;;  %v226_v28 = vld [vmem:[%s1141_s6] sm:$0xff] }
  0x2f   : > { %590 = vmatpush.bf16.msrb.mxu2 %v947_v22 }
  0x30   : > { %674 = vmatpush.bf16.msrb.mxu3 %v995_v27  ;;  %v488_v27 = vperm.slane %v395_v24, 0 }
  0x32   : > { %685 = vmatpush.bf16.msra.mxu1 %v1015_v32 }
  0x33   : > { %591 = vmatpush.bf16.msrb.mxu2 %v939_v36  ;;  %v705_v36 = vunpack.c.l.bf16 %v227_v29 }
  0x34   : > { %675 = vmatpush.bf16.msrb.mxu3 %v987_v38  ;;  %v704_v38 = vunpack.c.h.bf16 %v226_v28 }
  0x35   : > { %v713_v43 = vrot.slane %v705_v36, 1 }
  0x36   : > { %686 = vmatpush.bf16.msra.mxu1 %v1007_v42 }
  0x37   : > { %592 = vmatpush.bf16.msrb.mxu2 %v931_v48  ;;  %v716_v48 = vrot.slane %v706_v39, 1 }
  0x3a   : > { %687 = vmatpush.bf16.msra.mxu1 %v999_v53 }
  0x3e   : > { %688 = vmatpush.bf16.msra.mxu1 %v991_v59 }
  0x42   : > { %689 = vmatpush.bf16.msra.mxu1 %v983_v4 }
  0x94   : > { %v1211_v45 = vpop.f32.mrf.mxu1 }
  0x9c   : > { %v363_v6 = vpop.f32.mrf.mxu1 }
  0xa8   : > { %v348_v35 = vpop.f32.mrf.mxu0 }
  0xa9   : > { %v349_v37 = vadd.f32 %v1073_v26, %v348_v35  ;;  %v703_v35 = vunpack.c.l.bf16 %v226_v28 }
  0xab   : > { %v362_v41 = vadd.f32 %v1211_v45, %v349_v37  ;;  %v1055_v45 = vld [vmem:[%s1407_s3 + $0xa4] sm:$0xf0]  ;;  %v712_v42 = vrot.slane %v703_v35, 1 }
  0xac   : > { %v979_v49 = vor.u32 %v1055_v45, %v978_v46 }
  0xad   : > { %vm365_vm3 = vcmp.gt.f32.partialorder %v362_v41, 0.0  ;;  %v366_v47 = vmul.f32 0.1, %v362_v41  ;;  %v714_v50 = vsel %vm711_vm15, %v712_v42, %v713_v43 }
  0xae   : > { %676 = vmatpush.bf16.msrb.mxu3 %v979_v49 }
  0xaf   : > { %v367_v52 = vsel %vm365_vm3, %v362_v41, %v366_v47  ;;  %v715_v47 = vrot.slane %v704_v38, 1  ;;  %vm1387_vm3 = vmand %vm722_vm9, %vm384_vm4 }
  0xb0   : > { %v372_v54 = vpack.c.bf16 %v367_v52, %v367_v52  ;;  %v350_v55 = vpop.f32.mrf.mxu0 }
  0xb1   : > { %v717_v53 = vsel %vm711_vm15, %v715_v47, %v716_v48 }
  0xb2   : > { %v374_v58 = vshrl.u32 %v372_v54, 16  ;;  %v377_v63 = vshll.u32 %v372_v54, 16 }
  0xb4   : > { %v376_v62 = vrot.slane %v374_v58, 7 }
  0xb6   : > { %v379_v2 = vor.u32 %v377_v63, %v376_v62  ;;  %v380_v3 = vrot.slane %v376_v62, 4 }
  0xb8   : > { %v387_v5 = vsel %vm385_vm6, %v379_v2, %v386_v0  ;;  %v393_v6 = vsel %vm391_vm7, %v380_v3, %v392_v1  ;;  %vm753_vm6 = vsmask.f32 4352  ;;  %vm745_vm7 = vmand %vm723_vm10, %vm744_vm2  ;;  %v747_v1 = vld [vmem:[%s1370_s17] sm:$0xff]  ;;  %v756_v2 = vld [vmem:[%s1370_s17 + $0x8] sm:$0x11] }
  0xb9   : > { %388 = vst [vmem:[#allocation2] sm:$0xf] %v387_v5  ;;  %vm754_vm13 = vmand %vm727_vm12, %vm753_vm6 }
  0xba   : > { %394 = vst [vmem:[#allocation2 + $0x4] sm:$0x1] %v393_v6  ;;  %vm746_vm4 = vmor %vm745_vm7, %vm1387_vm3 }
  0xc0   : > { %v396_v7 = vld [vmem:[#allocation2] sm:$0xf] }
  0xc1   : > { %v494_v8 = vld [vmem:[#allocation2] sm:$0xf]  ;;  %912 = vmatmul.msk.bf16.vlgmr.msra.gmra.mxu2 %vm457_vm8, %v396_v7  ;;  %913 = vmatmul.msk.bf16.vlgmr.msra.gmra.mxu3 %vm457_vm8, %v396_v7  ;;  %v495_v9 = vld [vmem:[#allocation2 + $0x4] sm:$0x1] }
  0xc2   : > { %v509_v10 = vunpack.c.l.b16 %v494_v8  ;;  %v510_v11 = vunpack.c.l.b16 %v495_v9  ;;  %v600_v13 = vld [vmem:[#allocation2] sm:$0xe] }
  0xc3   : > { %v613_v15 = vunpack.c.l.b16 %v600_v13 }
  0xc4   : > { %v511_v12 = vpack.c.b16 %v510_v11, %v509_v10 }
  0xc5   : > { %v614_v19 = vpack.c.b16 %v510_v11, %v613_v15 }
  0xc6   : > { %v515_v14 = vshll.u32 %v511_v12, 16  ;;  %v513_v16 = vshrl.u32 %v511_v12, 16 }
  0xc7   : > { %v615_v20 = vrot.slane %v614_v19, 1 }
  0xc8   : > { %v517_v17 = vrot.slane %v515_v14, 1 }
  0xca   : > { %v518_v18 = vor.u32 %v517_v17, %v513_v16 }
  0xcc   : > { %964 = vmatmul.msk.bf16.vlgmr.msrb.gmra.mxu1 %vm457_vm8, %v518_v18 }
  0xd1   : > { %965 = vmatmul.msk.bf16.vlgmr.msrb.gmra.mxu2 %vm457_vm8, %v518_v18  ;;  %1016 = vmatmul.msk.bf16.vlgmr.msrb.gmra.mxu3 %vm457_vm8, %v615_v20 }
  0xdc   : > { %1017 = vmatmul.msk.bf16.vlgmr.msra.gmra.mxu1 %vm457_vm8, %v615_v20  ;;  %vm751_vm8 = vmand %vm726_vm11, %vm390_vm5 }
  0xdd   : > { %vm755_vm9 = vmor %vm754_vm13, %vm751_vm8 }
 0x144   : > { %v470_v21 = vpop.f32.mrf.mxu2  ;;  %v483_v22 = vpop.f32.mrf.mxu3 }
 0x145   : > { %v492_v30 = vadd.f32 %v488_v27, %v470_v21  ;;  %v493_v41 = vadd.f32 %v489_v33, %v483_v22 }
 0x149   : > { %v581_v23 = vpop.f32.mrf.mxu1 }
 0x14a   : > { %v598_v34 = vadd.f32 %v581_v23, %v492_v30 }
 0x14c   : > { %v472_v25 = vpop.f32.mrf.mxu2  ;;  %v485_v26 = vpop.f32.mrf.mxu3 }
 0x151   : > { %v583_v32 = vpop.f32.mrf.mxu1 }
 0x154   : > { %v594_v37 = vpop.f32.mrf.mxu2  ;;  %v678_v31 = vpop.f32.mrf.mxu3 }
 0x155   : > { %v695_v40 = vadd.f32 %v678_v31, %v598_v34  ;;  %v599_v44 = vadd.f32 %v594_v37, %v493_v41 }
 0x157   : > { %v699_v46 = vmul.f32 0.1, %v695_v40  ;;  %vm697_vm0 = vcmp.gt.f32.partialorder %v695_v40, 0.0 }
 0x159   : > { %v691_v45 = vpop.f32.mrf.mxu1  ;;  %v701_v51 = vsel %vm697_vm0, %v695_v40, %v699_v46 }
 0x15a   : > { %v696_v49 = vadd.f32 %v691_v45, %v599_v44  ;;  %v720_v57 = vadd.f32 %v714_v50, %v701_v51 }
 0x15c   : > { %vm698_vm1 = vcmp.gt.f32.partialorder %v696_v49, 0.0  ;;  %v700_v52 = vmul.f32 0.1, %v696_v49  ;;  %v596_v54 = vpop.f32.mrf.mxu2  ;;  %v680_v55 = vpop.f32.mrf.mxu3 }
 0x15e   : > { %v702_v56 = vsel %vm698_vm1, %v696_v49, %v700_v52 }
 0x15f   : > { %v721_v58 = vadd.f32 %v717_v53, %v702_v56 }
 0x161   : > { %v730_v60 = vpack.c.bf16 %v721_v58, %v720_v57  ;;  %v693_v61 = vpop.f32.mrf.mxu1 }
 0x163   : > { %v732_v62 = vshrl.u32 %v730_v60, 16  ;;  %v735_v0 = vshll.u32 %v730_v60, 16 }
 0x165   : > { %v734_v63 = vrot.slane %v732_v62, 7 }
 0x167   : > { %v737_v3 = vor.u32 %v735_v0, %v734_v63  ;;  %v738_v4 = vrot.slane %v734_v63, 4 }
 0x169   : > { %v748_v5 = vsel %vm746_vm4, %v737_v3, %v747_v1  ;;  %v757_v6 = vsel %vm755_vm9, %v738_v4, %v756_v2 }
 0x16a   : > { %749 = vst [vmem:[%s1370_s17] sm:$0xff] %v748_v5 }
 0x16b   : > { %758 = vst [vmem:[%s1370_s17 + $0x8] sm:$0x11] %v757_v6 }
 0x16c PF: > { %s15_s18 = sadd.s32 1, %s1080_s18  }
 0x16d   : > { %p12_p4 = scmp.ge.s32.totalorder %s15_s18, 6  }
 0x16f   :  { %14 = sbr.rel (!%p12_p4) target bundleno = 1 (0x1), region = 72 }

// kernel: tile.73
= control target key start
LH: loop header
LB: loop body
LE: loop exit
PB: predicated region body
PF: predicated region fallthrough
CT: control target
= control target key end

     0   :  { %s22_s0 = inlined_call_operand.vmem [shape: f32[32], index: 0, kind: input, shape index: {}]   ;;  %s23_s1 = inlined_call_operand.vmem [shape: f32[4,32], index: 1, kind: output, shape index: {}]  }
   0x1   :  { %v4_v0 = vld [vmem:[%s22_s0] ss:$0 sm:$0xff] }
   0x2   :  { %5 = vst [vmem:[%s23_s1] sm:$0xf] %v4_v0 }

// kernel: tile.74
= control target key start
LH: loop header
LB: loop body
LE: loop exit
PB: predicated region body
PF: predicated region fallthrough
CT: control target
= control target key end

     0   :  { %s37_s8 = smov 32   ;;  %s38_s9 = smov 64   ;;  %vm7_vm0 = vcmask 261120   ;;  %vm13_vm1 = vcmask 1048320   ;;  %vm19_vm2 = vcmask 785920   ;;  %vm25_vm3 = vcmask 523520   ;;  %s55_s0 = inlined_call_operand.vmem [shape: f32[4,32], index: 0, kind: input, shape index: {}]   ;;  %s56_s1 = inlined_call_operand.vmem [shape: f32[128], index: 1, kind: output, shape index: {}]  }
   0x1   :  { %v4_v0 = vld [vmem:[%s55_s0] sm:$0xf]  ;;  %s36_s0 = smov 96  }
   0x2   :  { %5 = vst [vmem:[#allocation1] sm:$0xf] %v4_v0 }
   0x9   :  { %v10_v1 = vld [vmem:[#allocation1 + $0x3] sm:$0x1]   ;;  %v22_v2 = vld [vmem:[#allocation1 + $0x1] sm:$0x1]   ;;  %v16_v3 = vld [vmem:[#allocation1 + $0x2] sm:$0x1]  }
   0xa   :  { %11 = vrot.lane.b32.xlu0 %v10_v1, %s36_s0  ;;  %23 = vrot.lane.b32.xlu1 %v22_v2, %s37_s8  ;;  %v6_v4 = vld [vmem:[#allocation1] sm:$0x1]  }
   0xb   :  { %8 = vst.msk [vmem:[#allocation0] sm:$0x1] %vm7_vm0, %v6_v4  }
  0x12   :  { %17 = vrot.lane.b32.xlu0 %v16_v3, %s38_s9 }
  0x7c   :  { %v12_v5 = vpop.permute.xlu0 %11   ;;  %v24_v6 = vpop.permute.xlu1 %23  }
  0x7d   :  { %14 = vst.msk [vmem:[#allocation0] sm:$0x1] %vm13_vm1, %v12_v5  }
  0x84   :  { %v18_v7 = vpop.permute.xlu0 %17  }
  0x85   :  { %20 = vst.msk [vmem:[#allocation0] sm:$0x1] %vm19_vm2, %v18_v7  }
  0x86   :  { %26 = vst.msk [vmem:[#allocation0] sm:$0x1] %vm25_vm3, %v24_v6  }
  0x8d   :  { %v29_v8 = vld [vmem:[#allocation0] sm:$0x1] }
  0x8e   :  { %32 = vst [vmem:[%s56_s1] sm:$0x1] %v29_v8 }

// kernel: siamese_forward.11
= control target key start
LH: loop header
LB: loop body
LE: loop exit
PB: predicated region body
PF: predicated region fallthrough
CT: control target
= control target key end

     0   :  { %s1295_s15 = smov 0   ;;  %s1743_s0 = inlined_call_operand.vmem [shape: bf16[4,5,160], index: 0, kind: input, shape index: {}]   ;;  %s1744_s1 = inlined_call_operand.vmem [shape: bf16[4,5,160], index: 1, kind: input, shape index: {}]   ;;  %s1745_s2 = inlined_call_operand.vmem [shape: bf16[3,160,192], index: 2, kind: input, shape index: {}]   ;;  %s1746_s3 = inlined_call_operand.vmem [shape: f32[1,192], index: 3, kind: input, shape index: {}]   ;;  %s1747_s4 = inlined_call_operand.vmem [shape: bf16[4,6,192], index: 4, kind: output, shape index: {}]  }
   0x1 LB: > { %s890_s16 = sadd.s32 4294967295, %s1267_s15   ;;  %p894_p0 = scmp.ge.s32.totalorder %s1267_s15, 1  ;;  %s1267_s15 = sphi %s1295_s15, %s14_s15  }
   0x2   : > { %p172_p1 = scmp.lt.s32.totalorder %s1267_s15, 5 }
   0x4   : > { %p173_p2 = pnand %p894_p0, %p172_p1 }
   0x5   : > { %p203_p3 = scmp.lt.s32.totalorder (!%p173_p2), %s890_s16, 3 }
   0x6   : > { %176 = sbr.rel (%p173_p2) target bundleno = 232 (0xe8), region = 36 }
   0xb   : > { %v959_v0 = vld [vmem:[%s1745_s2 + $0x70] sm:$0xf]  ;;  %v1207_v1 = vld [vmem:[%s1745_s2 + $0x74] sm:$0xf0]  ;;  %v1206_v5 = vld [vmem:[%s1745_s2 + $0x74] sm:$0xf] }
   0xc   : > { %v975_v2 = vld [vmem:[%s1745_s2 + $0x90] sm:$0xf]  ;;  %v960_v3 = vor.u32 %v1207_v1, %v959_v0  ;;  %v1211_v4 = vld [vmem:[%s1745_s2 + $0x94] sm:$0xf0]  ;;  %v961_v6 = vld [vmem:[%s1745_s2 + $0x78] sm:$0xf0] }
   0xd   : > { %v976_v7 = vor.u32 %v1211_v4, %v975_v2  ;;  %v964_v8 = vor.u32 %v1206_v5, %v961_v6  ;;  %v1210_v9 = vld [vmem:[%s1745_s2 + $0x94] sm:$0xf]  ;;  %v977_v10 = vld [vmem:[%s1745_s2 + $0x98] sm:$0xf0]  ;;  %v951_v11 = vld [vmem:[%s1745_s2 + $0x60] sm:$0xf] }
   0xe   : > { %353 = vmatpush.bf16.msra.mxu0 %v960_v3  ;;  %v980_v12 = vor.u32 %v1210_v9, %v977_v10  ;;  %v1205_v13 = vld [vmem:[%s1745_s2 + $0x64] sm:$0xf0]  ;;  %v967_v14 = vld [vmem:[%s1745_s2 + $0x80] sm:$0xf]  ;;  %v1204_v18 = vld [vmem:[%s1745_s2 + $0x64] sm:$0xf] }
   0xf   : > { %v1209_v15 = vld [vmem:[%s1745_s2 + $0x84] sm:$0xf0]  ;;  %372 = vmatpush.bf16.msra.mxu1 %v976_v7  ;;  %379 = vmatpush.bf16.msra.mxu2 %v964_v8  ;;  %v952_v16 = vor.u32 %v1205_v13, %v951_v11  ;;  %v953_v19 = vld [vmem:[%s1745_s2 + $0x68] sm:$0xf0]  ;;  %v1208_v20 = vld [vmem:[%s1745_s2 + $0x84] sm:$0xf] }
  0x10   : > { %v968_v17 = vor.u32 %v1209_v15, %v967_v14  ;;  %398 = vmatpush.bf16.msra.mxu3 %v980_v12  ;;  %v956_v21 = vor.u32 %v1204_v18, %v953_v19  ;;  %v969_v22 = vld [vmem:[%s1745_s2 + $0x88] sm:$0xf0]  ;;  %v1061_v23 = vld [vmem:[%s1745_s2 + $0x110] sm:$0xf]  ;;  %v1227_v24 = vld [vmem:[%s1745_s2 + $0x114] sm:$0xf0] }
  0x11   : > { %v972_v25 = vor.u32 %v1208_v20, %v969_v22  ;;  %v1062_v26 = vor.u32 %v1227_v24, %v1061_v23  ;;  %v1077_v27 = vld [vmem:[%s1745_s2 + $0x130] sm:$0xf]  ;;  %v1231_v28 = vld [vmem:[%s1745_s2 + $0x134] sm:$0xf0]  ;;  %v1202_v32 = vld [vmem:[%s1745_s2 + $0x54] sm:$0xf] }
  0x12   : > { %v943_v29 = vld [vmem:[%s1745_s2 + $0x50] sm:$0xf]  ;;  %354 = vmatpush.bf16.msra.mxu0 %v952_v16  ;;  %v1078_v30 = vor.u32 %v1231_v28, %v1077_v27  ;;  %v1203_v31 = vld [vmem:[%s1745_s2 + $0x54] sm:$0xf0]  ;;  %v945_v33 = vld [vmem:[%s1745_s2 + $0x58] sm:$0xf0] }
  0x13   : > { %373 = vmatpush.bf16.msra.mxu1 %v968_v17  ;;  %380 = vmatpush.bf16.msra.mxu2 %v956_v21  ;;  %v944_v34 = vor.u32 %v1203_v31, %v943_v29  ;;  %v948_v35 = vor.u32 %v1202_v32, %v945_v33  ;;  %vm800_vm0 = vcmask 1042432   ;;  %v1053_v36 = vld [vmem:[%s1745_s2 + $0x100] sm:$0xf]  ;;  %vm801_vm1 = vcmask 522244   ;;  %s1755_s16 = smov (!%p203_p3, %s890_s16), 3 }
  0x14   : > { %399 = vmatpush.bf16.msra.mxu3 %v972_v25  ;;  %vm814_vm2 = vsmask.f32 2306  ;;  %vm817_vm3 = vsmask.f32 6418  ;;  %vm1383_vm4 = vmor %vm801_vm1, %vm800_vm0  ;;  %v1225_v38 = vld [vmem:[%s1745_s2 + $0x104] sm:$0xf0] }
  0x15   : > { %v1069_v39 = vld [vmem:[%s1745_s2 + $0x120] sm:$0xf]  ;;  %vm1393_vm5 = vmand %vm800_vm0, %vm814_vm2  ;;  %v1054_v41 = vor.u32 %v1225_v38, %v1053_v36  ;;  %v1229_v42 = vld [vmem:[%s1745_s2 + $0x124] sm:$0xf0]  ;;  %s1403_s27 = sshll.u32 %s1755_s16, 3  ;;  %vm349_vm8 = vcmask 261120  }
  0x16   : > { %355 = vmatpush.bf16.msra.mxu0 %v944_v34  ;;  %v1226_v43 = vld [vmem:[%s1745_s2 + $0x114] sm:$0xf]  ;;  %vm1406_vm6 = vmand %vm801_vm1, %vm817_vm3  ;;  %v1070_v45 = vor.u32 %v1229_v42, %v1069_v39  ;;  %v1063_v46 = vld [vmem:[%s1745_s2 + $0x118] sm:$0xf0]  ;;  %s1420_s16 = scalar_lea.vmem %s1743_s0, %s1403_s27  ;;  %s1426_s10 = scalar_lea.vmem %s1747_s4, %s1403_s27  ;;  %v1269_v51 = vmov 0  }
  0x17   : > { %542 = vmatpush.bf16.msrb.mxu1 %v1062_v26  ;;  %381 = vmatpush.bf16.msra.mxu2 %v948_v35  ;;  %v935_v47 = vld [vmem:[%s1745_s2 + $0x40] sm:$0xf]  ;;  %vm819_vm7 = vmor %vm1406_vm6, %vm1393_vm5  ;;  %v1201_v48 = vld [vmem:[%s1745_s2 + $0x44] sm:$0xf0]  ;;  %803 = vst.msk [vmem:[%s1426_s10] sm:$0x77] %vm1383_vm4, %v1269_v51  ;;  %v1066_v57 = vor.u32 %v1226_v43, %v1063_v46  ;;  %s212_s8 = scalar_lea.vmem %s1744_s1, %s1403_s27 }
  0x18   : > { %561 = vmatpush.bf16.msrb.mxu3 %v1078_v30  ;;  %v1200_v49 = vld [vmem:[%s1745_s2 + $0x44] sm:$0xf]  ;;  %v936_v52 = vor.u32 %v1201_v48, %v935_v47  ;;  %v937_v54 = vld [vmem:[%s1745_s2 + $0x48] sm:$0xf0]  ;;  %v1045_v55 = vld [vmem:[%s1745_s2 + $0xf0] sm:$0xf] }
  0x19   : > { %v1439_v50 = vld [vmem:[%s1420_s16] sm:$0x33]  ;;  %v1223_v56 = vld [vmem:[%s1745_s2 + $0xf4] sm:$0xf0]  ;;  %v940_v58 = vor.u32 %v1200_v49, %v937_v54  ;;  %v1055_v61 = vld [vmem:[%s1745_s2 + $0x108] sm:$0xf0] }
  0x1a   : > { %v245_v53 = vunpack.c.h.b16 %v1439_v50  ;;  %356 = vmatpush.bf16.msra.mxu0 %v936_v52  ;;  %v1046_v59 = vor.u32 %v1223_v56, %v1045_v55  ;;  %v1224_v60 = vld [vmem:[%s1745_s2 + $0x104] sm:$0xf]  ;;  %v927_v62 = vld [vmem:[%s1745_s2 + $0x30] sm:$0xf]  ;;  %v1199_v0 = vld [vmem:[%s1745_s2 + $0x34] sm:$0xf0]  ;;  %v244_v47 = vunpack.c.l.b16 %v1439_v50 }
  0x1b   : > { %543 = vmatpush.bf16.msrb.mxu1 %v1054_v41  ;;  %v1198_v1 = vld [vmem:[%s1745_s2 + $0x34] sm:$0xf]  ;;  %v929_v2 = vld [vmem:[%s1745_s2 + $0x38] sm:$0xf0]  ;;  %382 = vmatpush.bf16.msra.mxu2 %v940_v58  ;;  %v928_v3 = vor.u32 %v1199_v0, %v927_v62  ;;  %v1037_v5 = vld [vmem:[%s1745_s2 + $0xe0] sm:$0xf]  ;;  %v1058_v9 = vor.u32 %v1224_v60, %v1055_v61 }
  0x1c   : > { %562 = vmatpush.bf16.msrb.mxu3 %v1070_v45  ;;  %v247_v63 = vpack.c.b16 %v245_v53, %v245_v53  ;;  %v932_v4 = vor.u32 %v1198_v1, %v929_v2  ;;  %v1221_v6 = vld [vmem:[%s1745_s2 + $0xe4] sm:$0xf0]  ;;  %v919_v8 = vld [vmem:[%s1745_s2 + $0x20] sm:$0xf]  ;;  %v1196_v11 = vld [vmem:[%s1745_s2 + $0x24] sm:$0xf]  ;;  %v246_v62 = vpack.c.b16 %v244_v47, %v244_v47 }
  0x1d   : > { %v1038_v7 = vor.u32 %v1221_v6, %v1037_v5  ;;  %v1197_v10 = vld [vmem:[%s1745_s2 + $0x24] sm:$0xf0]  ;;  %v921_v12 = vld [vmem:[%s1745_s2 + $0x28] sm:$0xf0]  ;;  %v1222_v13 = vld [vmem:[%s1745_s2 + $0xf4] sm:$0xf] }
  0x1e   : > { %982 = vmatmul.msk.bf16.vlgmr.msra.gmra.mxu3 %vm349_vm8, %v247_v63  ;;  %981 = vmatmul.msk.bf16.vlgmr.msra.gmra.mxu1 %vm349_vm8, %v247_v63  ;;  %v1047_v14 = vld [vmem:[%s1745_s2 + $0xf8] sm:$0xf0]  ;;  %v920_v15 = vor.u32 %v1197_v10, %v919_v8  ;;  %v1029_v16 = vld [vmem:[%s1745_s2 + $0xd0] sm:$0xf]  ;;  %v924_v17 = vor.u32 %v1196_v11, %v921_v12  ;;  %v1219_v18 = vld [vmem:[%s1745_s2 + $0xd4] sm:$0xf0] }
  0x1f   : > { %544 = vmatpush.bf16.msrb.mxu1 %v1046_v59  ;;  %357 = vmatpush.bf16.msra.mxu0 %v928_v3  ;;  %v1030_v19 = vor.u32 %v1219_v18, %v1029_v16  ;;  %v911_v20 = vld [vmem:[%s1745_s2 + $0x10] sm:$0xf]  ;;  %v1195_v21 = vld [vmem:[%s1745_s2 + $0x14] sm:$0xf0]  ;;  %v1194_v22 = vld [vmem:[%s1745_s2 + $0x14] sm:$0xf]  ;;  %v1050_v23 = vor.u32 %v1222_v13, %v1047_v14 }
  0x20   : > { %568 = vmatpush.bf16.msra.mxu3 %v1066_v57  ;;  %383 = vmatpush.bf16.msra.mxu2 %v932_v4  ;;  %v912_v24 = vor.u32 %v1195_v21, %v911_v20  ;;  %v913_v25 = vld [vmem:[%s1745_s2 + $0x18] sm:$0xf0]  ;;  %v1520_v26 = vld [vmem:[%s212_s8] sm:$0x33]  ;;  %v1039_v29 = vld [vmem:[%s1745_s2 + $0xe8] sm:$0xf0] }
  0x21   : > { %v1021_v27 = vld [vmem:[%s1745_s2 + $0xc0] sm:$0xf]  ;;  %v1220_v28 = vld [vmem:[%s1745_s2 + $0xe4] sm:$0xf]  ;;  %v1217_v30 = vld [vmem:[%s1745_s2 + $0xc4] sm:$0xf0]  ;;  %v916_v31 = vor.u32 %v1194_v22, %v913_v25  ;;  %v435_v36 = vunpack.c.h.b16 %v1520_v26  ;;  %v434_v5 = vunpack.c.l.b16 %v1520_v26 }
  0x22   : > { %v1022_v32 = vor.u32 %v1217_v30, %v1021_v27  ;;  %v903_v33 = vld [vmem:[%s1745_s2] sm:$0xf]  ;;  %v1193_v34 = vld [vmem:[%s1745_s2 + $0x4] sm:$0xf0]  ;;  %v1192_v35 = vld [vmem:[%s1745_s2 + $0x4] sm:$0xf]  ;;  %v1042_v41 = vor.u32 %v1220_v28, %v1039_v29 }
  0x23   : > { %545 = vmatpush.bf16.msrb.mxu1 %v1038_v7  ;;  %358 = vmatpush.bf16.msra.mxu0 %v920_v15  ;;  %v905_v37 = vld [vmem:[%s1745_s2 + $0x8] sm:$0xf0]  ;;  %v1013_v38 = vld [vmem:[%s1745_s2 + $0xb0] sm:$0xf]  ;;  %v1215_v39 = vld [vmem:[%s1745_s2 + $0xb4] sm:$0xf0]  ;;  %v904_v42 = vor.u32 %v1193_v34, %v903_v33  ;;  %v1578_v56 = vpack.c.b16 %v435_v36, %v435_v36  ;;  %v436_v18 = vpack.c.b16 %v434_v5, %v434_v5 }
  0x24   : > { %569 = vmatpush.bf16.msra.mxu3 %v1058_v9  ;;  %384 = vmatpush.bf16.msra.mxu2 %v924_v17  ;;  %v1163_v43 = vld [vmem:[%s1745_s2 + $0x1b0] sm:$0xf]  ;;  %v1247_v45 = vld [vmem:[%s1745_s2 + $0x1b4] sm:$0xf0]  ;;  %v1246_v46 = vld [vmem:[%s1745_s2 + $0x1b4] sm:$0xf]  ;;  %v908_v52 = vor.u32 %v1192_v35, %v905_v37  ;;  %v1014_v53 = vor.u32 %v1215_v39, %v1013_v38 }
  0x25   : > { %v1218_v48 = vld [vmem:[%s1745_s2 + $0xd4] sm:$0xf]  ;;  %v1031_v49 = vld [vmem:[%s1745_s2 + $0xd8] sm:$0xf0]  ;;  %v1005_v50 = vld [vmem:[%s1745_s2 + $0xa0] sm:$0xf]  ;;  %v1164_v57 = vor.u32 %v1247_v45, %v1163_v43 }
  0x26   : > { %v1165_v51 = vld [vmem:[%s1745_s2 + $0x1b8] sm:$0xf0]  ;;  %v1576_v55 = vld [vmem:[%s1420_s16] sm:$0x77]  ;;  %v1213_v58 = vld [vmem:[%s1745_s2 + $0xa4] sm:$0xf0]  ;;  %v1034_v61 = vor.u32 %v1218_v48, %v1031_v49 }
  0x27   : > { %546 = vmatpush.bf16.msrb.mxu1 %v1030_v19  ;;  %359 = vmatpush.bf16.msra.mxu0 %v912_v24  ;;  %v1168_v54 = vor.u32 %v1246_v46, %v1165_v51  ;;  %v1244_v59 = vld [vmem:[%s1745_s2 + $0x1a4] sm:$0xf]  ;;  %v1157_v60 = vld [vmem:[%s1745_s2 + $0x1a8] sm:$0xf0]  ;;  %v1155_v63 = vld [vmem:[%s1745_s2 + $0x1a0] sm:$0xf]  ;;  %v1006_v7 = vor.u32 %v1213_v58, %v1005_v50  ;;  %v619_v12 = vunpack.c.h.b16 %v1576_v55  ;;  %v618_v47 = vunpack.c.l.b16 %v1576_v55 }
  0x28   : > { %570 = vmatpush.bf16.msra.mxu3 %v1050_v23  ;;  %385 = vmatpush.bf16.msra.mxu2 %v916_v31  ;;  %v1245_v0 = vld [vmem:[%s1745_s2 + $0x1a4] sm:$0xf0]  ;;  %v1179_v1 = vld [vmem:[%s1745_s2 + $0x1d0] sm:$0xf]  ;;  %v1216_v2 = vld [vmem:[%s1745_s2 + $0xc4] sm:$0xf]  ;;  %v1160_v4 = vor.u32 %v1244_v59, %v1157_v60 }
  0x29   : > { %v1023_v3 = vld [vmem:[%s1745_s2 + $0xc8] sm:$0xf0]  ;;  %v1251_v6 = vld [vmem:[%s1745_s2 + $0x1d4] sm:$0xf0]  ;;  %v1242_v8 = vld [vmem:[%s1745_s2 + $0x194] sm:$0xf]  ;;  %v1156_v10 = vor.u32 %v1245_v0, %v1155_v63  ;;  %v621_v27 = vpack.c.b16 %v619_v12, %v619_v12 }
  0x2a   : > { %v1149_v9 = vld [vmem:[%s1745_s2 + $0x198] sm:$0xf0]  ;;  %v1180_v11 = vor.u32 %v1251_v6, %v1179_v1  ;;  %v1026_v13 = vor.u32 %v1216_v2, %v1023_v3  ;;  %v1214_v14 = vld [vmem:[%s1745_s2 + $0xb4] sm:$0xf]  ;;  %v1147_v15 = vld [vmem:[%s1745_s2 + $0x190] sm:$0xf] }
  0x2b   : > { %547 = vmatpush.bf16.msrb.mxu1 %v1022_v32  ;;  %360 = vmatpush.bf16.msra.mxu0 %v904_v42  ;;  %v1243_v16 = vld [vmem:[%s1745_s2 + $0x194] sm:$0xf0]  ;;  %v1015_v17 = vld [vmem:[%s1745_s2 + $0xb8] sm:$0xf0]  ;;  %v1152_v19 = vor.u32 %v1242_v8, %v1149_v9  ;;  %v1171_v20 = vld [vmem:[%s1745_s2 + $0x1c0] sm:$0xf] }
  0x2c   : > { %571 = vmatpush.bf16.msra.mxu3 %v1042_v41  ;;  %386 = vmatpush.bf16.msra.mxu2 %v908_v52  ;;  %v1249_v21 = vld [vmem:[%s1745_s2 + $0x1c4] sm:$0xf0]  ;;  %v1240_v22 = vld [vmem:[%s1745_s2 + $0x184] sm:$0xf]  ;;  %v1141_v23 = vld [vmem:[%s1745_s2 + $0x188] sm:$0xf0]  ;;  %v1148_v24 = vor.u32 %v1243_v16, %v1147_v15  ;;  %v1018_v28 = vor.u32 %v1214_v14, %v1015_v17 }
  0x2d   : > { %v1212_v25 = vld [vmem:[%s1745_s2 + $0xa4] sm:$0xf]  ;;  %v1172_v26 = vor.u32 %v1249_v21, %v1171_v20  ;;  %v1007_v29 = vld [vmem:[%s1745_s2 + $0xa8] sm:$0xf0]  ;;  %v1139_v30 = vld [vmem:[%s1745_s2 + $0x180] sm:$0xf]  ;;  %v1144_v32 = vor.u32 %v1240_v22, %v1141_v23 }
  0x2e   : > { %1083 = vmatmul.msk.bf16.vlgmr.msrb.gmra.mxu3 %vm349_vm8, %v1578_v56  ;;  %361 = vmatmul.bf16.vlgmr.msra.gmra.mxu0 %v246_v62  ;;  %v1241_v31 = vld [vmem:[%s1745_s2 + $0x184] sm:$0xf0]  ;;  %v1230_v33 = vld [vmem:[%s1745_s2 + $0x134] sm:$0xf]  ;;  %v1181_v35 = vld [vmem:[%s1745_s2 + $0x1d8] sm:$0xf0]  ;;  %v1010_v43 = vor.u32 %v1212_v25, %v1007_v29 }
  0x2f   : > { %766 = vmatpush.bf16.msrb.mxu0 %v1168_v54  ;;  %548 = vmatpush.bf16.msrb.mxu1 %v1014_v53  ;;  %v1250_v34 = vld [vmem:[%s1745_s2 + $0x1d4] sm:$0xf]  ;;  %v1079_v36 = vld [vmem:[%s1745_s2 + $0x138] sm:$0xf0]  ;;  %v1140_v41 = vor.u32 %v1241_v31, %v1139_v30  ;;  %v632_v42 = vshll.u32 %v621_v27, 16 }
  0x30   : > { %740 = vmatpush.bf16.msrb.mxu2 %v1164_v57  ;;  %572 = vmatpush.bf16.msra.mxu3 %v1034_v61  ;;  %v1238_v37 = vld [vmem:[%s1745_s2 + $0x174] sm:$0xf]  ;;  %v1133_v38 = vld [vmem:[%s1745_s2 + $0x178] sm:$0xf0]  ;;  %v1184_v39 = vor.u32 %v1250_v34, %v1181_v35  ;;  %v1131_v45 = vld [vmem:[%s1745_s2 + $0x170] sm:$0xf]  ;;  %v1082_v48 = vor.u32 %v1230_v33, %v1079_v36  ;;  %v620_v61 = vpack.c.b16 %v618_v47, %v618_v47 }
  0x31   : > { %387 = vmatmul.bf16.vlgmr.msra.gmra.mxu2 %v246_v62  ;;  %v1239_v46 = vld [vmem:[%s1745_s2 + $0x174] sm:$0xf0]  ;;  %v1136_v49 = vor.u32 %v1238_v37, %v1133_v38  ;;  %v1236_v51 = vld [vmem:[%s1745_s2 + $0x164] sm:$0xf]  ;;  %v1173_v53 = vld [vmem:[%s1745_s2 + $0x1c8] sm:$0xf0] }
  0x32   : > { %v1248_v52 = vld [vmem:[%s1745_s2 + $0x1c4] sm:$0xf]  ;;  %v1125_v54 = vld [vmem:[%s1745_s2 + $0x168] sm:$0xf0]  ;;  %v1132_v58 = vor.u32 %v1239_v46, %v1131_v45  ;;  %v1123_v59 = vld [vmem:[%s1745_s2 + $0x160] sm:$0xf] }
  0x33   : > { %767 = vmatpush.bf16.msrb.mxu0 %v1160_v4  ;;  %549 = vmatpush.bf16.msrb.mxu1 %v1006_v7  ;;  %v1228_v50 = vld [vmem:[%s1745_s2 + $0x124] sm:$0xf]  ;;  %v1071_v55 = vld [vmem:[%s1745_s2 + $0x128] sm:$0xf0]  ;;  %v1176_v57 = vor.u32 %v1248_v52, %v1173_v53  ;;  %v1237_v60 = vld [vmem:[%s1745_s2 + $0x164] sm:$0xf0]  ;;  %v1128_v0 = vor.u32 %v1236_v51, %v1125_v54 }
  0x34   : > { %741 = vmatpush.bf16.msrb.mxu2 %v1156_v10  ;;  %573 = vmatpush.bf16.msra.mxu3 %v1026_v13  ;;  %v630_v62 = vshrl.u32 %v621_v27, 16  ;;  %v634_v63 = vrot.slane %v632_v42, 1  ;;  %v1074_v1 = vor.u32 %v1228_v50, %v1071_v55  ;;  %v1234_v2 = vld [vmem:[%s1745_s2 + $0x154] sm:$0xf]  ;;  %v1117_v3 = vld [vmem:[%s1745_s2 + $0x158] sm:$0xf0]  ;;  %v1124_v4 = vor.u32 %v1237_v60, %v1123_v59 }
  0x35   : > { %v1115_v5 = vld [vmem:[%s1745_s2 + $0x150] sm:$0xf]  ;;  %v1235_v6 = vld [vmem:[%s1745_s2 + $0x154] sm:$0xf0]  ;;  %v625_v7 = vshll.u32 %v620_v61, 16  ;;  %v1120_v9 = vor.u32 %v1234_v2, %v1117_v3  ;;  %v623_v15 = vshrl.u32 %v620_v61, 16 }
  0x36   : > { %550 = vmatmul.bf16.vlgmr.msrb.gmra.mxu1 %v436_v18  ;;  %v635_v8 = vor.u32 %v634_v63, %v630_v62  ;;  %v1232_v10 = vld [vmem:[%s1745_s2 + $0x144] sm:$0xf]  ;;  %v1116_v12 = vor.u32 %v1235_v6, %v1115_v5  ;;  %v1107_v13 = vld [vmem:[%s1745_s2 + $0x140] sm:$0xf]  ;;  %v1233_v14 = vld [vmem:[%s1745_s2 + $0x144] sm:$0xf0] }
  0x37   : > { %759 = vmatpush.bf16.msra.mxu1 %v1180_v11  ;;  %768 = vmatpush.bf16.msrb.mxu0 %v1152_v19  ;;  %v1109_v11 = vld [vmem:[%s1745_s2 + $0x148] sm:$0xf0]  ;;  %v627_v16 = vrot.slane %v625_v7, 1  ;;  %v820_v5 = vld [vmem:[%s1426_s10] sm:$0x77] }
  0x38   : > { %742 = vmatpush.bf16.msrb.mxu2 %v1148_v24  ;;  %574 = vmatpush.bf16.msra.mxu3 %v1018_v28  ;;  %v1112_v17 = vor.u32 %v1232_v10, %v1109_v11 }
  0x39   : > { %v628_v19 = vor.u32 %v627_v16, %v623_v15 }
  0x3b   : > { %760 = vmatpush.bf16.msra.mxu1 %v1172_v26  ;;  %769 = vmatpush.bf16.msrb.mxu0 %v1144_v32 }
  0x3c   : > { %743 = vmatpush.bf16.msrb.mxu2 %v1140_v41  ;;  %575 = vmatpush.bf16.msra.mxu3 %v1010_v43 }
  0x3f   : > { %785 = vmatpush.bf16.msrb.mxu1 %v1184_v39  ;;  %770 = vmatpush.bf16.msrb.mxu0 %v1136_v49 }
  0x40   : > { %587 = vmatpush.bf16.msrb.mxu3 %v1082_v48  ;;  %744 = vmatpush.bf16.msrb.mxu2 %v1132_v58 }
  0x41   : > { %576 = vmatmul.bf16.vlgmr.msra.gmra.mxu3 %v436_v18  ;;  %v1108_v18 = vor.u32 %v1233_v14, %v1107_v13 }
  0x43   : > { %786 = vmatpush.bf16.msrb.mxu1 %v1176_v57  ;;  %771 = vmatpush.bf16.msrb.mxu0 %v1128_v0 }
  0x44   : > { %588 = vmatpush.bf16.msrb.mxu3 %v1074_v1  ;;  %745 = vmatpush.bf16.msrb.mxu2 %v1124_v4 }
  0x46   : > { %1185 = vmatmul.msk.bf16.vlgmr.msra.gmra.mxu1 %vm349_vm8, %v635_v8 }
  0x47   : > { %772 = vmatpush.bf16.msrb.mxu0 %v1120_v9 }
  0x48   : > { %746 = vmatpush.bf16.msrb.mxu2 %v1116_v12 }
  0x4b   : > { %773 = vmatpush.bf16.msrb.mxu0 %v1112_v17 }
  0x4c   : > { %747 = vmatpush.bf16.msrb.mxu2 %v1108_v18 }
  0x4e   : > { %774 = vmatmul.bf16.vlgmr.msrb.gmra.mxu0 %v628_v19 }
  0x4f   : > { %748 = vmatmul.bf16.vlgmr.msrb.gmra.mxu2 %v628_v19 }
  0x51   : > { %1084 = vmatmul.msk.bf16.vlgmr.msrb.gmra.mxu3 %vm349_vm8, %v1578_v56  ;;  %v222_v56 = vld [vmem:[%s1746_s3] sm:$0x3] }
  0x52   : > { %v406_v38 = vperm.slane %v222_v56, 0  ;;  %v407_v42 = vperm.slane %v222_v56, 1 }
  0x56   : > { %1186 = vmatmul.msk.bf16.vlgmr.msrb.gmra.mxu1 %vm349_vm8, %v635_v8 }
  0x9b   : > { %v375_v20 = vpop.f32.mrf.mxu1 }
  0xa1   : > { %v401_v21 = vpop.f32.mrf.mxu3 }
  0xa3   : > { %v377_v22 = vpop.f32.mrf.mxu1 }
  0xa9   : > { %v403_v23 = vpop.f32.mrf.mxu3 }
  0xab   : > { %v362_v24 = vpop.f32.mrf.mxu0 }
  0xac   : > { %v376_v37 = vadd.f32 %v375_v20, %v362_v24 }
  0xae   : > { %v410_v43 = vadd.f32 %v406_v38, %v376_v37 }
  0xb1   : > { %v564_v25 = vpop.f32.mrf.mxu3 }
  0xb3   : > { %v551_v26 = vpop.f32.mrf.mxu1  ;;  %v364_v28 = vpop.f32.mrf.mxu0 }
  0xb4   : > { %v388_v27 = vpop.f32.mrf.mxu2  ;;  %v565_v39 = vadd.f32 %v564_v25, %v551_v26 }
  0xb5   : > { %v402_v41 = vadd.f32 %v401_v21, %v388_v27 }
  0xb6   : > { %v594_v47 = vadd.f32 %v565_v39, %v410_v43 }
  0xb7   : > { %v411_v52 = vadd.f32 %v407_v42, %v402_v41 }
  0xb9   : > { %v566_v29 = vpop.f32.mrf.mxu3 }
  0xbb   : > { %v553_v30 = vpop.f32.mrf.mxu1 }
  0xbc   : > { %v390_v31 = vpop.f32.mrf.mxu2 }
  0xc3   : > { %v762_v33 = vpop.f32.mrf.mxu1 }
  0xc4   : > { %v577_v32 = vpop.f32.mrf.mxu3 }
  0xcb   : > { %v775_v34 = vpop.f32.mrf.mxu0  ;;  %v764_v36 = vpop.f32.mrf.mxu1 }
  0xcc   : > { %v579_v35 = vpop.f32.mrf.mxu3 }
  0xd2   : > { %v749_v45 = vpop.f32.mrf.mxu2 }
  0xd3   : > { %v777_v46 = vpop.f32.mrf.mxu0  ;;  %v763_v49 = vadd.f32 %v762_v33, %v749_v45  ;;  %v788_v51 = vpop.f32.mrf.mxu1 }
  0xd4   : > { %v590_v48 = vpop.f32.mrf.mxu3  ;;  %v789_v54 = vadd.f32 %v788_v51, %v775_v34 }
  0xd5   : > { %v591_v53 = vadd.f32 %v590_v48, %v577_v32  ;;  %v792_v50 = vadd.f32 %v763_v49, %v594_v47 }
  0xd7   : > { %v595_v55 = vadd.f32 %v591_v53, %v411_v52  ;;  %v796_v57 = vmul.f32 0.1, %v792_v50  ;;  %vm794_vm9 = vcmp.gt.f32.partialorder %v792_v50, 0.0 }
  0xd9   : > { %v793_v58 = vadd.f32 %v789_v54, %v595_v55  ;;  %v798_v63 = vsel %vm794_vm9, %v792_v50, %v796_v57 }
  0xda   : > { %v751_v60 = vpop.f32.mrf.mxu2 }
  0xdb   : > { %vm795_vm10 = vcmp.gt.f32.partialorder %v793_v58, 0.0  ;;  %v797_v59 = vmul.f32 0.1, %v793_v58  ;;  %v790_v62 = vpop.f32.mrf.mxu1 }
  0xdc   : > { %v592_v61 = vpop.f32.mrf.mxu3 }
  0xdd   : > { %v799_v0 = vsel %vm795_vm10, %v793_v58, %v797_v59 }
  0xde   : > { %v804_v1 = vpack.c.bf16 %v799_v0, %v798_v63 }
  0xe0   : > { %v806_v2 = vshrl.u32 %v804_v1, 16  ;;  %v809_v4 = vshll.u32 %v804_v1, 16 }
  0xe2   : > { %v808_v3 = vrot.slane %v806_v2, 7 }
  0xe4   : > { %v811_v6 = vor.u32 %v809_v4, %v808_v3 }
  0xe6   : > { %v821_v7 = vsel %vm819_vm7, %v811_v6, %v820_v5 }
  0xe7   : > { %822 = vst [vmem:[%s1426_s10] sm:$0x77] %v821_v7 }
  0xe8 PF: > { %s14_s15 = sadd.s32 1, %s1267_s15  }
  0xe9   : > { %p11_p4 = scmp.ge.s32.totalorder %s14_s15, 6  }
  0xeb   :  { %13 = sbr.rel (!%p11_p4) target bundleno = 1 (0x1), region = 71 }

// kernel: tile.78
= control target key start
LH: loop header
LB: loop body
LE: loop exit
PB: predicated region body
PF: predicated region fallthrough
CT: control target
= control target key end

     0   :  { %s22_s0 = inlined_call_operand.vmem [shape: f32[16], index: 0, kind: input, shape index: {}]   ;;  %s23_s1 = inlined_call_operand.vmem [shape: f32[4,16], index: 1, kind: output, shape index: {}]  }
   0x1   :  { %v4_v0 = vld [vmem:[%s22_s0] ss:$0 sm:$0xff] }
   0x2   :  { %5 = vst [vmem:[%s23_s1] sm:$0xf] %v4_v0 }

// kernel: tile.79
= control target key start
LH: loop header
LB: loop body
LE: loop exit
PB: predicated region body
PF: predicated region fallthrough
CT: control target
= control target key end

     0   :  { %s37_s8 = smov 16   ;;  %s38_s9 = smov 32   ;;  %vm7_vm0 = vcmask 130048   ;;  %vm13_vm1 = vcmask 523648   ;;  %vm19_vm2 = vcmask 392448   ;;  %vm25_vm3 = vcmask 261248   ;;  %s55_s0 = inlined_call_operand.vmem [shape: f32[4,16], index: 0, kind: input, shape index: {}]   ;;  %s56_s1 = inlined_call_operand.vmem [shape: f32[64], index: 1, kind: output, shape index: {}]  }
   0x1   :  { %v4_v0 = vld [vmem:[%s55_s0] sm:$0xf]  ;;  %s36_s0 = smov 48  }
   0x2   :  { %5 = vst [vmem:[#allocation1] sm:$0xf] %v4_v0 }
   0x9   :  { %v10_v1 = vld [vmem:[#allocation1 + $0x3] sm:$0x1]   ;;  %v22_v2 = vld [vmem:[#allocation1 + $0x1] sm:$0x1]   ;;  %v16_v3 = vld [vmem:[#allocation1 + $0x2] sm:$0x1]  }
   0xa   :  { %11 = vrot.lane.b32.xlu0 %v10_v1, %s36_s0  ;;  %23 = vrot.lane.b32.xlu1 %v22_v2, %s37_s8  ;;  %v6_v4 = vld [vmem:[#allocation1] sm:$0x1]  }
   0xb   :  { %8 = vst.msk [vmem:[#allocation0] sm:$0x1] %vm7_vm0, %v6_v4  }
  0x12   :  { %17 = vrot.lane.b32.xlu0 %v16_v3, %s38_s9 }
  0x7c   :  { %v12_v5 = vpop.permute.xlu0 %11   ;;  %v24_v6 = vpop.permute.xlu1 %23  }
  0x7d   :  { %14 = vst.msk [vmem:[#allocation0] sm:$0x1] %vm13_vm1, %v12_v5  }
  0x84   :  { %v18_v7 = vpop.permute.xlu0 %17  }
  0x85   :  { %20 = vst.msk [vmem:[#allocation0] sm:$0x1] %vm19_vm2, %v18_v7  }
  0x86   :  { %26 = vst.msk [vmem:[#allocation0] sm:$0x1] %vm25_vm3, %v24_v6  }
  0x8d   :  { %v29_v8 = vld [vmem:[#allocation0] sm:$0x1] }
  0x8e   :  { %32 = vst [vmem:[%s56_s1] sm:$0x1] %v29_v8 }

// kernel: tile.88
= control target key start
LH: loop header
LB: loop body
LE: loop exit
PB: predicated region body
PF: predicated region fallthrough
CT: control target
= control target key end

     0   :  { %s22_s0 = inlined_call_operand.vmem [shape: f32[64], index: 0, kind: input, shape index: {}]   ;;  %s23_s1 = inlined_call_operand.vmem [shape: f32[2,64], index: 1, kind: output, shape index: {}]  }
   0x1   :  { %v4_v0 = vld [vmem:[%s22_s0] ss:$0 sm:$0xff] }
   0x2   :  { %5 = vst [vmem:[%s23_s1] sm:$0x3] %v4_v0 }

// kernel: tile.89
= control target key start
LH: loop header
LB: loop body
LE: loop exit
PB: predicated region body
PF: predicated region fallthrough
CT: control target
= control target key end

     0   :  { %vm7_vm0 = vcmask 523264   ;;  %vm13_vm1 = vcmask 1048064   ;;  %s39_s0 = inlined_call_operand.vmem [shape: f32[2,64], index: 0, kind: input, shape index: {}]   ;;  %s40_s1 = inlined_call_operand.vmem [shape: f32[128], index: 1, kind: output, shape index: {}]  }
   0x1   :  { %v4_v0 = vld [vmem:[%s39_s0] sm:$0x3]  ;;  %s22_s0 = smov 64  }
   0x2   :  { %5 = vst [vmem:[#allocation1] sm:$0x3] %v4_v0 }
   0x9   :  { %v10_v1 = vld [vmem:[#allocation1 + $0x1] sm:$0x1]   ;;  %v6_v2 = vld [vmem:[#allocation1] sm:$0x1]  }
   0xa   :  { %11 = vrot.lane.b32.xlu0 %v10_v1, %s22_s0  ;;  %8 = vst.msk [vmem:[#allocation0] sm:$0x1] %vm7_vm0, %v6_v2  }
  0x7c   :  { %v12_v3 = vpop.permute.xlu0 %11  }
  0x7d   :  { %14 = vst.msk [vmem:[#allocation0] sm:$0x1] %vm13_vm1, %v12_v3  }
  0x84   :  { %v17_v4 = vld [vmem:[#allocation0] sm:$0x1] }
  0x85   :  { %20 = vst [vmem:[%s40_s1] sm:$0x1] %v17_v4 }

// kernel: siamese_forward.12
= control target key start
LH: loop header
LB: loop body
LE: loop exit
PB: predicated region body
PF: predicated region fallthrough
CT: control target
= control target key end

     0   :  { %s1158_s18 = smov 0   ;;  %s1463_s0 = inlined_call_operand.vmem [shape: bf16[4,6,192], index: 0, kind: input, shape index: {}]   ;;  %s1464_s1 = inlined_call_operand.vmem [shape: bf16[192,96], index: 1, kind: input, shape index: {}]   ;;  %s1465_s2 = inlined_call_operand.vmem [shape: f32[1,96], index: 2, kind: input, shape index: {}]   ;;  %s1466_s3 = inlined_call_operand.vmem [shape: bf16[3,96,192], index: 3, kind: input, shape index: {}]   ;;  %s1467_s4 = inlined_call_operand.vmem [shape: f32[1,192], index: 4, kind: input, shape index: {}]   ;;  %s1468_s5 = inlined_call_operand.vmem [shape: bf16[4,6,192], index: 5, kind: output, shape index: {}]  }
   0x1 LB: > { %s825_s19 = sadd.s32 4294967295, %s1125_s18   ;;  %p829_p0 = scmp.ge.s32.totalorder %s1125_s18, 1  ;;  %s1125_s18 = sphi %s1158_s18, %s15_s18  }
   0x2   : > { %p187_p1 = scmp.lt.s32.totalorder %s1125_s18, 5 }
   0x4   : > { %p188_p2 = pnand %p829_p0, %p187_p1 }
   0x5   : > { %p215_p3 = scmp.lt.s32.totalorder (!%p188_p2), %s825_s19, 3 }
   0x6   : > { %191 = sbr.rel (%p188_p2) target bundleno = 360 (0x168), region = 40 }
   0xb   : > { %v1068_v0 = vld [vmem:[%s1464_s1 + $0x38] sm:$0xff]  ;;  %vm748_vm0 = vcmask 1042432   ;;  %vm749_vm1 = vcmask 522244   ;;  %v1067_v2 = vld [vmem:[%s1464_s1 + $0x30] sm:$0xff]  ;;  %s1470_s19 = smov (!%p215_p3, %s825_s19), 3  ;;  %v1066_v4 = vld [vmem:[%s1464_s1 + $0x28] sm:$0xff] }
   0xc   : > { %v1072_v1 = vld [vmem:[%s1464_s1 + $0x58] sm:$0xff]  ;;  %351 = vmatpush.bf16.msra.mxu0 %v1068_v0  ;;  %v1071_v3 = vld [vmem:[%s1464_s1 + $0x50] sm:$0xff]  ;;  %vm750_vm2 = vmor %vm749_vm1, %vm748_vm0  ;;  %s1059_s28 = sshll.u32 %s1470_s19, 3  ;;  %v1127_v6 = vmov 0   ;;  %vm347_vm3 = vcmask 523264   ;;  %vm380_vm4 = vcmask 780288  }
   0xd   : > { %368 = vmatpush.bf16.msra.mxu1 %v1072_v1  ;;  %s219_s6 = scalar_lea.vmem %s1463_s0, %s1059_s28  ;;  %s1186_s9 = scalar_lea.vmem %s1468_s5, %s1059_s28  ;;  %v1070_v7 = vld [vmem:[%s1464_s1 + $0x48] sm:$0xff]  ;;  %v1065_v10 = vld [vmem:[%s1464_s1 + $0x20] sm:$0xff]  ;;  %v1064_v16 = vld [vmem:[%s1464_s1 + $0x18] sm:$0xff]  ;;  %381 = vst.msk [vmem:[#allocation2] sm:$0x7] %vm380_vm4, %v1127_v6  ;;  %vm471_vm8 = vcmask 785408  }
   0xe   : > { %v1191_v5 = vld [vmem:[%s219_s6] sm:$0x77]  ;;  %751 = vst.msk [vmem:[%s1186_s9] sm:$0x77] %vm750_vm2, %v1127_v6  ;;  %v1063_v19 = vld [vmem:[%s1464_s1 + $0x10] sm:$0xff]  ;;  %v1062_v21 = vld [vmem:[%s1464_s1 + $0x8] sm:$0xff] }
   0xf   : > { %v257_v8 = vunpack.c.h.b16 %v1191_v5  ;;  %v1069_v11 = vld [vmem:[%s1464_s1 + $0x40] sm:$0xff]  ;;  %v256_v15 = vunpack.c.l.b16 %v1191_v5  ;;  %v925_v26 = vld [vmem:[%s1466_s3 + $0x50] sm:$0xf]  ;;  %v1084_v27 = vld [vmem:[%s1466_s3 + $0x54] sm:$0xf0] }
  0x10   : > { %352 = vmatpush.bf16.msra.mxu0 %v1067_v2  ;;  %v1061_v24 = vld [vmem:[%s1464_s1] sm:$0xff]  ;;  %v1083_v28 = vld [vmem:[%s1466_s3 + $0x54] sm:$0xf]  ;;  %v926_v29 = vor.u32 %v1084_v27, %v925_v26  ;;  %v927_v30 = vld [vmem:[%s1466_s3 + $0x58] sm:$0xf0] }
  0x11   : > { %369 = vmatpush.bf16.msra.mxu1 %v1071_v3  ;;  %v259_v9 = vpack.c.b16 %v257_v8, %v257_v8  ;;  %v258_v18 = vpack.c.b16 %v256_v15, %v256_v15  ;;  %v930_v31 = vor.u32 %v1083_v28, %v927_v30  ;;  %v917_v32 = vld [vmem:[%s1466_s3 + $0x40] sm:$0xf]  ;;  %v1082_v33 = vld [vmem:[%s1466_s3 + $0x44] sm:$0xf0]  ;;  %v1081_v34 = vld [vmem:[%s1466_s3 + $0x44] sm:$0xf] }
  0x12   : > { %477 = vmatpush.bf16.msra.mxu2 %v926_v29  ;;  %v918_v35 = vor.u32 %v1082_v33, %v917_v32  ;;  %v919_v36 = vld [vmem:[%s1466_s3 + $0x48] sm:$0xf0]  ;;  %v909_v38 = vld [vmem:[%s1466_s3 + $0x30] sm:$0xf]  ;;  %v1080_v39 = vld [vmem:[%s1466_s3 + $0x34] sm:$0xf0] }
  0x13   : > { %v268_v12 = vshrl.u32 %v259_v9, 16  ;;  %v270_v13 = vshll.u32 %v259_v9, 16  ;;  %v263_v20 = vshll.u32 %v258_v18, 16  ;;  %v261_v22 = vshrl.u32 %v258_v18, 16  ;;  %490 = vmatpush.bf16.msra.mxu3 %v930_v31  ;;  %v1079_v40 = vld [vmem:[%s1466_s3 + $0x34] sm:$0xf] }
  0x14   : > { %353 = vmatpush.bf16.msra.mxu0 %v1066_v4  ;;  %v922_v37 = vor.u32 %v1081_v34, %v919_v36  ;;  %v910_v41 = vor.u32 %v1080_v39, %v909_v38  ;;  %v911_v42 = vld [vmem:[%s1466_s3 + $0x38] sm:$0xf0]  ;;  %v1107_v44 = vld [vmem:[%s1466_s3 + $0x114] sm:$0xf]  ;;  %v901_v47 = vld [vmem:[%s1466_s3 + $0x20] sm:$0xf] }
  0x15   : > { %370 = vmatpush.bf16.msra.mxu1 %v1070_v7  ;;  %v272_v14 = vrot.slane %v270_v13, 1  ;;  %v265_v23 = vrot.slane %v263_v20, 1  ;;  %v914_v43 = vor.u32 %v1079_v40, %v911_v42  ;;  %v1051_v45 = vld [vmem:[%s1466_s3 + $0x118] sm:$0xf0]  ;;  %v1078_v48 = vld [vmem:[%s1466_s3 + $0x24] sm:$0xf0] }
  0x16   : > { %478 = vmatpush.bf16.msra.mxu2 %v918_v35  ;;  %v1054_v46 = vor.u32 %v1107_v44, %v1051_v45  ;;  %v1077_v49 = vld [vmem:[%s1466_s3 + $0x24] sm:$0xf]  ;;  %v902_v50 = vor.u32 %v1078_v48, %v901_v47  ;;  %v903_v51 = vld [vmem:[%s1466_s3 + $0x28] sm:$0xf0]  ;;  %v987_v53 = vld [vmem:[%s1466_s3 + $0xb0] sm:$0xf] }
  0x17   : > { %v273_v17 = vor.u32 %v272_v14, %v268_v12  ;;  %v266_v25 = vor.u32 %v265_v23, %v261_v22  ;;  %491 = vmatpush.bf16.msra.mxu3 %v922_v37  ;;  %v906_v52 = vor.u32 %v1077_v49, %v903_v51  ;;  %v1096_v54 = vld [vmem:[%s1466_s3 + $0xb4] sm:$0xf0]  ;;  %v1105_v55 = vld [vmem:[%s1466_s3 + $0x104] sm:$0xf]  ;;  %v1043_v57 = vld [vmem:[%s1466_s3 + $0x108] sm:$0xf0] }
  0x18   : > { %354 = vmatpush.bf16.msra.mxu0 %v1065_v10  ;;  %v988_v56 = vor.u32 %v1096_v54, %v987_v53  ;;  %v893_v58 = vld [vmem:[%s1466_s3 + $0x10] sm:$0xf]  ;;  %v1076_v59 = vld [vmem:[%s1466_s3 + $0x14] sm:$0xf0]  ;;  %v1046_v60 = vor.u32 %v1105_v55, %v1043_v57  ;;  %v1075_v62 = vld [vmem:[%s1466_s3 + $0x14] sm:$0xf] }
  0x19   : > { %371 = vmatpush.bf16.msra.mxu1 %v1069_v11  ;;  %v894_v61 = vor.u32 %v1076_v59, %v893_v58  ;;  %v895_v63 = vld [vmem:[%s1466_s3 + $0x18] sm:$0xf0]  ;;  %v979_v1 = vld [vmem:[%s1466_s3 + $0xa0] sm:$0xf]  ;;  %v1094_v2 = vld [vmem:[%s1466_s3 + $0xa4] sm:$0xf0] }
  0x1a   : > { %479 = vmatpush.bf16.msra.mxu2 %v910_v41  ;;  %v898_v0 = vor.u32 %v1075_v62, %v895_v63  ;;  %v1103_v3 = vld [vmem:[%s1466_s3 + $0xf4] sm:$0xf]  ;;  %v980_v4 = vor.u32 %v1094_v2, %v979_v1  ;;  %v1035_v6 = vld [vmem:[%s1466_s3 + $0xf8] sm:$0xf0]  ;;  %v885_v7 = vld [vmem:[%s1466_s3] sm:$0xf] }
  0x1b   : > { %492 = vmatpush.bf16.msra.mxu3 %v914_v43  ;;  %v1038_v8 = vor.u32 %v1103_v3, %v1035_v6  ;;  %v1074_v9 = vld [vmem:[%s1466_s3 + $0x4] sm:$0xf0]  ;;  %v1073_v11 = vld [vmem:[%s1466_s3 + $0x4] sm:$0xf]  ;;  %v887_v12 = vld [vmem:[%s1466_s3 + $0x8] sm:$0xf0] }
  0x1c   : > { %355 = vmatpush.bf16.msra.mxu0 %v1064_v16  ;;  %882 = vmatmul.msk.bf16.vlgmr.msra.gmra.mxu1 %vm347_vm3, %v273_v17  ;;  %v886_v10 = vor.u32 %v1074_v9, %v885_v7  ;;  %v1095_v13 = vld [vmem:[%s1466_s3 + $0xb4] sm:$0xf]  ;;  %v890_v15 = vor.u32 %v1073_v11, %v887_v12  ;;  %v989_v16 = vld [vmem:[%s1466_s3 + $0xb8] sm:$0xf0]  ;;  %v1049_v17 = vld [vmem:[%s1466_s3 + $0x110] sm:$0xf] }
  0x1d   : > { %597 = vmatpush.bf16.msrb.mxu1 %v988_v56  ;;  %v1108_v18 = vld [vmem:[%s1466_s3 + $0x114] sm:$0xf0]  ;;  %v1101_v23 = vld [vmem:[%s1466_s3 + $0xe4] sm:$0xf]  ;;  %v981_v27 = vld [vmem:[%s1466_s3 + $0xa8] sm:$0xf0] }
  0x1e   : > { %480 = vmatpush.bf16.msra.mxu2 %v902_v50  ;;  %v1050_v20 = vor.u32 %v1108_v18, %v1049_v17  ;;  %v1092_v22 = vld [vmem:[%s1466_s3 + $0x94] sm:$0xf0]  ;;  %v1093_v26 = vld [vmem:[%s1466_s3 + $0xa4] sm:$0xf]  ;;  %v1041_v30 = vld [vmem:[%s1466_s3 + $0x100] sm:$0xf] }
  0x1f   : > { %493 = vmatpush.bf16.msra.mxu3 %v906_v52  ;;  %v984_v29 = vor.u32 %v1093_v26, %v981_v27  ;;  %v1106_v31 = vld [vmem:[%s1466_s3 + $0x104] sm:$0xf0]  ;;  %v963_v32 = vld [vmem:[%s1466_s3 + $0x80] sm:$0xf]  ;;  %v1099_v35 = vld [vmem:[%s1466_s3 + $0xd4] sm:$0xf] }
  0x20   : > { %356 = vmatpush.bf16.msra.mxu0 %v1063_v19  ;;  %v992_v19 = vor.u32 %v1095_v13, %v989_v16  ;;  %v1042_v33 = vor.u32 %v1106_v31, %v1041_v30  ;;  %v1090_v34 = vld [vmem:[%s1466_s3 + $0x84] sm:$0xf0]  ;;  %v1019_v36 = vld [vmem:[%s1466_s3 + $0xd8] sm:$0xf0]  ;;  %v1091_v39 = vld [vmem:[%s1466_s3 + $0x94] sm:$0xf] }
  0x21   : > { %598 = vmatpush.bf16.msrb.mxu1 %v980_v4  ;;  %v964_v37 = vor.u32 %v1090_v34, %v963_v32  ;;  %v1022_v38 = vor.u32 %v1099_v35, %v1019_v36  ;;  %v973_v40 = vld [vmem:[%s1466_s3 + $0x98] sm:$0xf0]  ;;  %v1033_v41 = vld [vmem:[%s1466_s3 + $0xf0] sm:$0xf]  ;;  %v1104_v43 = vld [vmem:[%s1466_s3 + $0xf4] sm:$0xf0] }
  0x22   : > { %481 = vmatpush.bf16.msra.mxu2 %v894_v61  ;;  %v976_v42 = vor.u32 %v1091_v39, %v973_v40  ;;  %v1034_v45 = vor.u32 %v1104_v43, %v1033_v41  ;;  %v1088_v47 = vld [vmem:[%s1466_s3 + $0x74] sm:$0xf0]  ;;  %v1097_v48 = vld [vmem:[%s1466_s3 + $0xc4] sm:$0xf]  ;;  %v1011_v50 = vld [vmem:[%s1466_s3 + $0xc8] sm:$0xf0] }
  0x23   : > { %494 = vmatpush.bf16.msra.mxu3 %v898_v0  ;;  %v1089_v51 = vld [vmem:[%s1466_s3 + $0x84] sm:$0xf]  ;;  %v965_v52 = vld [vmem:[%s1466_s3 + $0x88] sm:$0xf0]  ;;  %v1014_v53 = vor.u32 %v1097_v48, %v1011_v50  ;;  %v1025_v54 = vld [vmem:[%s1466_s3 + $0xe0] sm:$0xf] }
  0x24   : > { %357 = vmatpush.bf16.msra.mxu0 %v1062_v21  ;;  %v971_v21 = vld [vmem:[%s1466_s3 + $0x90] sm:$0xf]  ;;  %v1102_v55 = vld [vmem:[%s1466_s3 + $0xe4] sm:$0xf0]  ;;  %v968_v56 = vor.u32 %v1089_v51, %v965_v52  ;;  %v1118_v58 = vld [vmem:[%s1465_s2] ss:$0 sm:$0xff]  ;;  %v739_v51 = vunpack.c.h.bf16 %v1191_v5 }
  0x25   : > { %v1026_v57 = vor.u32 %v1102_v55, %v1025_v54  ;;  %v947_v59 = vld [vmem:[%s1466_s3 + $0x60] sm:$0xf]  ;;  %v1087_v62 = vld [vmem:[%s1466_s3 + $0x74] sm:$0xf]  ;;  %v957_v63 = vld [vmem:[%s1466_s3 + $0x78] sm:$0xf0] }
  0x26   : > { %482 = vmatpush.bf16.msra.mxu2 %v886_v10  ;;  %v1017_v0 = vld [vmem:[%s1466_s3 + $0xd0] sm:$0xf]  ;;  %v960_v2 = vor.u32 %v1087_v62, %v957_v63  ;;  %v1100_v3 = vld [vmem:[%s1466_s3 + $0xd4] sm:$0xf0]  ;;  %v949_v9 = vld [vmem:[%s1466_s3 + $0x68] sm:$0xf0] }
  0x27   : > { %495 = vmatpush.bf16.msra.mxu3 %v890_v15  ;;  %v1018_v6 = vor.u32 %v1100_v3, %v1017_v0  ;;  %v1009_v10 = vld [vmem:[%s1466_s3 + $0xc0] sm:$0xf]  ;;  %v1098_v12 = vld [vmem:[%s1466_s3 + $0xc4] sm:$0xf0]  ;;  %vm392_vm6 = vsmask.f32 2306 }
  0x28   : > { %358 = vmatpush.bf16.msra.mxu0 %v1061_v24  ;;  %v972_v24 = vor.u32 %v1092_v22, %v971_v21  ;;  %vm393_vm7 = vmand %vm380_vm4, %vm392_vm6  ;;  %v394_v21 = vld [vmem:[#allocation2] sm:$0x7]  ;;  %vm764_vm11 = vsmask.f32 6418 }
  0x29   : > { %v397_v40 = vld [vmem:[%s1467_s4] sm:$0x3]  ;;  %vm762_vm12 = vmand %vm748_vm0, %vm392_vm6 }
  0x2a   : > { %610 = vmatpush.bf16.msrb.mxu2 %v992_v19  ;;  %599 = vmatpush.bf16.msrb.mxu1 %v972_v24  ;;  %v502_v43 = vperm.slane %v397_v40, 0  ;;  %vm765_vm13 = vmand %vm749_vm1, %vm764_vm11 }
  0x2b   : > { %359 = vmatmul.bf16.vlgmr.msra.gmra.mxu0 %v266_v25  ;;  %v1027_v25 = vld [vmem:[%s1466_s3 + $0xe8] sm:$0xf0]  ;;  %706 = vmatpush.bf16.msrb.mxu3 %v1050_v20  ;;  %vm766_vm14 = vmor %vm765_vm13, %vm762_vm12 }
  0x2c   : > { %719 = vmatpush.bf16.msrb.mxu0 %v1054_v46  ;;  %v1030_v28 = vor.u32 %v1101_v23, %v1027_v25  ;;  %v955_v46 = vld [vmem:[%s1466_s3 + $0x70] sm:$0xf] }
  0x2d   : > { %v956_v49 = vor.u32 %v1088_v47, %v955_v46 }
  0x2e   : > { %611 = vmatpush.bf16.msrb.mxu2 %v984_v29  ;;  %600 = vmatpush.bf16.msrb.mxu1 %v964_v37 }
  0x2f   : > { %707 = vmatpush.bf16.msrb.mxu3 %v1042_v33 }
  0x30   : > { %720 = vmatpush.bf16.msrb.mxu0 %v1046_v60  ;;  %v1086_v60 = vld [vmem:[%s1466_s3 + $0x64] sm:$0xf0] }
  0x31   : > { %v948_v61 = vor.u32 %v1086_v60, %v947_v59 }
  0x32   : > { %612 = vmatpush.bf16.msrb.mxu2 %v976_v42  ;;  %601 = vmatpush.bf16.msrb.mxu1 %v956_v49 }
  0x33   : > { %708 = vmatpush.bf16.msrb.mxu3 %v1034_v45  ;;  %v503_v45 = vperm.slane %v397_v40, 1 }
  0x34   : > { %721 = vmatpush.bf16.msrb.mxu0 %v1038_v8  ;;  %v1085_v8 = vld [vmem:[%s1466_s3 + $0x64] sm:$0xf] }
  0x35   : > { %v952_v11 = vor.u32 %v1085_v8, %v949_v9 }
  0x36   : > { %613 = vmatpush.bf16.msrb.mxu2 %v968_v56  ;;  %602 = vmatpush.bf16.msrb.mxu1 %v948_v61 }
  0x37   : > { %709 = vmatpush.bf16.msrb.mxu3 %v1026_v57 }
  0x38   : > { %722 = vmatpush.bf16.msrb.mxu0 %v1030_v28 }
  0x3a   : > { %614 = vmatpush.bf16.msrb.mxu2 %v960_v2 }
  0x3b   : > { %710 = vmatpush.bf16.msrb.mxu3 %v1018_v6 }
  0x3c   : > { %723 = vmatpush.bf16.msrb.mxu0 %v1022_v38 }
  0x3e   : > { %615 = vmatpush.bf16.msrb.mxu2 %v952_v11 }
  0x40   : > { %724 = vmatpush.bf16.msrb.mxu0 %v1014_v53  ;;  %v738_v53 = vunpack.c.l.bf16 %v1191_v5 }
  0x42   : > { %v742_v59 = vrot.slane %v738_v53, 1 }
  0x99   : > { %v1325_v14 = vpop.f32.mrf.mxu1 }
  0xa1   : > { %v375_v44 = vpop.f32.mrf.mxu1 }
  0xa8   : > { %v360_v1 = vpop.f32.mrf.mxu0 }
  0xa9   : > { %v361_v4 = vadd.f32 %v1118_v58, %v360_v1  ;;  %v743_v58 = vrot.slane %v739_v51, 1 }
  0xab   : > { %v374_v7 = vadd.f32 %v1325_v14, %v361_v4  ;;  %v1010_v14 = vor.u32 %v1098_v12, %v1009_v10 }
  0xad   : > { %vm377_vm5 = vcmp.gt.f32.partialorder %v374_v7, 0.0  ;;  %v378_v13 = vmul.f32 0.1, %v374_v7  ;;  %711 = vmatpush.bf16.msrb.mxu3 %v1010_v14 }
  0xaf   : > { %v379_v15 = vsel %vm377_vm5, %v374_v7, %v378_v13  ;;  %v767_v7 = vld [vmem:[%s1186_s9] sm:$0x77] }
  0xb0   : > { %v382_v16 = vpack.c.bf16 %v379_v15, %v379_v15  ;;  %v362_v17 = vpop.f32.mrf.mxu0 }
  0xb2   : > { %v384_v18 = vshrl.u32 %v382_v16, 16  ;;  %v387_v20 = vshll.u32 %v382_v16, 16 }
  0xb4   : > { %v386_v19 = vrot.slane %v384_v18, 7 }
  0xb6   : > { %v389_v22 = vor.u32 %v387_v20, %v386_v19 }
  0xb8   : > { %v395_v23 = vsel %vm393_vm7, %v389_v22, %v394_v21 }
  0xb9   : > { %396 = vst [vmem:[#allocation2] sm:$0x7] %v395_v23 }
  0xc0   : > { %v398_v24 = vld [vmem:[#allocation2] sm:$0x3] }
  0xc1   : > { %v623_v25 = vld [vmem:[#allocation2] sm:$0x6]  ;;  %931 = vmatmul.msk.bf16.vlgmr.msra.gmra.mxu2 %vm471_vm8, %v398_v24  ;;  %932 = vmatmul.msk.bf16.vlgmr.msra.gmra.mxu3 %vm471_vm8, %v398_v24 }
  0xc2   : > { %v508_v26 = vld [vmem:[#allocation2] sm:$0x7]  ;;  %v638_v27 = vunpack.c.l.b16 %v623_v25 }
  0xc3   : > { %v523_v28 = vunpack.c.l.b16 %v508_v26 }
  0xc4   : > { %v639_v29 = vpack.c.b16 %v638_v27, %v638_v27 }
  0xc5   : > { %v524_v30 = vpack.c.b16 %v523_v28, %v523_v28 }
  0xc6   : > { %v640_v31 = vrot.slane %v639_v29, 1 }
  0xc7   : > { %v528_v32 = vshll.u32 %v524_v30, 16  ;;  %v526_v33 = vshrl.u32 %v524_v30, 16 }
  0xc8   : > { %1056 = vmatmul.msk.bf16.vlgmr.msrb.gmra.mxu0 %vm471_vm8, %v640_v31 }
  0xc9   : > { %v530_v34 = vrot.slane %v528_v32, 1 }
  0xcb   : > { %v531_v35 = vor.u32 %v530_v34, %v526_v33 }
  0xcd   : > { %993 = vmatmul.msk.bf16.vlgmr.msrb.gmra.mxu1 %vm471_vm8, %v531_v35 }
  0xd1   : > { %994 = vmatmul.msk.bf16.vlgmr.msrb.gmra.mxu2 %vm471_vm8, %v531_v35  ;;  %1055 = vmatmul.msk.bf16.vlgmr.msrb.gmra.mxu3 %vm471_vm8, %v640_v31 }
 0x144   : > { %v484_v36 = vpop.f32.mrf.mxu2  ;;  %v497_v37 = vpop.f32.mrf.mxu3 }
 0x145   : > { %v726_v38 = vpop.f32.mrf.mxu0  ;;  %v506_v47 = vadd.f32 %v502_v43, %v484_v36  ;;  %v507_v48 = vadd.f32 %v503_v45, %v497_v37 }
 0x14a   : > { %v604_v39 = vpop.f32.mrf.mxu1 }
 0x14b   : > { %v621_v49 = vadd.f32 %v604_v39, %v506_v47 }
 0x14c   : > { %v486_v41 = vpop.f32.mrf.mxu2  ;;  %v499_v42 = vpop.f32.mrf.mxu3 }
 0x14d   : > { %v728_v44 = vpop.f32.mrf.mxu0 }
 0x152   : > { %v606_v46 = vpop.f32.mrf.mxu1 }
 0x154   : > { %v617_v50 = vpop.f32.mrf.mxu2  ;;  %v713_v52 = vpop.f32.mrf.mxu3 }
 0x155   : > { %v622_v54 = vadd.f32 %v617_v50, %v507_v48  ;;  %v730_v55 = vadd.f32 %v713_v52, %v621_v49 }
 0x157   : > { %v731_v56 = vadd.f32 %v726_v38, %v622_v54  ;;  %vm732_vm9 = vcmp.gt.f32.partialorder %v730_v55, 0.0  ;;  %v734_v57 = vmul.f32 0.1, %v730_v55 }
 0x159   : > { %vm733_vm10 = vcmp.gt.f32.partialorder %v731_v56, 0.0  ;;  %v735_v60 = vmul.f32 0.1, %v731_v56  ;;  %v736_v61 = vsel %vm732_vm9, %v730_v55, %v734_v57 }
 0x15a   : > { %v746_v0 = vadd.f32 %v742_v59, %v736_v61 }
 0x15b   : > { %v737_v62 = vsel %vm733_vm10, %v731_v56, %v735_v60 }
 0x15c   : > { %v747_v63 = vadd.f32 %v743_v58, %v737_v62  ;;  %v619_v1 = vpop.f32.mrf.mxu2  ;;  %v715_v2 = vpop.f32.mrf.mxu3 }
 0x15e   : > { %v752_v3 = vpack.c.bf16 %v747_v63, %v746_v0 }
 0x160   : > { %v754_v5 = vshrl.u32 %v752_v3, 16  ;;  %v757_v6 = vshll.u32 %v752_v3, 16 }
 0x162   : > { %v756_v4 = vrot.slane %v754_v5, 7 }
 0x164   : > { %v759_v8 = vor.u32 %v757_v6, %v756_v4 }
 0x166   : > { %v768_v9 = vsel %vm766_vm14, %v759_v8, %v767_v7 }
 0x167   : > { %769 = vst [vmem:[%s1186_s9] sm:$0x77] %v768_v9 }
 0x168 PF: > { %s15_s18 = sadd.s32 1, %s1125_s18  }
 0x169   : > { %p12_p4 = scmp.ge.s32.totalorder %s15_s18, 6  }
 0x16b   :  { %14 = sbr.rel (!%p12_p4) target bundleno = 1 (0x1), region = 72 }

// kernel: siamese_forward.13
= control target key start
LH: loop header
LB: loop body
LE: loop exit
PB: predicated region body
PF: predicated region fallthrough
CT: control target
= control target key end

     0   :  { %s1430_s15 = smov 0   ;;  %s1913_s0 = inlined_call_operand.vmem [shape: bf16[4,3,192], index: 0, kind: input, shape index: {}]   ;;  %s1914_s1 = inlined_call_operand.vmem [shape: bf16[4,3,192], index: 1, kind: input, shape index: {}]   ;;  %s1915_s2 = inlined_call_operand.vmem [shape: bf16[3,192,256], index: 2, kind: input, shape index: {}]   ;;  %s1916_s3 = inlined_call_operand.vmem [shape: f32[1,256], index: 3, kind: input, shape index: {}]   ;;  %s1917_s4 = inlined_call_operand.vmem [shape: bf16[4,4,256], index: 4, kind: output, shape index: {}]  }
   0x1 LB: > { %s957_s16 = sadd.s32 4294967295, %s1402_s15   ;;  %p961_p0 = scmp.ge.s32.totalorder %s1402_s15, 1  ;;  %s1402_s15 = sphi %s1430_s15, %s14_s15  }
   0x2   : > { %p172_p1 = scmp.lt.s32.totalorder %s1402_s15, 5 }
   0x4   : > { %p173_p2 = pnand %p961_p0, %p172_p1 }
   0x5   : > { %p203_p3 = scmp.lt.s32.totalorder (!%p173_p2), %s957_s16, 3 }
   0x6   : > { %176 = sbr.rel (%p173_p2) target bundleno = 246 (0xf6), region = 36 }
   0xb   : > { %v1026_v0 = vld [vmem:[%s1915_s2 + $0x70] sm:$0xf]  ;;  %v1330_v1 = vld [vmem:[%s1915_s2 + $0x74] sm:$0xf0]  ;;  %v1329_v2 = vld [vmem:[%s1915_s2 + $0x74] sm:$0xf] }
   0xc   : > { %v1027_v3 = vor.u32 %v1330_v1, %v1026_v0  ;;  %v1028_v4 = vld [vmem:[%s1915_s2 + $0x78] sm:$0xf0]  ;;  %v1337_v5 = vld [vmem:[%s1915_s2 + $0xb4] sm:$0xf]  ;;  %v1058_v9 = vld [vmem:[%s1915_s2 + $0xb0] sm:$0xf] }
   0xd   : > { %v1060_v6 = vld [vmem:[%s1915_s2 + $0xb8] sm:$0xf0]  ;;  %v1031_v7 = vor.u32 %v1329_v2, %v1028_v4  ;;  %v1338_v10 = vld [vmem:[%s1915_s2 + $0xb4] sm:$0xf0]  ;;  %v1018_v11 = vld [vmem:[%s1915_s2 + $0x60] sm:$0xf] }
   0xe   : > { %v1063_v8 = vor.u32 %v1337_v5, %v1060_v6  ;;  %375 = vmatpush.bf16.msra.mxu0 %v1027_v3  ;;  %v1059_v12 = vor.u32 %v1338_v10, %v1058_v9  ;;  %v1328_v13 = vld [vmem:[%s1915_s2 + $0x64] sm:$0xf0]  ;;  %v1327_v14 = vld [vmem:[%s1915_s2 + $0x64] sm:$0xf]  ;;  %v1020_v15 = vld [vmem:[%s1915_s2 + $0x68] sm:$0xf0] }
   0xf   : > { %401 = vmatpush.bf16.msra.mxu2 %v1031_v7  ;;  %v1019_v16 = vor.u32 %v1328_v13, %v1018_v11  ;;  %v1023_v17 = vor.u32 %v1327_v14, %v1020_v15  ;;  %v1335_v18 = vld [vmem:[%s1915_s2 + $0xa4] sm:$0xf]  ;;  %v1052_v19 = vld [vmem:[%s1915_s2 + $0xa8] sm:$0xf0]  ;;  %v1050_v20 = vld [vmem:[%s1915_s2 + $0xa0] sm:$0xf] }
  0x10   : > { %418 = vmatpush.bf16.msra.mxu3 %v1063_v8  ;;  %392 = vmatpush.bf16.msra.mxu1 %v1059_v12  ;;  %v1055_v21 = vor.u32 %v1335_v18, %v1052_v19  ;;  %v1336_v22 = vld [vmem:[%s1915_s2 + $0xa4] sm:$0xf0]  ;;  %v1010_v23 = vld [vmem:[%s1915_s2 + $0x50] sm:$0xf]  ;;  %v1326_v24 = vld [vmem:[%s1915_s2 + $0x54] sm:$0xf0] }
  0x11   : > { %v1051_v25 = vor.u32 %v1336_v22, %v1050_v20  ;;  %v1325_v26 = vld [vmem:[%s1915_s2 + $0x54] sm:$0xf]  ;;  %v1012_v27 = vld [vmem:[%s1915_s2 + $0x58] sm:$0xf0]  ;;  %v1011_v29 = vor.u32 %v1326_v24, %v1010_v23  ;;  %v1042_v31 = vld [vmem:[%s1915_s2 + $0x90] sm:$0xf] }
  0x12   : > { %v1333_v28 = vld [vmem:[%s1915_s2 + $0x94] sm:$0xf]  ;;  %376 = vmatpush.bf16.msra.mxu0 %v1019_v16  ;;  %v1044_v30 = vld [vmem:[%s1915_s2 + $0x98] sm:$0xf0]  ;;  %v1334_v32 = vld [vmem:[%s1915_s2 + $0x94] sm:$0xf0]  ;;  %v1015_v33 = vor.u32 %v1325_v26, %v1012_v27 }
  0x13   : > { %402 = vmatpush.bf16.msra.mxu2 %v1023_v17  ;;  %v1047_v34 = vor.u32 %v1333_v28, %v1044_v30  ;;  %v1002_v35 = vld [vmem:[%s1915_s2 + $0x40] sm:$0xf]  ;;  %v1324_v36 = vld [vmem:[%s1915_s2 + $0x44] sm:$0xf0]  ;;  %v1323_v37 = vld [vmem:[%s1915_s2 + $0x44] sm:$0xf]  ;;  %v1043_v38 = vor.u32 %v1334_v32, %v1042_v31 }
  0x14   : > { %419 = vmatpush.bf16.msra.mxu3 %v1055_v21  ;;  %393 = vmatpush.bf16.msra.mxu1 %v1051_v25  ;;  %v1004_v39 = vld [vmem:[%s1915_s2 + $0x48] sm:$0xf0]  ;;  %v1331_v40 = vld [vmem:[%s1915_s2 + $0x84] sm:$0xf]  ;;  %v1180_v42 = vld [vmem:[%s1915_s2 + $0x170] sm:$0xf]  ;;  %v1003_v45 = vor.u32 %v1324_v36, %v1002_v35 }
  0x15   : > { %v1036_v41 = vld [vmem:[%s1915_s2 + $0x88] sm:$0xf0]  ;;  %v1362_v43 = vld [vmem:[%s1915_s2 + $0x174] sm:$0xf0]  ;;  %v1034_v44 = vld [vmem:[%s1915_s2 + $0x80] sm:$0xf]  ;;  %v1007_v47 = vor.u32 %v1323_v37, %v1004_v39 }
  0x16   : > { %377 = vmatpush.bf16.msra.mxu0 %v1011_v29  ;;  %v1332_v46 = vld [vmem:[%s1915_s2 + $0x84] sm:$0xf0]  ;;  %v1039_v48 = vor.u32 %v1331_v40, %v1036_v41  ;;  %v994_v49 = vld [vmem:[%s1915_s2 + $0x30] sm:$0xf]  ;;  %v1322_v50 = vld [vmem:[%s1915_s2 + $0x34] sm:$0xf0]  ;;  %v1181_v52 = vor.u32 %v1362_v43, %v1180_v42 }
  0x17   : > { %403 = vmatpush.bf16.msra.mxu2 %v1015_v33  ;;  %v1148_v51 = vld [vmem:[%s1915_s2 + $0x130] sm:$0xf]  ;;  %v1035_v53 = vor.u32 %v1332_v46, %v1034_v44  ;;  %v1321_v54 = vld [vmem:[%s1915_s2 + $0x34] sm:$0xf]  ;;  %v996_v55 = vld [vmem:[%s1915_s2 + $0x38] sm:$0xf0]  ;;  %v995_v60 = vor.u32 %v1322_v50, %v994_v49 }
  0x18   : > { %420 = vmatpush.bf16.msra.mxu3 %v1047_v34  ;;  %394 = vmatpush.bf16.msra.mxu1 %v1043_v38  ;;  %v1354_v56 = vld [vmem:[%s1915_s2 + $0x134] sm:$0xf0]  ;;  %v1172_v58 = vld [vmem:[%s1915_s2 + $0x160] sm:$0xf]  ;;  %v1360_v59 = vld [vmem:[%s1915_s2 + $0x164] sm:$0xf0]  ;;  %v999_v63 = vor.u32 %v1321_v54, %v996_v55 }
  0x19   : > { %v1149_v57 = vor.u32 %v1354_v56, %v1148_v51  ;;  %v1140_v61 = vld [vmem:[%s1915_s2 + $0x120] sm:$0xf]  ;;  %v1352_v62 = vld [vmem:[%s1915_s2 + $0x124] sm:$0xf0]  ;;  %v1173_v2 = vor.u32 %v1360_v59, %v1172_v58  ;;  %v1319_v3 = vld [vmem:[%s1915_s2 + $0x24] sm:$0xf] }
  0x1a   : > { %378 = vmatpush.bf16.msra.mxu0 %v1003_v45  ;;  %v986_v0 = vld [vmem:[%s1915_s2 + $0x20] sm:$0xf]  ;;  %v1320_v1 = vld [vmem:[%s1915_s2 + $0x24] sm:$0xf0]  ;;  %v988_v4 = vld [vmem:[%s1915_s2 + $0x28] sm:$0xf0]  ;;  %v1141_v5 = vor.u32 %v1352_v62, %v1140_v61 }
  0x1b   : > { %404 = vmatpush.bf16.msra.mxu2 %v1007_v47  ;;  %v1164_v6 = vld [vmem:[%s1915_s2 + $0x150] sm:$0xf]  ;;  %v1358_v7 = vld [vmem:[%s1915_s2 + $0x154] sm:$0xf0]  ;;  %v987_v8 = vor.u32 %v1320_v1, %v986_v0  ;;  %v991_v11 = vor.u32 %v1319_v3, %v988_v4  ;;  %s1919_s16 = smov (!%p203_p3, %s957_s16), 3  ;;  %vm372_vm0 = vcmask 523264  }
  0x1c   : > { %421 = vmatpush.bf16.msra.mxu3 %v1039_v48  ;;  %395 = vmatpush.bf16.msra.mxu1 %v1035_v53  ;;  %v1132_v9 = vld [vmem:[%s1915_s2 + $0x110] sm:$0xf]  ;;  %v1350_v10 = vld [vmem:[%s1915_s2 + $0x114] sm:$0xf0]  ;;  %v1165_v14 = vor.u32 %v1358_v7, %v1164_v6  ;;  %v1317_v15 = vld [vmem:[%s1915_s2 + $0x14] sm:$0xf] }
  0x1d   : > { %v978_v12 = vld [vmem:[%s1915_s2 + $0x10] sm:$0xf]  ;;  %v1318_v13 = vld [vmem:[%s1915_s2 + $0x14] sm:$0xf0]  ;;  %v980_v16 = vld [vmem:[%s1915_s2 + $0x18] sm:$0xf0]  ;;  %v1133_v18 = vor.u32 %v1350_v10, %v1132_v9 }
  0x1e   : > { %379 = vmatpush.bf16.msra.mxu0 %v995_v60  ;;  %v1156_v17 = vld [vmem:[%s1915_s2 + $0x140] sm:$0xf]  ;;  %s1613_s9 = sshll.u32 %s1919_s16, 2  ;;  %v1356_v19 = vld [vmem:[%s1915_s2 + $0x144] sm:$0xf0]  ;;  %v979_v21 = vor.u32 %v1318_v13, %v978_v12  ;;  %v983_v25 = vor.u32 %v1317_v15, %v980_v16  ;;  %vm869_vm3 = vcmask 1041408  }
  0x1f   : > { %405 = vmatpush.bf16.msra.mxu2 %v999_v63  ;;  %v970_v20 = vld [vmem:[%s1915_s2] sm:$0xf]  ;;  %s1625_s18 = scalar_lea.vmem %s1913_s0, %s1613_s9  ;;  %v1316_v22 = vld [vmem:[%s1915_s2 + $0x4] sm:$0xf0]  ;;  %v1315_v27 = vld [vmem:[%s1915_s2 + $0x4] sm:$0xf]  ;;  %v1157_v29 = vor.u32 %v1356_v19, %v1156_v17  ;;  %s212_s20 = scalar_lea.vmem %s1914_s1, %s1613_s9 }
  0x20   : > { %603 = vmatpush.bf16.msrb.mxu3 %v1181_v52  ;;  %586 = vmatpush.bf16.msrb.mxu1 %v1149_v57  ;;  %v1124_v23 = vld [vmem:[%s1915_s2 + $0x100] sm:$0xf]  ;;  %v1348_v24 = vld [vmem:[%s1915_s2 + $0x104] sm:$0xf0]  ;;  %v972_v28 = vld [vmem:[%s1915_s2 + $0x8] sm:$0xf0]  ;;  %v971_v37 = vor.u32 %v1316_v22, %v970_v20  ;;  %s1902_s28 = scalar_lea.vmem %s1917_s4, %s1613_s9 }
  0x21   : > { %v219_v26 = vld [vmem:[%s1625_s18] sm:$0x5]  ;;  %v1353_v30 = vld [vmem:[%s1915_s2 + $0x134] sm:$0xf]  ;;  %v1150_v31 = vld [vmem:[%s1915_s2 + $0x138] sm:$0xf0]  ;;  %v1125_v32 = vor.u32 %v1348_v24, %v1124_v23  ;;  %v975_v38 = vor.u32 %v1315_v27, %v972_v28 }
  0x22   : > { %380 = vmatpush.bf16.msra.mxu0 %v987_v8  ;;  %248 = vst [vmem:[#allocation1] ss:$4 sm:$0xff] %v219_v26  ;;  %v1361_v33 = vld [vmem:[%s1915_s2 + $0x174] sm:$0xf]  ;;  %v1182_v34 = vld [vmem:[%s1915_s2 + $0x178] sm:$0xf0]  ;;  %v1153_v39 = vor.u32 %v1353_v30, %v1150_v31 }
  0x23   : > { %406 = vmatpush.bf16.msra.mxu2 %v991_v11  ;;  %v1270_v35 = vld [vmem:[%s1915_s2 + $0x1f0] sm:$0xf]  ;;  %v1378_v36 = vld [vmem:[%s1915_s2 + $0x1f4] sm:$0xf0]  ;;  %v1185_v42 = vor.u32 %v1361_v33, %v1182_v34  ;;  %v1262_v43 = vld [vmem:[%s1915_s2 + $0x1e0] sm:$0xf] }
  0x24   : > { %604 = vmatpush.bf16.msrb.mxu3 %v1173_v2  ;;  %587 = vmatpush.bf16.msrb.mxu1 %v1141_v5  ;;  %v1116_v40 = vld [vmem:[%s1915_s2 + $0xf0] sm:$0xf]  ;;  %v1346_v41 = vld [vmem:[%s1915_s2 + $0xf4] sm:$0xf0]  ;;  %v1351_v44 = vld [vmem:[%s1915_s2 + $0x124] sm:$0xf]  ;;  %v1271_v46 = vor.u32 %v1378_v36, %v1270_v35 }
  0x25   : > { %v1142_v45 = vld [vmem:[%s1915_s2 + $0x128] sm:$0xf0]  ;;  %v220_v47 = vld [vmem:[%s212_s20] sm:$0x5]  ;;  %v1359_v48 = vld [vmem:[%s1915_s2 + $0x164] sm:$0xf]  ;;  %v1117_v51 = vor.u32 %v1346_v41, %v1116_v40 }
  0x26   : > { %381 = vmatpush.bf16.msra.mxu0 %v979_v21  ;;  %v1174_v49 = vld [vmem:[%s1915_s2 + $0x168] sm:$0xf0]  ;;  %v1376_v50 = vld [vmem:[%s1915_s2 + $0x1e4] sm:$0xf0]  ;;  %v1108_v52 = vld [vmem:[%s1915_s2 + $0xe0] sm:$0xf]  ;;  %v1145_v56 = vor.u32 %v1351_v44, %v1142_v45 }
  0x27   : > { %407 = vmatpush.bf16.msra.mxu2 %v983_v25  ;;  %v1344_v53 = vld [vmem:[%s1915_s2 + $0xe4] sm:$0xf0]  ;;  %v1177_v57 = vor.u32 %v1359_v48, %v1174_v49  ;;  %v1349_v58 = vld [vmem:[%s1915_s2 + $0x114] sm:$0xf]  ;;  %v1134_v59 = vld [vmem:[%s1915_s2 + $0x118] sm:$0xf0]  ;;  %v1263_v60 = vor.u32 %v1376_v50, %v1262_v43 }
  0x28   : > { %605 = vmatpush.bf16.msrb.mxu3 %v1165_v14  ;;  %588 = vmatpush.bf16.msrb.mxu1 %v1133_v18  ;;  %v1357_v61 = vld [vmem:[%s1915_s2 + $0x154] sm:$0xf]  ;;  %v1166_v62 = vld [vmem:[%s1915_s2 + $0x158] sm:$0xf0]  ;;  %v1254_v63 = vld [vmem:[%s1915_s2 + $0x1d0] sm:$0xf]  ;;  %v1109_v1 = vor.u32 %v1344_v53, %v1108_v52  ;;  %v1137_v3 = vor.u32 %v1349_v58, %v1134_v59 }
  0x29   : > { %v250_v54 = vld.sshfl [vmem:[#allocation1 + $0x8] sm:$0xff pattern:$0x73625140]  ;;  %v249_v55 = vld.sshfl [vmem:[#allocation1] sm:$0xff pattern:$0x73625140]  ;;  %v1169_v7 = vor.u32 %v1357_v61, %v1166_v62 }
  0x2a   : > { %382 = vmatpush.bf16.msra.mxu0 %v971_v37  ;;  %1065 = vmatmul.msk.bf16.vlgmr.msra.gmra.mxu3 %vm372_vm0, %v250_v54  ;;  %460 = vst [vmem:[#allocation1] ss:$4 sm:$0xff] %v220_v47  ;;  %v1374_v0 = vld [vmem:[%s1915_s2 + $0x1d4] sm:$0xf0]  ;;  %v1100_v2 = vld [vmem:[%s1915_s2 + $0xd0] sm:$0xf] }
  0x2b   : > { %408 = vmatpush.bf16.msra.mxu2 %v975_v38  ;;  %1064 = vmatmul.msk.bf16.vlgmr.msra.gmra.mxu1 %vm372_vm0, %v250_v54  ;;  %v1342_v4 = vld [vmem:[%s1915_s2 + $0xd4] sm:$0xf0]  ;;  %v1347_v5 = vld [vmem:[%s1915_s2 + $0x104] sm:$0xf]  ;;  %v1126_v6 = vld [vmem:[%s1915_s2 + $0x108] sm:$0xf0]  ;;  %v1255_v13 = vor.u32 %v1374_v0, %v1254_v63 }
  0x2c   : > { %606 = vmatpush.bf16.msrb.mxu3 %v1157_v29  ;;  %589 = vmatpush.bf16.msrb.mxu1 %v1125_v32  ;;  %v1246_v8 = vld [vmem:[%s1915_s2 + $0x1c0] sm:$0xf]  ;;  %v1372_v9 = vld [vmem:[%s1915_s2 + $0x1c4] sm:$0xf0]  ;;  %v1355_v10 = vld [vmem:[%s1915_s2 + $0x144] sm:$0xf]  ;;  %v1101_v17 = vor.u32 %v1342_v4, %v1100_v2  ;;  %v1129_v22 = vor.u32 %v1347_v5, %v1126_v6 }
  0x2d   : > { %383 = vmatmul.bf16.vlgmr.msra.gmra.mxu0 %v249_v55  ;;  %v1158_v11 = vld [vmem:[%s1915_s2 + $0x148] sm:$0xf0]  ;;  %v1377_v12 = vld [vmem:[%s1915_s2 + $0x1f4] sm:$0xf]  ;;  %v1272_v14 = vld [vmem:[%s1915_s2 + $0x1f8] sm:$0xf0]  ;;  %v1247_v27 = vor.u32 %v1372_v9, %v1246_v8 }
  0x2e   : > { %612 = vmatpush.bf16.msrb.mxu0 %v1153_v39  ;;  %409 = vmatmul.bf16.vlgmr.msra.gmra.mxu2 %v249_v55  ;;  %v1092_v15 = vld [vmem:[%s1915_s2 + $0xc0] sm:$0xf]  ;;  %v1340_v18 = vld [vmem:[%s1915_s2 + $0xc4] sm:$0xf0]  ;;  %v1345_v19 = vld [vmem:[%s1915_s2 + $0xf4] sm:$0xf]  ;;  %v1161_v24 = vor.u32 %v1355_v10, %v1158_v11  ;;  %v1275_v29 = vor.u32 %v1377_v12, %v1272_v14 }
  0x2f   : > { %629 = vmatpush.bf16.msrb.mxu2 %v1185_v42  ;;  %v221_v16 = vld [vmem:[%s1625_s18] sm:$0xf]  ;;  %v1118_v20 = vld [vmem:[%s1915_s2 + $0xf8] sm:$0xf0]  ;;  %v1302_v25 = vld [vmem:[%s1915_s2 + $0x230] sm:$0xf]  ;;  %v1093_v31 = vor.u32 %v1340_v18, %v1092_v15 }
  0x30   : > { %805 = vmatpush.bf16.msra.mxu3 %v1271_v46  ;;  %590 = vmatpush.bf16.msrb.mxu1 %v1117_v51  ;;  %v1386_v26 = vld [vmem:[%s1915_s2 + $0x234] sm:$0xf0]  ;;  %v1238_v28 = vld [vmem:[%s1915_s2 + $0x1b0] sm:$0xf]  ;;  %v1375_v32 = vld [vmem:[%s1915_s2 + $0x1e4] sm:$0xf]  ;;  %v1121_v34 = vor.u32 %v1345_v19, %v1118_v20 }
  0x31   : > { %v462_v21 = vld.sshfl [vmem:[#allocation1 + $0x8] sm:$0xff pattern:$0x73625140]  ;;  %v1758_v23 = vld.sshfl [vmem:[#allocation1] sm:$0xff pattern:$0x73625140]  ;;  %v1303_v35 = vor.u32 %v1386_v26, %v1302_v25 }
  0x32   : > { %613 = vmatpush.bf16.msrb.mxu0 %v1145_v56  ;;  %666 = vst [vmem:[#allocation1] ss:$4 sm:$0xff] %v221_v16  ;;  %v1370_v30 = vld [vmem:[%s1915_s2 + $0x1b4] sm:$0xf0]  ;;  %v1264_v33 = vld [vmem:[%s1915_s2 + $0x1e8] sm:$0xf0] }
  0x33   : > { %630 = vmatpush.bf16.msrb.mxu2 %v1177_v57  ;;  %v1343_v36 = vld [vmem:[%s1915_s2 + $0xe4] sm:$0xf]  ;;  %v1110_v37 = vld [vmem:[%s1915_s2 + $0xe8] sm:$0xf0]  ;;  %v1294_v38 = vld [vmem:[%s1915_s2 + $0x220] sm:$0xf]  ;;  %v1239_v40 = vor.u32 %v1370_v30, %v1238_v28  ;;  %v1267_v42 = vor.u32 %v1375_v32, %v1264_v33 }
  0x34   : > { %806 = vmatpush.bf16.msra.mxu3 %v1263_v60  ;;  %591 = vmatpush.bf16.msrb.mxu1 %v1109_v1  ;;  %v1384_v39 = vld [vmem:[%s1915_s2 + $0x224] sm:$0xf0]  ;;  %v1230_v41 = vld [vmem:[%s1915_s2 + $0x1a0] sm:$0xf]  ;;  %v1373_v44 = vld [vmem:[%s1915_s2 + $0x1d4] sm:$0xf]  ;;  %v1113_v46 = vor.u32 %v1343_v36, %v1110_v37 }
  0x35   : > { %v1368_v43 = vld [vmem:[%s1915_s2 + $0x1a4] sm:$0xf0]  ;;  %v1256_v45 = vld [vmem:[%s1915_s2 + $0x1d8] sm:$0xf0]  ;;  %v1295_v47 = vor.u32 %v1384_v39, %v1294_v38  ;;  %v1341_v48 = vld [vmem:[%s1915_s2 + $0xd4] sm:$0xf] }
  0x36   : > { %614 = vmatpush.bf16.msrb.mxu0 %v1137_v3  ;;  %v1222_v49 = vld [vmem:[%s1915_s2 + $0x190] sm:$0xf]  ;;  %v1102_v50 = vld [vmem:[%s1915_s2 + $0xd8] sm:$0xf0]  ;;  %v1382_v52 = vld [vmem:[%s1915_s2 + $0x214] sm:$0xf0]  ;;  %v1231_v53 = vor.u32 %v1368_v43, %v1230_v41  ;;  %v1259_v55 = vor.u32 %v1373_v44, %v1256_v45 }
  0x37   : > { %631 = vmatpush.bf16.msrb.mxu2 %v1169_v7  ;;  %v1286_v51 = vld [vmem:[%s1915_s2 + $0x210] sm:$0xf]  ;;  %v1366_v54 = vld [vmem:[%s1915_s2 + $0x194] sm:$0xf0]  ;;  %v1371_v57 = vld [vmem:[%s1915_s2 + $0x1c4] sm:$0xf]  ;;  %v1105_v60 = vor.u32 %v1341_v48, %v1102_v50 }
  0x38   : > { %807 = vmatpush.bf16.msra.mxu3 %v1255_v13  ;;  %592 = vmatpush.bf16.msrb.mxu1 %v1101_v17  ;;  %v1248_v58 = vld [vmem:[%s1915_s2 + $0x1c8] sm:$0xf0]  ;;  %v1339_v59 = vld [vmem:[%s1915_s2 + $0xc4] sm:$0xf]  ;;  %v1287_v61 = vor.u32 %v1382_v52, %v1286_v51  ;;  %v1214_v0 = vld [vmem:[%s1915_s2 + $0x180] sm:$0xf]  ;;  %v1223_v4 = vor.u32 %v1366_v54, %v1222_v49 }
  0x39   : > { %v667_v56 = vld.sshfl [vmem:[#allocation1] sm:$0xff pattern:$0x73625140]  ;;  %v1094_v62 = vld [vmem:[%s1915_s2 + $0xc8] sm:$0xf0]  ;;  %v1251_v6 = vor.u32 %v1371_v57, %v1248_v58  ;;  %vm883_vm5 = vcmask 1043458  }
  0x3a   : > { %615 = vmatpush.bf16.msrb.mxu0 %v1129_v22  ;;  %1186 = vmatmul.msk.bf16.vlgmr.msrb.gmra.mxu3 %vm372_vm0, %v462_v21  ;;  %v668_v63 = vld.sshfl [vmem:[#allocation1 + $0x8] sm:$0xff pattern:$0x73625140]  ;;  %v671_v1 = vshll.u32 %v667_v56, 16  ;;  %v1278_v2 = vld [vmem:[%s1915_s2 + $0x200] sm:$0xf]  ;;  %v1097_v12 = vor.u32 %v1339_v59, %v1094_v62 }
  0x3b   : > { %632 = vmatpush.bf16.msrb.mxu2 %v1161_v24  ;;  %v1380_v3 = vld [vmem:[%s1915_s2 + $0x204] sm:$0xf0]  ;;  %v1385_v7 = vld [vmem:[%s1915_s2 + $0x234] sm:$0xf]  ;;  %v1304_v8 = vld [vmem:[%s1915_s2 + $0x238] sm:$0xf0] }
  0x3c   : > { %808 = vmatpush.bf16.msra.mxu3 %v1247_v27  ;;  %593 = vmatpush.bf16.msrb.mxu1 %v1093_v31  ;;  %v1364_v5 = vld [vmem:[%s1915_s2 + $0x184] sm:$0xf0]  ;;  %v1369_v9 = vld [vmem:[%s1915_s2 + $0x1b4] sm:$0xf]  ;;  %v1240_v10 = vld [vmem:[%s1915_s2 + $0x1b8] sm:$0xf0]  ;;  %v1279_v13 = vor.u32 %v1380_v3, %v1278_v2  ;;  %v1307_v16 = vor.u32 %v1385_v7, %v1304_v8 }
  0x3d   : > { %v677_v11 = vshll.u32 %v668_v63, 16  ;;  %v669_v14 = vshrl.u32 %v667_v56, 16  ;;  %v673_v15 = vrot.slane %v671_v1, 1  ;;  %v1215_v17 = vor.u32 %v1364_v5, %v1214_v0  ;;  %v1383_v19 = vld [vmem:[%s1915_s2 + $0x224] sm:$0xf] }
  0x3e   : > { %616 = vmatpush.bf16.msrb.mxu0 %v1121_v34  ;;  %1187 = vmatmul.msk.bf16.vlgmr.msrb.gmra.mxu2 %vm372_vm0, %v462_v21  ;;  %v1243_v18 = vor.u32 %v1369_v9, %v1240_v10  ;;  %v1296_v20 = vld [vmem:[%s1915_s2 + $0x228] sm:$0xf0]  ;;  %v1367_v21 = vld [vmem:[%s1915_s2 + $0x1a4] sm:$0xf]  ;;  %v675_v24 = vshrl.u32 %v668_v63, 16 }
  0x3f   : > { %831 = vmatpush.bf16.msra.mxu2 %v1275_v29  ;;  %594 = vmatmul.bf16.vlgmr.msrb.gmra.mxu1 %v1758_v23  ;;  %v1232_v22 = vld [vmem:[%s1915_s2 + $0x1a8] sm:$0xf0]  ;;  %v679_v25 = vrot.slane %v677_v11, 1  ;;  %v674_v26 = vor.u32 %v673_v15, %v669_v14  ;;  %v1299_v27 = vor.u32 %v1383_v19, %v1296_v20  ;;  %v1381_v29 = vld [vmem:[%s1915_s2 + $0x214] sm:$0xf] }
  0x40   : > { %822 = vmatpush.bf16.msra.mxu1 %v1303_v35  ;;  %809 = vmatpush.bf16.msra.mxu3 %v1239_v40  ;;  %v1235_v28 = vor.u32 %v1367_v21, %v1232_v22  ;;  %v1288_v30 = vld [vmem:[%s1915_s2 + $0x218] sm:$0xf0]  ;;  %v1365_v32 = vld [vmem:[%s1915_s2 + $0x194] sm:$0xf]  ;;  %v1379_v36 = vld [vmem:[%s1915_s2 + $0x204] sm:$0xf] }
  0x41   : > { %v680_v31 = vor.u32 %v679_v25, %v675_v24  ;;  %v1224_v33 = vld [vmem:[%s1915_s2 + $0x198] sm:$0xf0]  ;;  %v1291_v34 = vor.u32 %v1381_v29, %v1288_v30  ;;  %v1363_v37 = vld [vmem:[%s1915_s2 + $0x184] sm:$0xf]  ;;  %v1216_v38 = vld [vmem:[%s1915_s2 + $0x188] sm:$0xf0] }
  0x42   : > { %617 = vmatpush.bf16.msrb.mxu0 %v1113_v46  ;;  %v1227_v35 = vor.u32 %v1365_v32, %v1224_v33  ;;  %v1219_v40 = vor.u32 %v1363_v37, %v1216_v38  ;;  %v222_v58 = vld [vmem:[%s1916_s3] sm:$0x3]  ;;  %vm881_vm4 = vsmask.f32 1282  ;;  %vm884_vm6 = vsmask.f32 3338 }
  0x43   : > { %832 = vmatpush.bf16.msra.mxu2 %v1267_v42  ;;  %v428_v62 = vperm.slane %v222_v58, 0  ;;  %v429_v3 = vperm.slane %v222_v58, 1  ;;  %vm882_vm7 = vmand %vm869_vm3, %vm881_vm4 }
  0x44   : > { %823 = vmatpush.bf16.msra.mxu1 %v1295_v47  ;;  %810 = vmatpush.bf16.msra.mxu3 %v1231_v53  ;;  %v1404_v53 = vmov 0   ;;  %vm885_vm8 = vmand %vm883_vm5, %vm884_vm6 }
  0x45   : > { %865 = vst [vmem:[%s1902_s28] sm:$0xf] %v1404_v53  ;;  %vm886_vm9 = vmor %vm885_vm8, %vm882_vm7 }
  0x46   : > { %618 = vmatpush.bf16.msrb.mxu0 %v1105_v60 }
  0x47   : > { %833 = vmatpush.bf16.msra.mxu2 %v1259_v55 }
  0x48   : > { %824 = vmatpush.bf16.msra.mxu1 %v1287_v61  ;;  %811 = vmatpush.bf16.msra.mxu3 %v1223_v4 }
  0x4a   : > { %619 = vmatpush.bf16.msrb.mxu0 %v1097_v12 }
  0x4b   : > { %834 = vmatpush.bf16.msra.mxu2 %v1251_v6 }
  0x4c   : > { %825 = vmatpush.bf16.msra.mxu1 %v1279_v13  ;;  %812 = vmatpush.bf16.msra.mxu3 %v1215_v17 }
  0x4d   : > { %620 = vmatmul.bf16.vlgmr.msrb.gmra.mxu0 %v1758_v23  ;;  %v1280_v23 = vld [vmem:[%s1915_s2 + $0x208] sm:$0xf0] }
  0x4e   : > { %848 = vmatpush.bf16.msra.mxu0 %v1307_v16  ;;  %v1283_v39 = vor.u32 %v1379_v36, %v1280_v23 }
  0x4f   : > { %835 = vmatpush.bf16.msra.mxu2 %v1243_v18  ;;  %813 = vmatmul.bf16.vlgmr.msra.gmra.mxu3 %v674_v26 }
  0x50   : > { %1308 = vmatmul.msk.bf16.vlgmr.msra.gmra.mxu1 %vm372_vm0, %v680_v31 }
  0x52   : > { %849 = vmatpush.bf16.msra.mxu0 %v1299_v27 }
  0x53   : > { %836 = vmatpush.bf16.msra.mxu2 %v1235_v28  ;;  %v887_v28 = vld [vmem:[%s1902_s28] sm:$0xf] }
  0x56   : > { %850 = vmatpush.bf16.msra.mxu0 %v1291_v34 }
  0x57   : > { %837 = vmatpush.bf16.msra.mxu2 %v1227_v35 }
  0x5a   : > { %851 = vmatpush.bf16.msra.mxu0 %v1283_v39 }
  0x5b   : > { %838 = vmatpush.bf16.msra.mxu2 %v1219_v40 }
  0x5d   : > { %1309 = vmatmul.msk.bf16.vlgmr.msra.gmra.mxu0 %vm372_vm0, %v680_v31 }
  0x5e   : > { %839 = vmatmul.bf16.vlgmr.msra.gmra.mxu2 %v674_v26 }
  0xa8   : > { %v397_v41 = vpop.f32.mrf.mxu1 }
  0xaa   : > { %v384_v42 = vpop.f32.mrf.mxu0 }
  0xab   : > { %v398_v61 = vadd.f32 %v397_v41, %v384_v42 }
  0xad   : > { %v423_v43 = vpop.f32.mrf.mxu3  ;;  %v432_v0 = vadd.f32 %v428_v62, %v398_v61 }
  0xb0   : > { %v399_v45 = vpop.f32.mrf.mxu1 }
  0xb1   : > { %v410_v44 = vpop.f32.mrf.mxu2 }
  0xb2   : > { %v386_v46 = vpop.f32.mrf.mxu0  ;;  %v424_v2 = vadd.f32 %v423_v43, %v410_v44 }
  0xb4   : > { %v433_v9 = vadd.f32 %v429_v3, %v424_v2 }
  0xb5   : > { %v425_v47 = vpop.f32.mrf.mxu3 }
  0xb9   : > { %v412_v48 = vpop.f32.mrf.mxu2 }
  0xbc   : > { %v595_v49 = vpop.f32.mrf.mxu1 }
  0xbd   : > { %v608_v50 = vpop.f32.mrf.mxu3 }
  0xbe   : > { %v609_v1 = vadd.f32 %v608_v50, %v595_v49 }
  0xc0   : > { %v638_v7 = vadd.f32 %v609_v1, %v432_v0 }
  0xc1   : > { %v634_v51 = vpop.f32.mrf.mxu2 }
  0xc4   : > { %v597_v52 = vpop.f32.mrf.mxu1 }
  0xc5   : > { %v610_v54 = vpop.f32.mrf.mxu3 }
  0xc9   : > { %v636_v56 = vpop.f32.mrf.mxu2 }
  0xca   : > { %v621_v55 = vpop.f32.mrf.mxu0 }
  0xcb   : > { %v635_v8 = vadd.f32 %v634_v51, %v621_v55 }
  0xcd   : > { %v827_v57 = vpop.f32.mrf.mxu1  ;;  %v639_v12 = vadd.f32 %v635_v8, %v433_v9 }
  0xd2   : > { %v814_v59 = vpop.f32.mrf.mxu3  ;;  %v623_v60 = vpop.f32.mrf.mxu0 }
  0xd3   : > { %v828_v4 = vadd.f32 %v827_v57, %v814_v59 }
  0xd5   : > { %v829_v63 = vpop.f32.mrf.mxu1  ;;  %v857_v10 = vadd.f32 %v828_v4, %v638_v7 }
  0xd7   : > { %v861_v14 = vmul.f32 0.1, %v857_v10  ;;  %vm859_vm1 = vcmp.gt.f32.partialorder %v857_v10, 0.0 }
  0xd9   : > { %v863_v18 = vsel %vm859_vm1, %v857_v10, %v861_v14 }
  0xda   : > { %v853_v5 = vpop.f32.mrf.mxu0  ;;  %v816_v6 = vpop.f32.mrf.mxu3 }
  0xe1   : > { %v840_v11 = vpop.f32.mrf.mxu2 }
  0xe2   : > { %v854_v13 = vadd.f32 %v853_v5, %v840_v11  ;;  %v855_v16 = vpop.f32.mrf.mxu0 }
  0xe4   : > { %v858_v15 = vadd.f32 %v854_v13, %v639_v12 }
  0xe6   : > { %vm860_vm2 = vcmp.gt.f32.partialorder %v858_v15, 0.0  ;;  %v862_v17 = vmul.f32 0.1, %v858_v15 }
  0xe8   : > { %v864_v19 = vsel %vm860_vm2, %v858_v15, %v862_v17 }
  0xe9   : > { %v866_v20 = vpack.c.bf16 %v864_v19, %v863_v18  ;;  %v842_v21 = vpop.f32.mrf.mxu2 }
  0xeb   : > { %v868_v22 = vrot.slane %v866_v20, 2 }
  0xed   : > { %v872_v24 = vsel %vm869_vm3, %v866_v20, %v868_v22 }
  0xee   : > { %v873_v25 = vshrl.u32 %v872_v24, 16  ;;  %v876_v27 = vshll.u32 %v872_v24, 16 }
  0xf0   : > { %v875_v26 = vrot.slane %v873_v25, 7 }
  0xf2   : > { %v878_v29 = vor.u32 %v876_v27, %v875_v26 }
  0xf4   : > { %v888_v30 = vsel %vm886_vm9, %v878_v29, %v887_v28 }
  0xf5   : > { %889 = vst [vmem:[%s1902_s28] sm:$0xf] %v888_v30 }
  0xf6 PF: > { %s14_s15 = sadd.s32 1, %s1402_s15  }
  0xf7   : > { %p11_p4 = scmp.ge.s32.totalorder %s14_s15, 6  }
  0xf9   :  { %13 = sbr.rel (!%p11_p4) target bundleno = 1 (0x1), region = 71 }

// kernel: tile.93
= control target key start
LH: loop header
LB: loop body
LE: loop exit
PB: predicated region body
PF: predicated region fallthrough
CT: control target
= control target key end

     0   :  { %s22_s0 = inlined_call_operand.vmem [shape: f32[32], index: 0, kind: input, shape index: {}]   ;;  %s23_s1 = inlined_call_operand.vmem [shape: f32[2,32], index: 1, kind: output, shape index: {}]  }
   0x1   :  { %v4_v0 = vld [vmem:[%s22_s0] ss:$0 sm:$0xff] }
   0x2   :  { %5 = vst [vmem:[%s23_s1] sm:$0x3] %v4_v0 }

// kernel: tile.94
= control target key start
LH: loop header
LB: loop body
LE: loop exit
PB: predicated region body
PF: predicated region fallthrough
CT: control target
= control target key end

     0   :  { %vm7_vm0 = vcmask 261120   ;;  %vm13_vm1 = vcmask 523520   ;;  %s39_s0 = inlined_call_operand.vmem [shape: f32[2,32], index: 0, kind: input, shape index: {}]   ;;  %s40_s1 = inlined_call_operand.vmem [shape: f32[64], index: 1, kind: output, shape index: {}]  }
   0x1   :  { %v4_v0 = vld [vmem:[%s39_s0] sm:$0x3]  ;;  %s22_s0 = smov 32  }
   0x2   :  { %5 = vst [vmem:[#allocation1] sm:$0x3] %v4_v0 }
   0x9   :  { %v10_v1 = vld [vmem:[#allocation1 + $0x1] sm:$0x1]   ;;  %v6_v2 = vld [vmem:[#allocation1] sm:$0x1]  }
   0xa   :  { %11 = vrot.lane.b32.xlu0 %v10_v1, %s22_s0  ;;  %8 = vst.msk [vmem:[#allocation0] sm:$0x1] %vm7_vm0, %v6_v2  }
  0x7c   :  { %v12_v3 = vpop.permute.xlu0 %11  }
  0x7d   :  { %14 = vst.msk [vmem:[#allocation0] sm:$0x1] %vm13_vm1, %v12_v3  }
  0x84   :  { %v17_v4 = vld [vmem:[#allocation0] sm:$0x1] }
  0x85   :  { %20 = vst [vmem:[%s40_s1] sm:$0x1] %v17_v4 }

// kernel: siamese_forward.15
= control target key start
LH: loop header
LB: loop body
LE: loop exit
PB: predicated region body
PF: predicated region fallthrough
CT: control target
= control target key end

     0   :  { %v335_v2 = vmov 4.0   ;;  %vm32_vm0 = vcmask 519168   ;;  %s432_s0 = inlined_call_operand.vmem [shape: bf16[2,4,64], index: 0, kind: input, shape index: {}]   ;;  %s433_s1 = inlined_call_operand.vmem [shape: bf16[2,4,64], index: 1, kind: input, shape index: {}]   ;;  %s434_s2 = inlined_call_operand.vmem [shape: bf16[64,32], index: 2, kind: input, shape index: {}]   ;;  %s435_s3 = inlined_call_operand.vmem [shape: bf16[64,32], index: 3, kind: input, shape index: {}]   ;;  %s436_s4 = inlined_call_operand.vmem [shape: f32[1,32], index: 4, kind: input, shape index: {}]   ;;  %s437_s5 = inlined_call_operand.vmem [shape: bf16[32,128], index: 5, kind: input, shape index: {}]   ;;  %s438_s6 = inlined_call_operand.vmem [shape: f32[1,128], index: 6, kind: input, shape index: {}]   ;;  %s439_s7 = inlined_call_operand.hbm [shape: f32[2,128], index: 7, kind: output, shape index: {}]  }
   0x1   :  { %v300_v0 = vld [vmem:[%s435_s3 + $0x18] sm:$0xff]  ;;  %307 = vrcp.f32 %v335_v2  ;;  %v299_v3 = vld [vmem:[%s435_s3 + $0x10] sm:$0xff]  ;;  %v56_v5 = vld [vmem:[%s433_s1] sm:$0x3] }
   0x2   :  { %v296_v1 = vld [vmem:[%s434_s2 + $0x18] sm:$0xff]  ;;  %135 = vmatpush.bf16.msra.mxu0 %v300_v0  ;;  %v295_v4 = vld [vmem:[%s434_s2 + $0x10] sm:$0xff]  ;;  %v57_v6 = vld [vmem:[%s433_s1 + $0x2] sm:$0x3]  ;;  %v58_v7 = vunpack.c.l.bf16 %v56_v5 }
   0x3   :  { %181 = vmatpush.bf16.msra.mxu1 %v296_v1  ;;  %v28_v8 = vld [vmem:[%s432_s0] sm:$0x3]  ;;  %v29_v9 = vld [vmem:[%s432_s0 + $0x2] sm:$0x3]  ;;  %v59_v10 = vunpack.c.l.bf16 %v57_v6 }
   0x4   :  { %v30_v11 = vunpack.c.l.bf16 %v28_v8  ;;  %v31_v12 = vunpack.c.l.bf16 %v29_v9 }
   0x5   :  { %12 = vsyncpa [#allocation3], 0  ;;  %v60_v13 = vsel %vm32_vm0, %v58_v7, 0.0  ;;  %v298_v14 = vld [vmem:[%s435_s3 + $0x8] sm:$0xff]  ;;  %v67_v17 = vsel %vm32_vm0, %v59_v10, 0.0  ;;  %v297_v29 = vld [vmem:[%s435_s3] sm:$0xff] }
   0x6   :  { %136 = vmatpush.bf16.msra.mxu0 %v299_v3  ;;  %v294_v15 = vld [vmem:[%s434_s2 + $0x8] sm:$0xff]  ;;  %v61_v16 = vrot.slane %v60_v13, 4  ;;  %v33_v18 = vsel %vm32_vm0, %v30_v11, 0.0  ;;  %v40_v19 = vsel %vm32_vm0, %v31_v12, 0.0  ;;  %v68_v21 = vrot.slane %v67_v17, 4  ;;  %v293_v30 = vld [vmem:[%s434_s2] sm:$0xff] }
   0x7   :  { %182 = vmatpush.bf16.msra.mxu1 %v295_v4  ;;  %v308_v20 = vpop.eup %307  ;;  %v34_v22 = vrot.slane %v33_v18, 4  ;;  %v41_v23 = vrot.slane %v40_v19, 4  ;;  %vm100_vm2 = vcmask 1041409   ;;  %vm127_vm3 = vcmask 523264   ;;  %v302_v3 = vld [vmem:[%s437_s5 + $0x8] sm:$0xff]  ;;  %v301_v4 = vld [vmem:[%s437_s5] sm:$0xff] }
   0x8   :  { %v48_v24 = vmul.f32 4.0, %v308_v20  ;;  %v62_v25 = vadd.f32 %v61_v16, %v60_v13  ;;  %v69_v26 = vadd.f32 %v68_v21, %v67_v17  ;;  %vm52_vm1 = vweird.f32 %v308_v20  ;;  %226 = vmatpush.bf16.msra.mxu2 %v302_v3  ;;  %v305_v5 = vld [vmem:[%s436_s4] ss:$0 sm:$0xff]  ;;  %s336_s29 = smov [#allocation2]   ;;  %s241_s9 = sshll.u32 %s439_s7, 4  ;;  %s242_s9 = int_to_ptr.hbm [resolvable:$true] %s241_s9 }
   0x9   :  { %v35_v27 = vadd.f32 %v34_v22, %v33_v18  ;;  %v42_v28 = vadd.f32 %v41_v23, %v40_v19  ;;  %vm216_vm4 = vcmask 261120   ;;  %v306_v13 = vld [vmem:[%s438_s6] ss:$0 sm:$0xff]  ;;  %s239_s5 = sshll.u32 %s336_s29, 4  ;;  %s240_s5 = int_to_ptr.vmem [resolvable:$true] %s239_s5 }
   0xa   :  { %137 = vmatpush.bf16.msra.mxu0 %v298_v14  ;;  %v49_v31 = vsub.f32 1.0, %v48_v24  ;;  %v63_v32 = vrot.slane %v62_v25, 2  ;;  %v70_v33 = vrot.slane %v69_v26, 2 }
   0xb   :  { %183 = vmatpush.bf16.msra.mxu1 %v294_v15  ;;  %v36_v34 = vrot.slane %v35_v27, 2  ;;  %v43_v35 = vrot.slane %v42_v28, 2 }
   0xc   :  { %v50_v36 = vmul.f32 %v308_v20, %v49_v31  ;;  %v64_v37 = vadd.f32 %v63_v32, %v62_v25  ;;  %v71_v38 = vadd.f32 %v70_v33, %v69_v26  ;;  %227 = vmatpush.bf16.msra.mxu2 %v301_v4 }
   0xd   :  { %v37_v39 = vadd.f32 %v36_v34, %v35_v27  ;;  %v44_v40 = vadd.f32 %v43_v35, %v42_v28 }
   0xe   :  { %138 = vmatpush.bf16.msra.mxu0 %v297_v29  ;;  %v51_v41 = vadd.f32 %v308_v20, %v50_v36  ;;  %v65_v42 = vrot.slane %v64_v37, 1  ;;  %v72_v43 = vrot.slane %v71_v38, 1 }
   0xf   :  { %184 = vmatpush.bf16.msra.mxu1 %v293_v30  ;;  %v38_v44 = vrot.slane %v37_v39, 1  ;;  %v45_v45 = vrot.slane %v44_v40, 1 }
  0x10   :  { %v53_v46 = vsel %vm52_vm1, %v308_v20, %v51_v41  ;;  %v66_v47 = vadd.f32 %v65_v42, %v64_v37  ;;  %v73_v48 = vadd.f32 %v72_v43, %v71_v38 }
  0x11   :  { %v39_v49 = vadd.f32 %v38_v44, %v37_v39  ;;  %v46_v50 = vadd.f32 %v45_v45, %v44_v40 }
  0x12   :  { %v74_v51 = vmul.f32 %v66_v47, %v53_v46  ;;  %v75_v52 = vmul.f32 %v73_v48, %v53_v46 }
  0x13   :  { %v54_v53 = vmul.f32 %v53_v46, %v39_v49  ;;  %v55_v54 = vmul.f32 %v53_v46, %v46_v50 }
  0x14   :  { %v86_v55 = vpack.c.bf16 %v74_v51, %v74_v51  ;;  %v87_v56 = vpack.c.bf16 %v75_v52, %v75_v52 }
  0x15   :  { %v76_v57 = vpack.c.bf16 %v54_v53, %v54_v53  ;;  %v77_v58 = vpack.c.bf16 %v55_v54, %v55_v54 }
  0x16   :  { %v98_v59 = vunpack.c.l.b16 %v86_v55  ;;  %v99_v60 = vunpack.c.l.b16 %v87_v56 }
  0x17   :  { %v146_v61 = vunpack.c.l.b16 %v76_v57  ;;  %v147_v62 = vunpack.c.l.b16 %v77_v58 }
  0x18   :  { %v101_v63 = vsel %vm100_vm2, %v99_v60, %v98_v59 }
  0x19   :  { %v148_v0 = vsel %vm100_vm2, %v147_v62, %v146_v61  ;;  %v102_v1 = vpack.c.b16 %v101_v63, %v101_v63 }
  0x1a   :  { %v149_v2 = vpack.c.b16 %v148_v0, %v148_v0 }
  0x1b   :  { %266 = vmatmul.msk.bf16.vlgmr.msra.gmra.mxu0 %vm127_vm3, %v102_v1 }
  0x1c   :  { %283 = vmatmul.msk.bf16.vlgmr.msra.gmra.mxu1 %vm127_vm3, %v149_v2 }
  0x98   :  { %v140_v6 = vpop.f32.mrf.mxu0 }
  0x99   :  { %v186_v7 = vpop.f32.mrf.mxu1 }
  0x9a   :  { %v187_v8 = vadd.f32 %v186_v7, %v140_v6 }
  0x9c   :  { %v194_v9 = vadd.f32 %v305_v5, %v187_v8 }
  0x9e   :  { %v195_v10 = vpack.c.bf16 %v194_v9, %v194_v9 }
  0xa0   :  { %292 = vmatmul.msk.bf16.vlgmr.msra.gmra.mxu2 %vm216_vm4, %v195_v10  ;;  %v142_v11 = vpop.f32.mrf.mxu0 }
  0xa1   :  { %v188_v12 = vpop.f32.mrf.mxu1 }
 0x123   :  { %v229_v14 = vpop.f32.mrf.mxu2 }
 0x124   :  { %v230_v15 = vadd.f32 %v306_v13, %v229_v14 }
 0x126   :  { %233 = vst [vmem:[#allocation2] sm:$0x3] %v230_v15 }
 0x127   :  { %244 = dma.vmem_to_hbm [thread:$0]  %s240_s5, 32, %s242_s9, [#allocation3]  }
 0x12b   :  { %v231_v16 = vpop.f32.mrf.mxu2 }
 0x12c   :  { %333 = dma.done.wait [#allocation3], 32  }
 0x12d   :  { %334 = vsyncadd [#allocation3], 4294967264 }
 0x12e   :  { %249 = vsyncpa [#allocation3], 1 }

// kernel: siamese_forward.14
= control target key start
LH: loop header
LB: loop body
LE: loop exit
PB: predicated region body
PF: predicated region fallthrough
CT: control target
= control target key end

     0   :  { %s1333_s18 = smov 0   ;;  %s1719_s0 = inlined_call_operand.vmem [shape: bf16[4,4,256], index: 0, kind: input, shape index: {}]   ;;  %s1720_s1 = inlined_call_operand.vmem [shape: bf16[256,128], index: 1, kind: input, shape index: {}]   ;;  %s1721_s2 = inlined_call_operand.vmem [shape: f32[1,128], index: 2, kind: input, shape index: {}]   ;;  %s1722_s3 = inlined_call_operand.vmem [shape: bf16[3,128,256], index: 3, kind: input, shape index: {}]   ;;  %s1723_s4 = inlined_call_operand.vmem [shape: f32[1,256], index: 4, kind: input, shape index: {}]   ;;  %s1724_s5 = inlined_call_operand.vmem [shape: bf16[4,4,256], index: 5, kind: output, shape index: {}]  }
   0x1 LB: > { %s919_s19 = sadd.s32 4294967295, %s1300_s18   ;;  %p923_p0 = scmp.ge.s32.totalorder %s1300_s18, 1  ;;  %s1300_s18 = sphi %s1333_s18, %s15_s18  }
   0x2   : > { %p187_p1 = scmp.lt.s32.totalorder %s1300_s18, 5 }
   0x4   : > { %p188_p2 = pnand %p923_p0, %p187_p1 }
   0x5   : > { %p215_p3 = scmp.lt.s32.totalorder (!%p188_p2), %s919_s19, 3 }
   0x6   : > { %191 = sbr.rel (%p188_p2) target bundleno = 367 (0x16f), region = 40 }
   0xb   : > { %v1227_v0 = vld [vmem:[%s1720_s1 + $0x38] sm:$0xff]  ;;  %v1226_v2 = vld [vmem:[%s1720_s1 + $0x30] sm:$0xff]  ;;  %s1728_s19 = smov (!%p215_p3, %s919_s19), 3  ;;  %v1225_v4 = vld [vmem:[%s1720_s1 + $0x28] sm:$0xff]  ;;  %vm410_vm1 = vcmask 1041408   ;;  %vm857_vm6 = vcmask 1043458  }
   0xc   : > { %v1235_v1 = vld [vmem:[%s1720_s1 + $0x78] sm:$0xff]  ;;  %377 = vmatpush.bf16.msra.mxu0 %v1227_v0  ;;  %v1234_v3 = vld [vmem:[%s1720_s1 + $0x70] sm:$0xff]  ;;  %s1218_s30 = sshll.u32 %s1728_s19, 2  ;;  %v1233_v5 = vld [vmem:[%s1720_s1 + $0x68] sm:$0xff]  ;;  %vm422_vm2 = vsmask.f32 1282 }
   0xd   : > { %390 = vmatpush.bf16.msra.mxu1 %v1235_v1  ;;  %s219_s10 = scalar_lea.vmem %s1719_s0, %s1218_s30  ;;  %v1050_v6 = vld [vmem:[%s1722_s3 + $0x70] sm:$0xf]  ;;  %v1251_v7 = vld [vmem:[%s1722_s3 + $0x74] sm:$0xf0]  ;;  %v1250_v10 = vld [vmem:[%s1722_s3 + $0x74] sm:$0xf]  ;;  %s1477_s15 = scalar_lea.vmem %s1724_s5, %s1218_s30 }
   0xe   : > { %v1373_v8 = vld [vmem:[%s219_s10] sm:$0xf]  ;;  %v1051_v9 = vor.u32 %v1251_v7, %v1050_v6  ;;  %v1052_v11 = vld [vmem:[%s1722_s3 + $0x78] sm:$0xf0]  ;;  %v1249_v14 = vld [vmem:[%s1722_s3 + $0x64] sm:$0xf0] }
   0xf   : > { %264 = vst [vmem:[#allocation1] ss:$4 sm:$0xff] %v1373_v8  ;;  %v1055_v12 = vor.u32 %v1250_v10, %v1052_v11  ;;  %v1042_v13 = vld [vmem:[%s1722_s3 + $0x60] sm:$0xf]  ;;  %v1248_v16 = vld [vmem:[%s1722_s3 + $0x64] sm:$0xf]  ;;  %vm1701_vm3 = vmand %vm410_vm1, %vm422_vm2 }
  0x10   : > { %378 = vmatpush.bf16.msra.mxu0 %v1226_v2  ;;  %525 = vmatpush.bf16.msra.mxu2 %v1051_v9  ;;  %v1043_v15 = vor.u32 %v1249_v14, %v1042_v13  ;;  %v1044_v17 = vld [vmem:[%s1722_s3 + $0x68] sm:$0xf0]  ;;  %v1224_v18 = vld [vmem:[%s1720_s1 + $0x20] sm:$0xff]  ;;  %v1034_v20 = vld [vmem:[%s1722_s3 + $0x50] sm:$0xf]  ;;  %v1302_v1 = vmov 0  }
  0x11   : > { %391 = vmatpush.bf16.msra.mxu1 %v1234_v3  ;;  %538 = vmatpush.bf16.msra.mxu3 %v1055_v12  ;;  %v1047_v19 = vor.u32 %v1248_v16, %v1044_v17  ;;  %v1247_v21 = vld [vmem:[%s1722_s3 + $0x54] sm:$0xf0]  ;;  %v1232_v22 = vld [vmem:[%s1720_s1 + $0x60] sm:$0xff]  ;;  %v1246_v23 = vld [vmem:[%s1722_s3 + $0x54] sm:$0xf]  ;;  %843 = vst [vmem:[%s1477_s15] sm:$0xf] %v1302_v1 }
  0x12   : > { %v1036_v24 = vld [vmem:[%s1722_s3 + $0x58] sm:$0xf0]  ;;  %v1035_v25 = vor.u32 %v1247_v21, %v1034_v20  ;;  %v1026_v28 = vld [vmem:[%s1722_s3 + $0x40] sm:$0xf]  ;;  %v1245_v29 = vld [vmem:[%s1722_s3 + $0x44] sm:$0xf0] }
  0x13   : > { %v1223_v26 = vld [vmem:[%s1720_s1 + $0x18] sm:$0xff]  ;;  %v1039_v27 = vor.u32 %v1246_v23, %v1036_v24  ;;  %v1244_v31 = vld [vmem:[%s1722_s3 + $0x44] sm:$0xf]  ;;  %v1028_v32 = vld [vmem:[%s1722_s3 + $0x48] sm:$0xf0]  ;;  %v1027_v33 = vor.u32 %v1245_v29, %v1026_v28 }
  0x14   : > { %379 = vmatpush.bf16.msra.mxu0 %v1225_v4  ;;  %526 = vmatpush.bf16.msra.mxu2 %v1043_v15  ;;  %v1231_v30 = vld [vmem:[%s1720_s1 + $0x58] sm:$0xff]  ;;  %v1222_v34 = vld [vmem:[%s1720_s1 + $0x10] sm:$0xff]  ;;  %v1031_v36 = vor.u32 %v1244_v31, %v1028_v32  ;;  %v1221_v41 = vld [vmem:[%s1720_s1 + $0x8] sm:$0xff]  ;;  %406 = vst [vmem:[#allocation2] sm:$0x3] %v1302_v1 }
  0x15   : > { %392 = vmatpush.bf16.msra.mxu1 %v1233_v5  ;;  %539 = vmatpush.bf16.msra.mxu3 %v1047_v19  ;;  %v1230_v35 = vld [vmem:[%s1720_s1 + $0x50] sm:$0xff]  ;;  %v1229_v42 = vld [vmem:[%s1720_s1 + $0x48] sm:$0xff]  ;;  %v1220_v47 = vld [vmem:[%s1720_s1] sm:$0xff]  ;;  %vm858_vm7 = vsmask.f32 3338 }
  0x16   : > { %v265_v37 = vld.sshfl [vmem:[#allocation1] sm:$0xff pattern:$0x73625140]  ;;  %v266_v38 = vld.sshfl [vmem:[#allocation1 + $0x8] sm:$0xff pattern:$0x73625140]  ;;  %vm859_vm8 = vmand %vm857_vm6, %vm858_vm7 }
  0x17   : > { %v269_v39 = vshll.u32 %v265_v37, 16  ;;  %v275_v40 = vshll.u32 %v266_v38, 16  ;;  %v267_v43 = vshrl.u32 %v265_v37, 16  ;;  %v273_v45 = vshrl.u32 %v266_v38, 16  ;;  %v1228_v48 = vld [vmem:[%s1720_s1 + $0x40] sm:$0xff]  ;;  %vm860_vm9 = vmor %vm859_vm8, %vm1701_vm3 }
  0x18   : > { %380 = vmatpush.bf16.msra.mxu0 %v1224_v18  ;;  %527 = vmatpush.bf16.msra.mxu2 %v1035_v25  ;;  %v1018_v51 = vld [vmem:[%s1722_s3 + $0x30] sm:$0xf]  ;;  %v1243_v52 = vld [vmem:[%s1722_s3 + $0x34] sm:$0xf0]  ;;  %v1242_v53 = vld [vmem:[%s1722_s3 + $0x34] sm:$0xf] }
  0x19   : > { %393 = vmatpush.bf16.msra.mxu1 %v1232_v22  ;;  %540 = vmatpush.bf16.msra.mxu3 %v1039_v27  ;;  %v271_v44 = vrot.slane %v269_v39, 1  ;;  %v277_v46 = vrot.slane %v275_v40, 1  ;;  %v1019_v54 = vor.u32 %v1243_v52, %v1018_v51  ;;  %v1020_v55 = vld [vmem:[%s1722_s3 + $0x38] sm:$0xf0]  ;;  %v1010_v57 = vld [vmem:[%s1722_s3 + $0x20] sm:$0xf] }
  0x1a   : > { %v1023_v56 = vor.u32 %v1242_v53, %v1020_v55  ;;  %v1241_v58 = vld [vmem:[%s1722_s3 + $0x24] sm:$0xf0]  ;;  %v1240_v59 = vld [vmem:[%s1722_s3 + $0x24] sm:$0xf]  ;;  %v1012_v61 = vld [vmem:[%s1722_s3 + $0x28] sm:$0xf0] }
  0x1b   : > { %v272_v49 = vor.u32 %v271_v44, %v267_v43  ;;  %v278_v50 = vor.u32 %v277_v46, %v273_v45  ;;  %v1011_v60 = vor.u32 %v1241_v58, %v1010_v57  ;;  %v1015_v62 = vor.u32 %v1240_v59, %v1012_v61  ;;  %v1002_v63 = vld [vmem:[%s1722_s3 + $0x10] sm:$0xf]  ;;  %v1239_v0 = vld [vmem:[%s1722_s3 + $0x14] sm:$0xf0]  ;;  %v1238_v3 = vld [vmem:[%s1722_s3 + $0x14] sm:$0xf] }
  0x1c   : > { %381 = vmatpush.bf16.msra.mxu0 %v1223_v26  ;;  %528 = vmatpush.bf16.msra.mxu2 %v1027_v33  ;;  %v1003_v2 = vor.u32 %v1239_v0, %v1002_v63  ;;  %v1004_v4 = vld [vmem:[%s1722_s3 + $0x18] sm:$0xf0]  ;;  %v1130_v6 = vld [vmem:[%s1722_s3 + $0xf0] sm:$0xf]  ;;  %v1267_v7 = vld [vmem:[%s1722_s3 + $0xf4] sm:$0xf0] }
  0x1d   : > { %394 = vmatpush.bf16.msra.mxu1 %v1231_v30  ;;  %541 = vmatpush.bf16.msra.mxu3 %v1031_v36  ;;  %v1007_v5 = vor.u32 %v1238_v3, %v1004_v4  ;;  %v1131_v9 = vor.u32 %v1267_v7, %v1130_v6  ;;  %v1266_v10 = vld [vmem:[%s1722_s3 + $0xf4] sm:$0xf]  ;;  %v1132_v11 = vld [vmem:[%s1722_s3 + $0xf8] sm:$0xf0]  ;;  %v994_v13 = vld [vmem:[%s1722_s3] sm:$0xf] }
  0x1e   : > { %v1135_v12 = vor.u32 %v1266_v10, %v1132_v11  ;;  %v1237_v14 = vld [vmem:[%s1722_s3 + $0x4] sm:$0xf0]  ;;  %v1236_v15 = vld [vmem:[%s1722_s3 + $0x4] sm:$0xf]  ;;  %v996_v17 = vld [vmem:[%s1722_s3 + $0x8] sm:$0xf0] }
  0x1f   : > { %v995_v16 = vor.u32 %v1237_v14, %v994_v13  ;;  %v1122_v18 = vld [vmem:[%s1722_s3 + $0xe0] sm:$0xf]  ;;  %v1265_v19 = vld [vmem:[%s1722_s3 + $0xe4] sm:$0xf0]  ;;  %v999_v20 = vor.u32 %v1236_v15, %v996_v17  ;;  %v1264_v22 = vld [vmem:[%s1722_s3 + $0xe4] sm:$0xf] }
  0x20   : > { %382 = vmatpush.bf16.msra.mxu0 %v1222_v34  ;;  %529 = vmatpush.bf16.msra.mxu2 %v1019_v54  ;;  %v1123_v21 = vor.u32 %v1265_v19, %v1122_v18  ;;  %v1124_v23 = vld [vmem:[%s1722_s3 + $0xe8] sm:$0xf0]  ;;  %v1210_v24 = vld [vmem:[%s1722_s3 + $0x170] sm:$0xf]  ;;  %v1283_v26 = vld [vmem:[%s1722_s3 + $0x174] sm:$0xf0] }
  0x21   : > { %395 = vmatpush.bf16.msra.mxu1 %v1230_v35  ;;  %542 = vmatpush.bf16.msra.mxu3 %v1023_v56  ;;  %v1127_v25 = vor.u32 %v1264_v22, %v1124_v23  ;;  %v1282_v27 = vld [vmem:[%s1722_s3 + $0x174] sm:$0xf]  ;;  %v1212_v28 = vld [vmem:[%s1722_s3 + $0x178] sm:$0xf0]  ;;  %v1211_v29 = vor.u32 %v1283_v26, %v1210_v24  ;;  %v1114_v31 = vld [vmem:[%s1722_s3 + $0xd0] sm:$0xf] }
  0x22   : > { %v1215_v30 = vor.u32 %v1282_v27, %v1212_v28  ;;  %v1263_v32 = vld [vmem:[%s1722_s3 + $0xd4] sm:$0xf0]  ;;  %v1262_v33 = vld [vmem:[%s1722_s3 + $0xd4] sm:$0xf]  ;;  %v1116_v35 = vld [vmem:[%s1722_s3 + $0xd8] sm:$0xf0] }
  0x23   : > { %v1115_v34 = vor.u32 %v1263_v32, %v1114_v31  ;;  %v1119_v36 = vor.u32 %v1262_v33, %v1116_v35  ;;  %v1202_v37 = vld [vmem:[%s1722_s3 + $0x160] sm:$0xf]  ;;  %v1281_v38 = vld [vmem:[%s1722_s3 + $0x164] sm:$0xf0]  ;;  %v1280_v40 = vld [vmem:[%s1722_s3 + $0x164] sm:$0xf] }
  0x24   : > { %383 = vmatpush.bf16.msra.mxu0 %v1221_v41  ;;  %530 = vmatpush.bf16.msra.mxu2 %v1011_v60  ;;  %v1203_v39 = vor.u32 %v1281_v38, %v1202_v37  ;;  %v1204_v41 = vld [vmem:[%s1722_s3 + $0x168] sm:$0xf0]  ;;  %v1106_v43 = vld [vmem:[%s1722_s3 + $0xc0] sm:$0xf]  ;;  %v1261_v44 = vld [vmem:[%s1722_s3 + $0xc4] sm:$0xf0] }
  0x25   : > { %396 = vmatpush.bf16.msra.mxu1 %v1229_v42  ;;  %543 = vmatpush.bf16.msra.mxu3 %v1015_v62  ;;  %v1207_v42 = vor.u32 %v1280_v40, %v1204_v41  ;;  %v1260_v45 = vld [vmem:[%s1722_s3 + $0xc4] sm:$0xf]  ;;  %v1107_v46 = vor.u32 %v1261_v44, %v1106_v43  ;;  %v1278_v51 = vld [vmem:[%s1722_s3 + $0x154] sm:$0xf]  ;;  %v1196_v52 = vld [vmem:[%s1722_s3 + $0x158] sm:$0xf0] }
  0x26   : > { %v1199_v54 = vor.u32 %v1278_v51, %v1196_v52  ;;  %v1098_v55 = vld [vmem:[%s1722_s3 + $0xb0] sm:$0xf]  ;;  %v1259_v56 = vld [vmem:[%s1722_s3 + $0xb4] sm:$0xf0]  ;;  %v1258_v57 = vld [vmem:[%s1722_s3 + $0xb4] sm:$0xf] }
  0x27   : > { %v1099_v58 = vor.u32 %v1259_v56, %v1098_v55  ;;  %v1100_v59 = vld [vmem:[%s1722_s3 + $0xb8] sm:$0xf0]  ;;  %v1186_v60 = vld [vmem:[%s1722_s3 + $0x140] sm:$0xf]  ;;  %v1277_v61 = vld [vmem:[%s1722_s3 + $0x144] sm:$0xf0] }
  0x28   : > { %384 = vmatpush.bf16.msra.mxu0 %v1220_v47  ;;  %531 = vmatpush.bf16.msra.mxu2 %v1003_v2  ;;  %v1108_v47 = vld [vmem:[%s1722_s3 + $0xc8] sm:$0xf0]  ;;  %v1103_v62 = vor.u32 %v1258_v57, %v1100_v59  ;;  %v1187_v63 = vor.u32 %v1277_v61, %v1186_v60  ;;  %v1276_v0 = vld [vmem:[%s1722_s3 + $0x144] sm:$0xf]  ;;  %v1293_v2 = vld [vmem:[%s1721_s2] ss:$0 sm:$0xff] }
  0x29   : > { %397 = vmatpush.bf16.msra.mxu1 %v1228_v48  ;;  %544 = vmatpush.bf16.msra.mxu3 %v1007_v5  ;;  %v1194_v48 = vld [vmem:[%s1722_s3 + $0x150] sm:$0xf]  ;;  %v1188_v1 = vld [vmem:[%s1722_s3 + $0x148] sm:$0xf0]  ;;  %v1090_v4 = vld [vmem:[%s1722_s3 + $0xa0] sm:$0xf] }
  0x2a   : > { %v1191_v3 = vor.u32 %v1276_v0, %v1188_v1  ;;  %v1257_v5 = vld [vmem:[%s1722_s3 + $0xa4] sm:$0xf0]  ;;  %v1256_v6 = vld [vmem:[%s1722_s3 + $0xa4] sm:$0xf]  ;;  %v1178_v10 = vld [vmem:[%s1722_s3 + $0x130] sm:$0xf] }
  0x2b   : > { %385 = vmatmul.bf16.vlgmr.msra.gmra.mxu0 %v272_v49  ;;  %v1111_v49 = vor.u32 %v1260_v45, %v1108_v47  ;;  %v1091_v7 = vor.u32 %v1257_v5, %v1090_v4  ;;  %v1275_v11 = vld [vmem:[%s1722_s3 + $0x134] sm:$0xf0]  ;;  %v1274_v14 = vld [vmem:[%s1722_s3 + $0x134] sm:$0xf]  ;;  %v1180_v15 = vld [vmem:[%s1722_s3 + $0x138] sm:$0xf0] }
  0x2c   : > { %398 = vmatmul.bf16.vlgmr.msra.gmra.mxu1 %v278_v50  ;;  %666 = vmatpush.bf16.msrb.mxu0 %v1131_v9  ;;  %v1279_v50 = vld [vmem:[%s1722_s3 + $0x154] sm:$0xf0]  ;;  %v1092_v9 = vld [vmem:[%s1722_s3 + $0xa8] sm:$0xf0]  ;;  %v1179_v13 = vor.u32 %v1275_v11, %v1178_v10  ;;  %v1183_v17 = vor.u32 %v1274_v14, %v1180_v15  ;;  %v1254_v19 = vld [vmem:[%s1722_s3 + $0x94] sm:$0xf]  ;;  %v832_v10 = vunpack.c.l.bf16 %v1373_v8 }
  0x2d   : > { %679 = vmatpush.bf16.msrb.mxu1 %v1135_v12  ;;  %532 = vmatpush.bf16.msra.mxu2 %v995_v16  ;;  %v1195_v53 = vor.u32 %v1279_v50, %v1194_v48  ;;  %v1095_v12 = vor.u32 %v1256_v6, %v1092_v9  ;;  %v1082_v16 = vld [vmem:[%s1722_s3 + $0x90] sm:$0xf]  ;;  %v1255_v18 = vld [vmem:[%s1722_s3 + $0x94] sm:$0xf0]  ;;  %v1170_v24 = vld [vmem:[%s1722_s3 + $0x120] sm:$0xf] }
  0x2e   : > { %545 = vmatpush.bf16.msra.mxu3 %v999_v20  ;;  %v1084_v20 = vld [vmem:[%s1722_s3 + $0x98] sm:$0xf0]  ;;  %v1083_v23 = vor.u32 %v1255_v18, %v1082_v16  ;;  %v1272_v26 = vld [vmem:[%s1722_s3 + $0x124] sm:$0xf]  ;;  %v1253_v31 = vld [vmem:[%s1722_s3 + $0x84] sm:$0xf0] }
  0x2f   : > { %v1087_v28 = vor.u32 %v1254_v19, %v1084_v20  ;;  %v1076_v35 = vld [vmem:[%s1722_s3 + $0x88] sm:$0xf0]  ;;  %v1271_v38 = vld [vmem:[%s1722_s3 + $0x114] sm:$0xf0]  ;;  %v1164_v40 = vld [vmem:[%s1722_s3 + $0x118] sm:$0xf0] }
  0x30   : > { %667 = vmatpush.bf16.msrb.mxu0 %v1123_v21  ;;  %v1154_v50 = vld [vmem:[%s1722_s3 + $0x100] sm:$0xf]  ;;  %v1269_v51 = vld [vmem:[%s1722_s3 + $0x104] sm:$0xf0]  ;;  %v1268_v52 = vld [vmem:[%s1722_s3 + $0x104] sm:$0xf] }
  0x31   : > { %680 = vmatpush.bf16.msrb.mxu1 %v1127_v25  ;;  %798 = vmatpush.bf16.msrb.mxu2 %v1211_v29  ;;  %v1273_v25 = vld [vmem:[%s1722_s3 + $0x124] sm:$0xf0]  ;;  %v1172_v29 = vld [vmem:[%s1722_s3 + $0x128] sm:$0xf0]  ;;  %v1155_v55 = vor.u32 %v1269_v51, %v1154_v50  ;;  %v427_v15 = vld [vmem:[%s1723_s4] sm:$0x3] }
  0x32   : > { %811 = vmatpush.bf16.msrb.mxu3 %v1215_v30  ;;  %v1074_v30 = vld [vmem:[%s1722_s3 + $0x80] sm:$0xf]  ;;  %v1171_v32 = vor.u32 %v1273_v25, %v1170_v24  ;;  %v1175_v33 = vor.u32 %v1272_v26, %v1172_v29  ;;  %v552_v20 = vperm.slane %v427_v15, 0 }
  0x33   : > { %v1075_v41 = vor.u32 %v1253_v31, %v1074_v30 }
  0x34   : > { %668 = vmatpush.bf16.msrb.mxu0 %v1115_v34  ;;  %v1252_v34 = vld [vmem:[%s1722_s3 + $0x84] sm:$0xf] }
  0x35   : > { %681 = vmatpush.bf16.msrb.mxu1 %v1119_v36  ;;  %799 = vmatpush.bf16.msrb.mxu2 %v1203_v39  ;;  %v1162_v36 = vld [vmem:[%s1722_s3 + $0x110] sm:$0xf]  ;;  %v1270_v39 = vld [vmem:[%s1722_s3 + $0x114] sm:$0xf]  ;;  %v1079_v43 = vor.u32 %v1252_v34, %v1076_v35 }
  0x36   : > { %812 = vmatpush.bf16.msrb.mxu3 %v1207_v42  ;;  %v1163_v44 = vor.u32 %v1271_v38, %v1162_v36  ;;  %v1167_v45 = vor.u32 %v1270_v39, %v1164_v40 }
  0x38   : > { %669 = vmatpush.bf16.msrb.mxu0 %v1107_v46 }
  0x39   : > { %682 = vmatpush.bf16.msrb.mxu1 %v1111_v49  ;;  %800 = vmatpush.bf16.msrb.mxu2 %v1195_v53  ;;  %v1156_v53 = vld [vmem:[%s1722_s3 + $0x108] sm:$0xf0] }
  0x3a   : > { %813 = vmatpush.bf16.msrb.mxu3 %v1199_v54  ;;  %v1159_v56 = vor.u32 %v1268_v52, %v1156_v53 }
  0x3c   : > { %670 = vmatpush.bf16.msrb.mxu0 %v1099_v58 }
  0x3d   : > { %683 = vmatpush.bf16.msrb.mxu1 %v1103_v62  ;;  %801 = vmatpush.bf16.msrb.mxu2 %v1187_v63  ;;  %v424_v62 = vld [vmem:[#allocation2] sm:$0x3] }
  0x3e   : > { %814 = vmatpush.bf16.msrb.mxu3 %v1191_v3 }
  0x40   : > { %671 = vmatpush.bf16.msrb.mxu0 %v1091_v7 }
  0x41   : > { %684 = vmatpush.bf16.msrb.mxu1 %v1095_v12  ;;  %802 = vmatpush.bf16.msrb.mxu2 %v1179_v13 }
  0x42   : > { %815 = vmatpush.bf16.msrb.mxu3 %v1183_v17 }
  0x44   : > { %672 = vmatpush.bf16.msrb.mxu0 %v1083_v23 }
  0x45   : > { %685 = vmatpush.bf16.msrb.mxu1 %v1087_v28  ;;  %803 = vmatpush.bf16.msrb.mxu2 %v1171_v32 }
  0x46   : > { %816 = vmatpush.bf16.msrb.mxu3 %v1175_v33 }
  0x48   : > { %673 = vmatpush.bf16.msrb.mxu0 %v1075_v41 }
  0x49   : > { %686 = vmatpush.bf16.msrb.mxu1 %v1079_v43  ;;  %804 = vmatpush.bf16.msrb.mxu2 %v1163_v44 }
  0x4a   : > { %817 = vmatpush.bf16.msrb.mxu3 %v1167_v45 }
  0x4d   : > { %805 = vmatpush.bf16.msrb.mxu2 %v1155_v55 }
  0x4e   : > { %818 = vmatpush.bf16.msrb.mxu3 %v1159_v56 }
  0xa8   : > { %v386_v21 = vpop.f32.mrf.mxu0 }
  0xa9   : > { %v399_v22 = vpop.f32.mrf.mxu1  ;;  %v387_v27 = vadd.f32 %v1293_v2, %v386_v21  ;;  %v553_v21 = vperm.slane %v427_v15, 1 }
  0xab   : > { %v400_v37 = vadd.f32 %v399_v22, %v387_v27 }
  0xad   : > { %vm403_vm0 = vcmp.gt.f32.partialorder %v400_v37, 0.0  ;;  %v404_v42 = vmul.f32 0.1, %v400_v37 }
  0xaf   : > { %v405_v46 = vsel %vm403_vm0, %v400_v37, %v404_v42 }
  0xb0   : > { %v407_v47 = vpack.c.bf16 %v405_v46, %v405_v46  ;;  %v388_v48 = vpop.f32.mrf.mxu0 }
  0xb1   : > { %v401_v49 = vpop.f32.mrf.mxu1 }
  0xb2   : > { %v409_v54 = vrot.slane %v407_v47, 2  ;;  %v861_v49 = vld [vmem:[%s1477_s15] sm:$0xf] }
  0xb4   : > { %v413_v57 = vsel %vm410_vm1, %v407_v47, %v409_v54 }
  0xb5   : > { %v414_v58 = vshrl.u32 %v413_v57, 16  ;;  %v417_v60 = vshll.u32 %v413_v57, 16 }
  0xb7   : > { %v416_v59 = vrot.slane %v414_v58, 7 }
  0xb9   : > { %v419_v63 = vor.u32 %v417_v60, %v416_v59 }
  0xbb   : > { %v425_v0 = vsel %vm1701_vm3, %v419_v63, %v424_v62 }
  0xbc   : > { %426 = vst [vmem:[#allocation2] sm:$0x3] %v425_v0 }
  0xc3   : > { %v428_v1 = vld [vmem:[#allocation2] sm:$0x1]  ;;  %v694_v4 = vld [vmem:[#allocation2] sm:$0x2] }
  0xc4   : > { %v558_v2 = vld [vmem:[#allocation2] sm:$0x3]  ;;  %533 = vmatmul.bf16.vlgmr.msra.gmra.mxu2 %v428_v1  ;;  %546 = vmatmul.bf16.vlgmr.msra.gmra.mxu3 %v428_v1 }
  0xc5   : > { %577 = vst [vmem:[#allocation1] ss:$4 sm:$0xff] %v558_v2 }
  0xcc   : > { %v578_v3 = vld.sshfl [vmem:[#allocation1] sm:$0xff pattern:$0x73625140] }
  0xcd   : > { %v581_v5 = vshll.u32 %v578_v3, 16  ;;  %713 = vst [vmem:[#allocation1] ss:$4 sm:$0xff] %v694_v4  ;;  %v579_v6 = vshrl.u32 %v578_v3, 16 }
  0xcf   : > { %v583_v7 = vrot.slane %v581_v5, 1 }
  0xd1   : > { %v584_v9 = vor.u32 %v583_v7, %v579_v6 }
  0xd3   : > { %674 = vmatmul.bf16.vlgmr.msrb.gmra.mxu0 %v584_v9  ;;  %687 = vmatmul.bf16.vlgmr.msrb.gmra.mxu1 %v584_v9 }
  0xd4   : > { %v714_v11 = vld.sshfl [vmem:[#allocation1] sm:$0xff pattern:$0x73625140] }
  0xd5   : > { %v716_v12 = vrot.slane %v714_v11, 1  ;;  %834 = vst [vmem:[#allocation1] ss:$2 sm:$0xff] %v832_v10 }
  0xd7   : > { %806 = vmatmul.bf16.vlgmr.msrb.gmra.mxu2 %v716_v12  ;;  %819 = vmatmul.bf16.vlgmr.msrb.gmra.mxu3 %v716_v12 }
  0xdc   : > { %v835_v27 = vld.sshfl [vmem:[#allocation1] sm:$0xff pattern:$0x75316420]  ;;  %v836_v28 = vld.sshfl [vmem:[#allocation1 + $0x8] sm:$0xff pattern:$0x75316420] }
  0xdd   : > { %v837_v33 = vrot.slane %v835_v27, 1  ;;  %v838_v34 = vrot.slane %v836_v28, 1 }
 0x147   : > { %v534_v13 = vpop.f32.mrf.mxu2  ;;  %v547_v14 = vpop.f32.mrf.mxu3 }
 0x148   : > { %v556_v8 = vadd.f32 %v552_v20, %v534_v13  ;;  %v557_v22 = vadd.f32 %v553_v21, %v547_v14 }
 0x14f   : > { %v536_v16 = vpop.f32.mrf.mxu2  ;;  %v549_v17 = vpop.f32.mrf.mxu3 }
 0x150   : > { %v675_v18 = vpop.f32.mrf.mxu0  ;;  %v688_v19 = vpop.f32.mrf.mxu1 }
 0x151   : > { %v692_v23 = vadd.f32 %v675_v18, %v556_v8  ;;  %v693_v24 = vadd.f32 %v688_v19, %v557_v22 }
 0x158   : > { %v677_v25 = vpop.f32.mrf.mxu0  ;;  %v690_v26 = vpop.f32.mrf.mxu1 }
 0x15a   : > { %v807_v29 = vpop.f32.mrf.mxu2  ;;  %v820_v30 = vpop.f32.mrf.mxu3 }
 0x15b   : > { %v824_v31 = vadd.f32 %v807_v29, %v692_v23  ;;  %v825_v32 = vadd.f32 %v820_v30, %v693_v24 }
 0x15d   : > { %vm826_vm4 = vcmp.gt.f32.partialorder %v824_v31, 0.0  ;;  %v828_v35 = vmul.f32 0.1, %v824_v31  ;;  %vm827_vm5 = vcmp.gt.f32.partialorder %v825_v32, 0.0  ;;  %v829_v36 = vmul.f32 0.1, %v825_v32 }
 0x15f   : > { %v830_v37 = vsel %vm826_vm4, %v824_v31, %v828_v35  ;;  %v831_v38 = vsel %vm827_vm5, %v825_v32, %v829_v36 }
 0x160   : > { %v841_v39 = vadd.f32 %v837_v33, %v830_v37  ;;  %v842_v40 = vadd.f32 %v838_v34, %v831_v38 }
 0x162   : > { %v844_v41 = vpack.c.bf16 %v842_v40, %v841_v39  ;;  %v809_v42 = vpop.f32.mrf.mxu2  ;;  %v822_v43 = vpop.f32.mrf.mxu3 }
 0x164   : > { %v846_v44 = vrot.slane %v844_v41, 2 }
 0x166   : > { %v849_v45 = vsel %vm410_vm1, %v844_v41, %v846_v44 }
 0x167   : > { %v850_v46 = vshrl.u32 %v849_v45, 16  ;;  %v853_v48 = vshll.u32 %v849_v45, 16 }
 0x169   : > { %v852_v47 = vrot.slane %v850_v46, 7 }
 0x16b   : > { %v855_v50 = vor.u32 %v853_v48, %v852_v47 }
 0x16d   : > { %v862_v51 = vsel %vm860_vm9, %v855_v50, %v861_v49 }
 0x16e   : > { %863 = vst [vmem:[%s1477_s15] sm:$0xf] %v862_v51 }
 0x16f PF: > { %s15_s18 = sadd.s32 1, %s1300_s18  }
 0x170   : > { %p12_p4 = scmp.ge.s32.totalorder %s15_s18, 6  }
 0x172   :  { %14 = sbr.rel (!%p12_p4) target bundleno = 1 (0x1), region = 72 }

</bundles_post_ra>
